<compile_context>
chip_gen: v7x
topology: tpu7x:2x2x1
jax: 0.10.0
libtpu: 0.0.40
codegen_flags: <defaults>
</compile_context>

<pallas_src>
import functools

import jax
import jax.numpy as jnp
import numpy as np
from jax.experimental import pallas as pl
from jax.experimental.pallas import tpu as pltpu


# ------------------------------- fused kernel -------------------------------

def _cnn_fused_kernel(x_ref,      # (nb*28, 28)    nb row-stacked images
                      b1_ref,     # (28, 768)      conv1 bands (3 x 224, padded to 256)
                      mt1_ref,    # (nb*28, 1)     zero-mask for wrapped top rows
                      mb1_ref,    # (nb*28, 1)     zero-mask for wrapped bottom rows
                      b1t_ref,    # (1, 224)       conv1 bias tiled over width
                      e1_ref,     # (2*nb*14, nb*28)  pool1 row selector (even|odd)
                      s1_ref,     # (224, 256)     pool1 lane selector (even|odd)
                      b2_ref,     # (128, 768)     conv2 bands
                      mt2_ref,    # (nb*14, 1)
                      mb2_ref,    # (nb*14, 1)
                      b2t_ref,    # (1, 224)
                      e2_ref,     # (2*nb*7, nb*14)   pool2 row selector (p-major out)
                      s2_ref,     # (224, 256)     pool2 lane selector
                      wf_ref,     # (7, 112, 10)   fc1 weight per pooled row
                      bf_ref,     # (1, 10)        fc1 bias
                      out_ref,    # (nb, 10)       logits
                      *, nb):
    bf16 = jnp.bfloat16

    def dot(a, b):
        return jnp.dot(a, b, preferred_element_type=jnp.float32)

    r28 = nb * 28
    r14 = nb * 14
    r7 = nb * 7

    # ---- conv1 (3x3, pad 1): one banded matmul over all nb images ----------
    x = x_ref[...].astype(bf16)                                # (nb*28, 28)
    m = dot(x, b1_ref[...])                                    # (nb*28, 768) f32
    m0, m1, m2 = m[:, 0:224], m[:, 256:480], m[:, 512:736]
    # vertical taps: +-1 row shift inside each 28-row image block (XLU roll +
    # zero mask for the row that wrapped across the image boundary).
    m0s = pltpu.roll(m0, shift=1, axis=0) * mt1_ref[...]
    m2s = pltpu.roll(m2, shift=r28 - 1, axis=0) * mb1_ref[...]
    a1 = jnp.maximum(m1 + m0s + m2s + b1t_ref[...], 0.0)       # (nb*28, 224)

    # ---- pool1: stacked row selector + sublane-half max, then lane pairs ---
    hp = dot(e1_ref[...], a1.astype(bf16))                     # (2*nb*14, 224)
    h1 = jnp.maximum(hp[:r14, :], hp[r14:, :])                 # (nb*14, 224)
    q1 = dot(h1.astype(bf16), s1_ref[...])                     # (nb*14, 256)
    p1 = jnp.maximum(q1[:, 0:128], q1[:, 128:256])             # (nb*14, 128)

    # ---- conv2 (3x3, pad 1) -------------------------------------------------
    n = dot(p1.astype(bf16), b2_ref[...])                      # (nb*14, 768)
    n0, n1, n2 = n[:, 0:224], n[:, 256:480], n[:, 512:736]
    n0s = pltpu.roll(n0, shift=1, axis=0) * mt2_ref[...]
    n2s = pltpu.roll(n2, shift=r14 - 1, axis=0) * mb2_ref[...]
    a2 = jnp.maximum(n1 + n0s + n2s + b2t_ref[...], 0.0)       # (nb*14, 224)

    # ---- pool2 (output rows p-major: row = p*nb + img) ----------------------
    gp = dot(e2_ref[...], a2.astype(bf16))                     # (2*nb*7, 224)
    h2 = jnp.maximum(gp[:r7, :], gp[r7:, :])                   # (nb*7, 224)
    q2 = dot(h2.astype(bf16), s2_ref[...])                     # (nb*7, 256)
    p2 = jnp.maximum(q2[:, 0:112], q2[:, 128:240])             # (nb*7, 112) f32

    # ---- fc1 batched across the block: 7 matmuls of (nb,112)@(112,10) -------
    acc = dot(p2[0:nb, :].astype(bf16), wf_ref[0])
    for p in range(1, 7):
        acc = acc + dot(p2[p * nb:(p + 1) * nb, :].astype(bf16), wf_ref[p])
    out_ref[...] = acc + bf_ref[...]                           # (nb, 10)


# ------------------------------- wrapper ------------------------------------

def cnn_forward(x_nchw, prep, nb=8):
    N, cin, H, W = x_nchw.shape
    assert (cin, H, W) == (1, 28, 28), "model is fixed to 1x28x28 inputs (fc1 = 16*7*7)"
    assert prep["mt1"].shape[0] == nb * 28, "prep was built for a different nb"

    # Pad the batch up to a multiple of nb (keeps tiling predictable and grid
    # >= 2 when possible instead of collapsing everything into one step).
    npad = -(-N // nb) * nb
    x = x_nchw.reshape(N, 28, 28)
    if npad != N:
        x = jnp.concatenate([x, jnp.zeros((npad - N, 28, 28), x.dtype)], axis=0)
    x2d = x.reshape(npad * 28, 28)          # row-stacked images (free reshape)

    grid = (npad // nb,)

    def wspec(a):
        if a.ndim == 2:
            return pl.BlockSpec(a.shape, lambda i: (0, 0))
        return pl.BlockSpec(a.shape, lambda i: (0, 0, 0))

    worder = ("B1", "mt1", "mb1", "b1t", "E1", "S1",
              "B2", "mt2", "mb2", "b2t", "E2", "S2", "Wf", "bf")
    weights = [prep[k] for k in worder]

    out = pl.pallas_call(
        functools.partial(_cnn_fused_kernel, nb=nb),
        out_shape=jax.ShapeDtypeStruct((npad, 10), jnp.float32),
        grid=grid,
        in_specs=[pl.BlockSpec((nb * 28, 28), lambda i: (i, 0))]
                 + [wspec(a) for a in weights],
        out_specs=pl.BlockSpec((nb, 10), lambda i: (i, 0)),
        compiler_params=pltpu.CompilerParams(
            dimension_semantics=("parallel",),
            vmem_limit_bytes=32 * 1024 * 1024),
    )(x2d, *weights)
    return out[:N]


# ---------------------- one-time weight pre-transforms ----------------------

def prepare_weights(params, nb=8):
    """Transform the PyTorch-layout weights (once) into the band / selector /
    mask matrices the fused kernel consumes (built for a fixed batch tile nb)."""
    assert nb % 8 == 0, "nb must be a multiple of 8 (sublane alignment)"
    f32 = np.float32
    w1 = np.asarray(params["conv1_w"], f32)[:, 0]          # (8, 3, 3)      [co, kh, kw]
    b1 = np.asarray(params["conv1_b"], f32)                # (8,)
    w2 = np.asarray(params["conv2_w"], f32)                # (16, 8, 3, 3)  [co, ci, kh, kw]
    b2 = np.asarray(params["conv2_b"], f32)                # (16,)
    wf = np.asarray(params["fc1_w"], f32)                  # (10, 784)
    bf = np.asarray(params["fc1_b"], f32)                  # (10,)

    # conv1 band matrices (horizontal taps + column zero-pad), one per vertical
    # tap kh, concatenated along lanes; each 224 block padded to 256 lanes so
    # the runtime slices start at 128-aligned offsets.
    B1 = np.zeros((3, 28, 28, 8), f32)
    for kh in range(3):
        for kw in range(3):
            for j in range(28):
                wi = j + kw - 1
                if 0 <= wi < 28:
                    B1[kh, wi, j, :] = w1[:, kh, kw]
    B1 = B1.reshape(3, 28, 224)
    B1cat = np.zeros((28, 768), f32)
    for kh in range(3):
        B1cat[:, kh * 256: kh * 256 + 224] = B1[kh]

    # conv2 band matrices; input lanes use pool1's padded-column layout
    # (w+1)*8 + ci (column blocks 0 and 15 stay zero).
    B2 = np.zeros((3, 16, 8, 14, 16), f32)                 # [kh, c2, ci, j, co]
    for kh in range(3):
        for kw in range(3):
            for j in range(14):
                B2[kh, j + kw, :, j, :] = w2[:, :, kh, kw].T
    B2 = B2.reshape(3, 128, 224)
    B2cat = np.zeros((128, 768), f32)
    for kh in range(3):
        B2cat[:, kh * 256: kh * 256 + 224] = B2[kh]

    # Pool row-pair selectors: block-diagonal over the nb images of a grid
    # step, even|odd stacked along rows (one matmul + sublane-half max).
    # E2 emits p-major output rows (row = p*nb + img) for the batched fc1.
    E1 = np.zeros((2 * nb * 14, nb * 28), f32)
    for img in range(nb):
        for p in range(14):
            E1[img * 14 + p, img * 28 + 2 * p] = 1.0
            E1[nb * 14 + img * 14 + p, img * 28 + 2 * p + 1] = 1.0
    E2 = np.zeros((2 * nb * 7, nb * 14), f32)
    for img in range(nb):
        for p in range(7):
            E2[p * nb + img, img * 14 + 2 * p] = 1.0
            E2[nb * 7 + p * nb + img, img * 14 + 2 * p + 1] = 1.0

    # Pool lane-pair selectors: even|odd concatenated along lanes with the odd
    # half starting at lane 128 (aligned halves).  S1 also re-packs lanes into
    # conv2's padded-column layout.
    S1 = np.zeros((224, 256), f32)
    for q in range(14):
        for c in range(8):
            S1[(2 * q) * 8 + c, (q + 1) * 8 + c] = 1.0
            S1[(2 * q + 1) * 8 + c, 128 + (q + 1) * 8 + c] = 1.0
    S2 = np.zeros((224, 256), f32)
    for q in range(7):
        for c in range(16):
            S2[(2 * q) * 16 + c, q * 16 + c] = 1.0
            S2[(2 * q + 1) * 16 + c, 128 + q * 16 + c] = 1.0

    # Row masks for the vertical zero-pad: pltpu.roll wraps rows across image
    # blocks; these zero the wrapped first/last row of every block.
    r28 = np.arange(nb * 28)
    r14 = np.arange(nb * 14)
    mt1 = (r28 % 28 != 0).astype(f32).reshape(-1, 1)
    mb1 = (r28 % 28 != 27).astype(f32).reshape(-1, 1)
    mt2 = (r14 % 14 != 0).astype(f32).reshape(-1, 1)
    mb2 = (r14 % 14 != 13).astype(f32).reshape(-1, 1)

    # fc1 weight grouped per pooled row p with lane index q*16+co, matching
    # the PyTorch (C, H, W) flatten order co*49 + p*7 + q.
    Wf = wf.reshape(10, 16, 7, 7).transpose(2, 3, 1, 0).reshape(7, 112, 10)

    bf16 = jnp.bfloat16   # selectors are exact in bf16; bands/Wf lose mantissa bits
    prep = {
        "B1": jnp.asarray(B1cat, bf16),
        "E1": jnp.asarray(E1, bf16),
        "S1": jnp.asarray(S1, bf16),
        "B2": jnp.asarray(B2cat, bf16),
        "E2": jnp.asarray(E2, bf16),
        "S2": jnp.asarray(S2, bf16),
        "Wf": jnp.asarray(Wf, bf16),
        "b1t": jnp.asarray(np.tile(b1, 28).reshape(1, 224)),
        "b2t": jnp.asarray(np.tile(b2, 14).reshape(1, 224)),
        "bf": jnp.asarray(bf.reshape(1, 10)),
        "mt1": jnp.asarray(mt1), "mb1": jnp.asarray(mb1),
        "mt2": jnp.asarray(mt2), "mb2": jnp.asarray(mb2),
    }
    return prep


# --------------------------- pure-JAX reference ------------------------------

def cnn_reference(x_nchw, params):
    x = jnp.transpose(x_nchw, (0, 2, 3, 1))

    def conv_relu(x, w, b):
        wh = jnp.transpose(w, (2, 3, 1, 0))          # HWIO
        y = jax.lax.conv_general_dilated(
            x, wh, window_strides=(1, 1), padding=((1, 1), (1, 1)),
            dimension_numbers=("NHWC", "HWIO", "NHWC"))
        return jax.nn.relu(y + b)

    def pool(x):
        return jax.lax.reduce_window(x, -jnp.inf, jax.lax.max,
                                     (1, 2, 2, 1), (1, 2, 2, 1), "VALID")

    y = pool(conv_relu(x, params["conv1_w"], params["conv1_b"]))
    y = pool(conv_relu(y, params["conv2_w"], params["conv2_b"]))
    flat = jnp.transpose(y, (0, 3, 1, 2)).reshape(x.shape[0], -1)
    return flat @ params["fc1_w"].T + params["fc1_b"]


# ------------------------------ params / main --------------------------------

def init_params(key, in_channels=1, num_classes=10):
    ks = jax.random.split(key, 6)

    def u(k, shape, fan_in):
        bound = 1.0 / float(fan_in) ** 0.5
        return jax.random.uniform(k, shape, jnp.float32, -bound, bound)

    return {
        "conv1_w": u(ks[0], (8, in_channels, 3, 3), in_channels * 9),
        "conv1_b": u(ks[1], (8,), in_channels * 9),
        "conv2_w": u(ks[2], (16, 8, 3, 3), 8 * 9),
        "conv2_b": u(ks[3], (16,), 8 * 9),
        "fc1_w": u(ks[4], (num_classes, 16 * 7 * 7), 16 * 7 * 7),
        "fc1_b": u(ks[5], (num_classes,), 16 * 7 * 7),
    }


if __name__ == "__main__":
    key = jax.random.PRNGKey(0)
    k_x, k_p = jax.random.split(key)

    # fc1 expects 16*7*7 features => 28x28 (MNIST-like) input.
    N, nb = 16, 8                              # grid = 2 -> both v7x TCs get work
    x = jax.random.normal(k_x, (N, 1, 28, 28), dtype=jnp.float32)
    params = init_params(k_p, in_channels=1, num_classes=10)
    prep = prepare_weights(params, nb=nb)      # one-time weight transforms

    out = jax.block_until_ready(cnn_forward(x, prep, nb=nb))
    assert out.shape == (N, 10), out.shape

    ref = jax.block_until_ready(cnn_reference(x, params))
    # bf16 matmul operands (conv bands / fc weight) -> slightly looser tolerance.
    assert jnp.allclose(out, ref, rtol=3e-2, atol=3e-2), \
        f"max abs diff {jnp.max(jnp.abs(out - ref))}"

    print("KERNEL_OK")
</pallas_src>

<mosaic_0001>
module attributes {stable_mosaic.version = 11 : i64} {
  func.func @_cnn_fused_kernel(%arg0: i32, %arg1: memref<224x28xf32, #tpu.memory_space<vmem>>, %arg2: memref<28x768xbf16, #tpu.memory_space<vmem>>, %arg3: memref<224x1xf32, #tpu.memory_space<vmem>>, %arg4: memref<224x1xf32, #tpu.memory_space<vmem>>, %arg5: memref<1x224xf32, #tpu.memory_space<vmem>>, %arg6: memref<224x224xbf16, #tpu.memory_space<vmem>>, %arg7: memref<224x256xbf16, #tpu.memory_space<vmem>>, %arg8: memref<128x768xbf16, #tpu.memory_space<vmem>>, %arg9: memref<112x1xf32, #tpu.memory_space<vmem>>, %arg10: memref<112x1xf32, #tpu.memory_space<vmem>>, %arg11: memref<1x224xf32, #tpu.memory_space<vmem>>, %arg12: memref<112x112xbf16, #tpu.memory_space<vmem>>, %arg13: memref<224x256xbf16, #tpu.memory_space<vmem>>, %arg14: memref<7x112x10xbf16, #tpu.memory_space<vmem>>, %arg15: memref<1x10xf32, #tpu.memory_space<vmem>>, %arg16: memref<8x10xf32, #tpu.memory_space<vmem>>) attributes {dimension_semantics = [#tpu.dimension_semantics<parallel>], iteration_bounds = array<i64: 2>, scalar_prefetch = 0 : i64, scratch_operands = 0 : i64, tpu.core_type = #tpu.core_type<tc>, window_params = [{transform_indices = @transform_0, window_bounds = array<i64: 224, 28>}, {pipeline_mode = #tpu.pipeline_mode<synchronous>, transform_indices = @transform_1, window_bounds = array<i64: 28, 768>}, {pipeline_mode = #tpu.pipeline_mode<synchronous>, transform_indices = @transform_2, window_bounds = array<i64: 224, 1>}, {pipeline_mode = #tpu.pipeline_mode<synchronous>, transform_indices = @transform_3, window_bounds = array<i64: 224, 1>}, {pipeline_mode = #tpu.pipeline_mode<synchronous>, transform_indices = @transform_4, window_bounds = array<i64: 1, 224>}, {pipeline_mode = #tpu.pipeline_mode<synchronous>, transform_indices = @transform_5, window_bounds = array<i64: 224, 224>}, {pipeline_mode = #tpu.pipeline_mode<synchronous>, transform_indices = @transform_6, window_bounds = array<i64: 224, 256>}, {pipeline_mode = #tpu.pipeline_mode<synchronous>, transform_indices = @transform_7, window_bounds = array<i64: 128, 768>}, {pipeline_mode = #tpu.pipeline_mode<synchronous>, transform_indices = @transform_8, window_bounds = array<i64: 112, 1>}, {pipeline_mode = #tpu.pipeline_mode<synchronous>, transform_indices = @transform_9, window_bounds = array<i64: 112, 1>}, {pipeline_mode = #tpu.pipeline_mode<synchronous>, transform_indices = @transform_10, window_bounds = array<i64: 1, 224>}, {pipeline_mode = #tpu.pipeline_mode<synchronous>, transform_indices = @transform_11, window_bounds = array<i64: 112, 112>}, {pipeline_mode = #tpu.pipeline_mode<synchronous>, transform_indices = @transform_12, window_bounds = array<i64: 224, 256>}, {pipeline_mode = #tpu.pipeline_mode<synchronous>, transform_indices = @transform_13, window_bounds = array<i64: 7, 112, 10>}, {pipeline_mode = #tpu.pipeline_mode<synchronous>, transform_indices = @transform_14, window_bounds = array<i64: 1, 10>}, {transform_indices = @transform_15, window_bounds = array<i64: 8, 10>}]} {
    %c0 = arith.constant 0 : index
    %c0_0 = arith.constant 0 : index
    %0 = vector.load %arg1[%c0, %c0_0] : memref<224x28xf32, #tpu.memory_space<vmem>>, vector<224x28xf32>
    %1 = arith.truncf %0 : vector<224x28xf32> to vector<224x28xbf16>
    %c0_1 = arith.constant 0 : index
    %c0_2 = arith.constant 0 : index
    %2 = vector.load %arg2[%c0_1, %c0_2] : memref<28x768xbf16, #tpu.memory_space<vmem>>, vector<28x768xbf16>
    %cst = arith.constant dense<0.000000e+00> : vector<224x768xf32>
    %3 = tpu.matmul %1, %2, %cst {dimension_numbers = #tpu.dot_dimension_numbers<[1], [0], [0], [1], [0, 0, 1, 1], [], []>} : vector<224x28xbf16>, vector<28x768xbf16>, vector<224x768xf32> -> vector<224x768xf32>
    %4 = vector.extract_strided_slice %3 {offsets = [0, 0], sizes = [224, 224], strides = [1, 1]} : vector<224x768xf32> to vector<224x224xf32>
    %5 = vector.extract_strided_slice %3 {offsets = [0, 256], sizes = [224, 224], strides = [1, 1]} : vector<224x768xf32> to vector<224x224xf32>
    %6 = vector.extract_strided_slice %3 {offsets = [0, 512], sizes = [224, 224], strides = [1, 1]} : vector<224x768xf32> to vector<224x224xf32>
    %c1_i32 = arith.constant 1 : i32
    %7 = tpu.dynamic_rotate %4 by %c1_i32 dim 0 : vector<224x224xf32>, i32 -> vector<224x224xf32>
    %c0_3 = arith.constant 0 : index
    %c0_4 = arith.constant 0 : index
    %8 = vector.load %arg3[%c0_3, %c0_4] : memref<224x1xf32, #tpu.memory_space<vmem>>, vector<224x1xf32>
    %9 = vector.broadcast %8 : vector<224x1xf32> to vector<224x224xf32>
    %10 = arith.mulf %7, %9 : vector<224x224xf32>
    %c223_i32 = arith.constant 223 : i32
    %11 = tpu.dynamic_rotate %6 by %c223_i32 dim 0 : vector<224x224xf32>, i32 -> vector<224x224xf32>
    %c0_5 = arith.constant 0 : index
    %c0_6 = arith.constant 0 : index
    %12 = vector.load %arg4[%c0_5, %c0_6] : memref<224x1xf32, #tpu.memory_space<vmem>>, vector<224x1xf32>
    %13 = vector.broadcast %12 : vector<224x1xf32> to vector<224x224xf32>
    %14 = arith.mulf %11, %13 : vector<224x224xf32>
    %15 = arith.addf %5, %10 : vector<224x224xf32>
    %16 = arith.addf %15, %14 : vector<224x224xf32>
    %c0_7 = arith.constant 0 : index
    %c0_8 = arith.constant 0 : index
    %17 = vector.load %arg5[%c0_7, %c0_8] : memref<1x224xf32, #tpu.memory_space<vmem>>, vector<1x224xf32>
    %18 = vector.broadcast %17 : vector<1x224xf32> to vector<224x224xf32>
    %19 = arith.addf %16, %18 : vector<224x224xf32>
    %cst_9 = arith.constant 0.000000e+00 : f32
    %20 = vector.broadcast %cst_9 : f32 to vector<224x224xf32>
    %21 = arith.maximumf %19, %20 : vector<224x224xf32>
    %c0_10 = arith.constant 0 : index
    %c0_11 = arith.constant 0 : index
    %22 = vector.load %arg6[%c0_10, %c0_11] : memref<224x224xbf16, #tpu.memory_space<vmem>>, vector<224x224xbf16>
    %23 = arith.truncf %21 : vector<224x224xf32> to vector<224x224xbf16>
    %cst_12 = arith.constant dense<0.000000e+00> : vector<224x224xf32>
    %24 = tpu.matmul %22, %23, %cst_12 {dimension_numbers = #tpu.dot_dimension_numbers<[1], [0], [0], [1], [0, 0, 1, 1], [], []>} : vector<224x224xbf16>, vector<224x224xbf16>, vector<224x224xf32> -> vector<224x224xf32>
    %25 = vector.extract_strided_slice %24 {offsets = [0, 0], sizes = [112, 224], strides = [1, 1]} : vector<224x224xf32> to vector<112x224xf32>
    %26 = vector.extract_strided_slice %24 {offsets = [112, 0], sizes = [112, 224], strides = [1, 1]} : vector<224x224xf32> to vector<112x224xf32>
    %27 = arith.maximumf %25, %26 : vector<112x224xf32>
    %28 = arith.truncf %27 : vector<112x224xf32> to vector<112x224xbf16>
    %c0_13 = arith.constant 0 : index
    %c0_14 = arith.constant 0 : index
    %29 = vector.load %arg7[%c0_13, %c0_14] : memref<224x256xbf16, #tpu.memory_space<vmem>>, vector<224x256xbf16>
    %cst_15 = arith.constant dense<0.000000e+00> : vector<112x256xf32>
    %30 = tpu.matmul %28, %29, %cst_15 {dimension_numbers = #tpu.dot_dimension_numbers<[1], [0], [0], [1], [0, 0, 1, 1], [], []>} : vector<112x224xbf16>, vector<224x256xbf16>, vector<112x256xf32> -> vector<112x256xf32>
    %31 = vector.extract_strided_slice %30 {offsets = [0, 0], sizes = [112, 128], strides = [1, 1]} : vector<112x256xf32> to vector<112x128xf32>
    %32 = vector.extract_strided_slice %30 {offsets = [0, 128], sizes = [112, 128], strides = [1, 1]} : vector<112x256xf32> to vector<112x128xf32>
    %33 = arith.maximumf %31, %32 : vector<112x128xf32>
    %34 = arith.truncf %33 : vector<112x128xf32> to vector<112x128xbf16>
    %c0_16 = arith.constant 0 : index
    %c0_17 = arith.constant 0 : index
    %35 = vector.load %arg8[%c0_16, %c0_17] : memref<128x768xbf16, #tpu.memory_space<vmem>>, vector<128x768xbf16>
    %cst_18 = arith.constant dense<0.000000e+00> : vector<112x768xf32>
    %36 = tpu.matmul %34, %35, %cst_18 {dimension_numbers = #tpu.dot_dimension_numbers<[1], [0], [0], [1], [0, 0, 1, 1], [], []>} : vector<112x128xbf16>, vector<128x768xbf16>, vector<112x768xf32> -> vector<112x768xf32>
    %37 = vector.extract_strided_slice %36 {offsets = [0, 0], sizes = [112, 224], strides = [1, 1]} : vector<112x768xf32> to vector<112x224xf32>
    %38 = vector.extract_strided_slice %36 {offsets = [0, 256], sizes = [112, 224], strides = [1, 1]} : vector<112x768xf32> to vector<112x224xf32>
    %39 = vector.extract_strided_slice %36 {offsets = [0, 512], sizes = [112, 224], strides = [1, 1]} : vector<112x768xf32> to vector<112x224xf32>
    %c1_i32_19 = arith.constant 1 : i32
    %40 = tpu.dynamic_rotate %37 by %c1_i32_19 dim 0 : vector<112x224xf32>, i32 -> vector<112x224xf32>
    %c0_20 = arith.constant 0 : index
    %c0_21 = arith.constant 0 : index
    %41 = vector.load %arg9[%c0_20, %c0_21] : memref<112x1xf32, #tpu.memory_space<vmem>>, vector<112x1xf32>
    %42 = vector.broadcast %41 : vector<112x1xf32> to vector<112x224xf32>
    %43 = arith.mulf %40, %42 : vector<112x224xf32>
    %c111_i32 = arith.constant 111 : i32
    %44 = tpu.dynamic_rotate %39 by %c111_i32 dim 0 : vector<112x224xf32>, i32 -> vector<112x224xf32>
    %c0_22 = arith.constant 0 : index
    %c0_23 = arith.constant 0 : index
    %45 = vector.load %arg10[%c0_22, %c0_23] : memref<112x1xf32, #tpu.memory_space<vmem>>, vector<112x1xf32>
    %46 = vector.broadcast %45 : vector<112x1xf32> to vector<112x224xf32>
    %47 = arith.mulf %44, %46 : vector<112x224xf32>
    %48 = arith.addf %38, %43 : vector<112x224xf32>
    %49 = arith.addf %48, %47 : vector<112x224xf32>
    %c0_24 = arith.constant 0 : index
    %c0_25 = arith.constant 0 : index
    %50 = vector.load %arg11[%c0_24, %c0_25] : memref<1x224xf32, #tpu.memory_space<vmem>>, vector<1x224xf32>
    %51 = vector.broadcast %50 : vector<1x224xf32> to vector<112x224xf32>
    %52 = arith.addf %49, %51 : vector<112x224xf32>
    %cst_26 = arith.constant 0.000000e+00 : f32
    %53 = vector.broadcast %cst_26 : f32 to vector<112x224xf32>
    %54 = arith.maximumf %52, %53 : vector<112x224xf32>
    %c0_27 = arith.constant 0 : index
    %c0_28 = arith.constant 0 : index
    %55 = vector.load %arg12[%c0_27, %c0_28] : memref<112x112xbf16, #tpu.memory_space<vmem>>, vector<112x112xbf16>
    %56 = arith.truncf %54 : vector<112x224xf32> to vector<112x224xbf16>
    %cst_29 = arith.constant dense<0.000000e+00> : vector<112x224xf32>
    %57 = tpu.matmul %55, %56, %cst_29 {dimension_numbers = #tpu.dot_dimension_numbers<[1], [0], [0], [1], [0, 0, 1, 1], [], []>} : vector<112x112xbf16>, vector<112x224xbf16>, vector<112x224xf32> -> vector<112x224xf32>
    %58 = vector.extract_strided_slice %57 {offsets = [0, 0], sizes = [56, 224], strides = [1, 1]} : vector<112x224xf32> to vector<56x224xf32>
    %59 = vector.extract_strided_slice %57 {offsets = [56, 0], sizes = [56, 224], strides = [1, 1]} : vector<112x224xf32> to vector<56x224xf32>
    %60 = arith.maximumf %58, %59 : vector<56x224xf32>
    %61 = arith.truncf %60 : vector<56x224xf32> to vector<56x224xbf16>
    %c0_30 = arith.constant 0 : index
    %c0_31 = arith.constant 0 : index
    %62 = vector.load %arg13[%c0_30, %c0_31] : memref<224x256xbf16, #tpu.memory_space<vmem>>, vector<224x256xbf16>
    %cst_32 = arith.constant dense<0.000000e+00> : vector<56x256xf32>
    %63 = tpu.matmul %61, %62, %cst_32 {dimension_numbers = #tpu.dot_dimension_numbers<[1], [0], [0], [1], [0, 0, 1, 1], [], []>} : vector<56x224xbf16>, vector<224x256xbf16>, vector<56x256xf32> -> vector<56x256xf32>
    %64 = vector.extract_strided_slice %63 {offsets = [0, 0], sizes = [56, 112], strides = [1, 1]} : vector<56x256xf32> to vector<56x112xf32>
    %65 = vector.extract_strided_slice %63 {offsets = [0, 128], sizes = [56, 112], strides = [1, 1]} : vector<56x256xf32> to vector<56x112xf32>
    %66 = arith.maximumf %64, %65 : vector<56x112xf32>
    %67 = vector.extract_strided_slice %66 {offsets = [0, 0], sizes = [8, 112], strides = [1, 1]} : vector<56x112xf32> to vector<8x112xf32>
    %68 = arith.truncf %67 : vector<8x112xf32> to vector<8x112xbf16>
    %c0_33 = arith.constant 0 : index
    %c0_34 = arith.constant 0 : index
    %c0_35 = arith.constant 0 : index
    %69 = vector.load %arg14[%c0_33, %c0_34, %c0_35] : memref<7x112x10xbf16, #tpu.memory_space<vmem>>, vector<1x112x10xbf16>
    %70 = vector.shape_cast %69 : vector<1x112x10xbf16> to vector<112x10xbf16>
    %cst_36 = arith.constant dense<0.000000e+00> : vector<8x10xf32>
    %71 = tpu.matmul %68, %70, %cst_36 {dimension_numbers = #tpu.dot_dimension_numbers<[1], [0], [0], [1], [0, 0, 1, 1], [], []>} : vector<8x112xbf16>, vector<112x10xbf16>, vector<8x10xf32> -> vector<8x10xf32>
    %72 = vector.extract_strided_slice %66 {offsets = [8, 0], sizes = [8, 112], strides = [1, 1]} : vector<56x112xf32> to vector<8x112xf32>
    %73 = arith.truncf %72 : vector<8x112xf32> to vector<8x112xbf16>
    %c1 = arith.constant 1 : index
    %c0_37 = arith.constant 0 : index
    %c0_38 = arith.constant 0 : index
    %74 = vector.load %arg14[%c1, %c0_37, %c0_38] : memref<7x112x10xbf16, #tpu.memory_space<vmem>>, vector<1x112x10xbf16>
    %75 = vector.shape_cast %74 : vector<1x112x10xbf16> to vector<112x10xbf16>
    %cst_39 = arith.constant dense<0.000000e+00> : vector<8x10xf32>
    %76 = tpu.matmul %73, %75, %cst_39 {dimension_numbers = #tpu.dot_dimension_numbers<[1], [0], [0], [1], [0, 0, 1, 1], [], []>} : vector<8x112xbf16>, vector<112x10xbf16>, vector<8x10xf32> -> vector<8x10xf32>
    %77 = arith.addf %71, %76 : vector<8x10xf32>
    %78 = vector.extract_strided_slice %66 {offsets = [16, 0], sizes = [8, 112], strides = [1, 1]} : vector<56x112xf32> to vector<8x112xf32>
    %79 = arith.truncf %78 : vector<8x112xf32> to vector<8x112xbf16>
    %c2 = arith.constant 2 : index
    %c0_40 = arith.constant 0 : index
    %c0_41 = arith.constant 0 : index
    %80 = vector.load %arg14[%c2, %c0_40, %c0_41] : memref<7x112x10xbf16, #tpu.memory_space<vmem>>, vector<1x112x10xbf16>
    %81 = vector.shape_cast %80 : vector<1x112x10xbf16> to vector<112x10xbf16>
    %cst_42 = arith.constant dense<0.000000e+00> : vector<8x10xf32>
    %82 = tpu.matmul %79, %81, %cst_42 {dimension_numbers = #tpu.dot_dimension_numbers<[1], [0], [0], [1], [0, 0, 1, 1], [], []>} : vector<8x112xbf16>, vector<112x10xbf16>, vector<8x10xf32> -> vector<8x10xf32>
    %83 = arith.addf %77, %82 : vector<8x10xf32>
    %84 = vector.extract_strided_slice %66 {offsets = [24, 0], sizes = [8, 112], strides = [1, 1]} : vector<56x112xf32> to vector<8x112xf32>
    %85 = arith.truncf %84 : vector<8x112xf32> to vector<8x112xbf16>
    %c3 = arith.constant 3 : index
    %c0_43 = arith.constant 0 : index
    %c0_44 = arith.constant 0 : index
    %86 = vector.load %arg14[%c3, %c0_43, %c0_44] : memref<7x112x10xbf16, #tpu.memory_space<vmem>>, vector<1x112x10xbf16>
    %87 = vector.shape_cast %86 : vector<1x112x10xbf16> to vector<112x10xbf16>
    %cst_45 = arith.constant dense<0.000000e+00> : vector<8x10xf32>
    %88 = tpu.matmul %85, %87, %cst_45 {dimension_numbers = #tpu.dot_dimension_numbers<[1], [0], [0], [1], [0, 0, 1, 1], [], []>} : vector<8x112xbf16>, vector<112x10xbf16>, vector<8x10xf32> -> vector<8x10xf32>
    %89 = arith.addf %83, %88 : vector<8x10xf32>
    %90 = vector.extract_strided_slice %66 {offsets = [32, 0], sizes = [8, 112], strides = [1, 1]} : vector<56x112xf32> to vector<8x112xf32>
    %91 = arith.truncf %90 : vector<8x112xf32> to vector<8x112xbf16>
    %c4 = arith.constant 4 : index
    %c0_46 = arith.constant 0 : index
    %c0_47 = arith.constant 0 : index
    %92 = vector.load %arg14[%c4, %c0_46, %c0_47] : memref<7x112x10xbf16, #tpu.memory_space<vmem>>, vector<1x112x10xbf16>
    %93 = vector.shape_cast %92 : vector<1x112x10xbf16> to vector<112x10xbf16>
    %cst_48 = arith.constant dense<0.000000e+00> : vector<8x10xf32>
    %94 = tpu.matmul %91, %93, %cst_48 {dimension_numbers = #tpu.dot_dimension_numbers<[1], [0], [0], [1], [0, 0, 1, 1], [], []>} : vector<8x112xbf16>, vector<112x10xbf16>, vector<8x10xf32> -> vector<8x10xf32>
    %95 = arith.addf %89, %94 : vector<8x10xf32>
    %96 = vector.extract_strided_slice %66 {offsets = [40, 0], sizes = [8, 112], strides = [1, 1]} : vector<56x112xf32> to vector<8x112xf32>
    %97 = arith.truncf %96 : vector<8x112xf32> to vector<8x112xbf16>
    %c5 = arith.constant 5 : index
    %c0_49 = arith.constant 0 : index
    %c0_50 = arith.constant 0 : index
    %98 = vector.load %arg14[%c5, %c0_49, %c0_50] : memref<7x112x10xbf16, #tpu.memory_space<vmem>>, vector<1x112x10xbf16>
    %99 = vector.shape_cast %98 : vector<1x112x10xbf16> to vector<112x10xbf16>
    %cst_51 = arith.constant dense<0.000000e+00> : vector<8x10xf32>
    %100 = tpu.matmul %97, %99, %cst_51 {dimension_numbers = #tpu.dot_dimension_numbers<[1], [0], [0], [1], [0, 0, 1, 1], [], []>} : vector<8x112xbf16>, vector<112x10xbf16>, vector<8x10xf32> -> vector<8x10xf32>
    %101 = arith.addf %95, %100 : vector<8x10xf32>
    %102 = vector.extract_strided_slice %66 {offsets = [48, 0], sizes = [8, 112], strides = [1, 1]} : vector<56x112xf32> to vector<8x112xf32>
    %103 = arith.truncf %102 : vector<8x112xf32> to vector<8x112xbf16>
    %c6 = arith.constant 6 : index
    %c0_52 = arith.constant 0 : index
    %c0_53 = arith.constant 0 : index
    %104 = vector.load %arg14[%c6, %c0_52, %c0_53] : memref<7x112x10xbf16, #tpu.memory_space<vmem>>, vector<1x112x10xbf16>
    %105 = vector.shape_cast %104 : vector<1x112x10xbf16> to vector<112x10xbf16>
    %cst_54 = arith.constant dense<0.000000e+00> : vector<8x10xf32>
    %106 = tpu.matmul %103, %105, %cst_54 {dimension_numbers = #tpu.dot_dimension_numbers<[1], [0], [0], [1], [0, 0, 1, 1], [], []>} : vector<8x112xbf16>, vector<112x10xbf16>, vector<8x10xf32> -> vector<8x10xf32>
    %107 = arith.addf %101, %106 : vector<8x10xf32>
    %c0_55 = arith.constant 0 : index
    %c0_56 = arith.constant 0 : index
    %108 = vector.load %arg15[%c0_55, %c0_56] : memref<1x10xf32, #tpu.memory_space<vmem>>, vector<1x10xf32>
    %109 = vector.broadcast %108 : vector<1x10xf32> to vector<8x10xf32>
    %110 = arith.addf %107, %109 : vector<8x10xf32>
    %c0_57 = arith.constant 0 : index
    %c0_58 = arith.constant 0 : index
    %111 = vector.load %arg16[%c0_57, %c0_58] : memref<8x10xf32, #tpu.memory_space<vmem>>, vector<8x10xf32>
    tpu.vector_store %arg16[%c0_57, %c0_58], %110 {strides = array<i32>} : memref<8x10xf32, #tpu.memory_space<vmem>>, vector<8x10xf32>,
    return
  }
  func.func @transform_0(%arg0: i32) -> (i32, i32) {
    %c0_i32 = arith.constant 0 : i32
    %c0_i32_0 = arith.constant 0 : i32
    return %arg0, %c0_i32 : i32, i32
  }
  func.func @transform_1(%arg0: i32) -> (i32, i32) {
    %c0_i32 = arith.constant 0 : i32
    %c0_i32_0 = arith.constant 0 : i32
    %c0_i32_1 = arith.constant 0 : i32
    return %c0_i32, %c0_i32_0 : i32, i32
  }
  func.func @transform_2(%arg0: i32) -> (i32, i32) {
    %c0_i32 = arith.constant 0 : i32
    %c0_i32_0 = arith.constant 0 : i32
    %c0_i32_1 = arith.constant 0 : i32
    return %c0_i32, %c0_i32_0 : i32, i32
  }
  func.func @transform_3(%arg0: i32) -> (i32, i32) {
    %c0_i32 = arith.constant 0 : i32
    %c0_i32_0 = arith.constant 0 : i32
    %c0_i32_1 = arith.constant 0 : i32
    return %c0_i32, %c0_i32_0 : i32, i32
  }
  func.func @transform_4(%arg0: i32) -> (i32, i32) {
    %c0_i32 = arith.constant 0 : i32
    %c0_i32_0 = arith.constant 0 : i32
    %c0_i32_1 = arith.constant 0 : i32
    return %c0_i32, %c0_i32_0 : i32, i32
  }
  func.func @transform_5(%arg0: i32) -> (i32, i32) {
    %c0_i32 = arith.constant 0 : i32
    %c0_i32_0 = arith.constant 0 : i32
    %c0_i32_1 = arith.constant 0 : i32
    return %c0_i32, %c0_i32_0 : i32, i32
  }
  func.func @transform_6(%arg0: i32) -> (i32, i32) {
    %c0_i32 = arith.constant 0 : i32
    %c0_i32_0 = arith.constant 0 : i32
    %c0_i32_1 = arith.constant 0 : i32
    return %c0_i32, %c0_i32_0 : i32, i32
  }
  func.func @transform_7(%arg0: i32) -> (i32, i32) {
    %c0_i32 = arith.constant 0 : i32
    %c0_i32_0 = arith.constant 0 : i32
    %c0_i32_1 = arith.constant 0 : i32
    return %c0_i32, %c0_i32_0 : i32, i32
  }
  func.func @transform_8(%arg0: i32) -> (i32, i32) {
    %c0_i32 = arith.constant 0 : i32
    %c0_i32_0 = arith.constant 0 : i32
    %c0_i32_1 = arith.constant 0 : i32
    return %c0_i32, %c0_i32_0 : i32, i32
  }
  func.func @transform_9(%arg0: i32) -> (i32, i32) {
    %c0_i32 = arith.constant 0 : i32
    %c0_i32_0 = arith.constant 0 : i32
    %c0_i32_1 = arith.constant 0 : i32
    return %c0_i32, %c0_i32_0 : i32, i32
  }
  func.func @transform_10(%arg0: i32) -> (i32, i32) {
    %c0_i32 = arith.constant 0 : i32
    %c0_i32_0 = arith.constant 0 : i32
    %c0_i32_1 = arith.constant 0 : i32
    return %c0_i32, %c0_i32_0 : i32, i32
  }
  func.func @transform_11(%arg0: i32) -> (i32, i32) {
    %c0_i32 = arith.constant 0 : i32
    %c0_i32_0 = arith.constant 0 : i32
    %c0_i32_1 = arith.constant 0 : i32
    return %c0_i32, %c0_i32_0 : i32, i32
  }
  func.func @transform_12(%arg0: i32) -> (i32, i32) {
    %c0_i32 = arith.constant 0 : i32
    %c0_i32_0 = arith.constant 0 : i32
    %c0_i32_1 = arith.constant 0 : i32
    return %c0_i32, %c0_i32_0 : i32, i32
  }
  func.func @transform_13(%arg0: i32) -> (i32, i32, i32) {
    %c0_i32 = arith.constant 0 : i32
    %c0_i32_0 = arith.constant 0 : i32
    %c0_i32_1 = arith.constant 0 : i32
    %c0_i32_2 = arith.constant 0 : i32
    return %c0_i32, %c0_i32_0, %c0_i32_1 : i32, i32, i32
  }
  func.func @transform_14(%arg0: i32) -> (i32, i32) {
    %c0_i32 = arith.constant 0 : i32
    %c0_i32_0 = arith.constant 0 : i32
    %c0_i32_1 = arith.constant 0 : i32
    return %c0_i32, %c0_i32_0 : i32, i32
  }
  func.func @transform_15(%arg0: i32) -> (i32, i32) {
    %c0_i32 = arith.constant 0 : i32
    %c0_i32_0 = arith.constant 0 : i32
    return %arg0, %c0_i32 : i32, i32
  }
}

</mosaic_0001>

<bundles_post_ra>
// kernel: tpu_custom_call.1
= control target key start
LH: loop header
LB: loop body
LE: loop exit
PB: predicated region body
PF: predicated region fallthrough
CT: control target
= control target key end

     0   :  { %20 = vsyncpa [#allocation3], 0  ;;  %s8581_s0 = inlined_call_operand.vmem [shape: f32[448,28], index: 0, kind: input, shape index: {}]   ;;  %s8582_s1 = inlined_call_operand.vmem [shape: bf16[28,768], index: 1, kind: input, shape index: {}]   ;;  %s8583_s2 = inlined_call_operand.vmem [shape: f32[224,1], index: 2, kind: input, shape index: {}]   ;;  %s8584_s3 = inlined_call_operand.vmem [shape: f32[224,1], index: 3, kind: input, shape index: {}]   ;;  %s8585_s4 = inlined_call_operand.vmem [shape: f32[1,224], index: 4, kind: input, shape index: {}]   ;;  %s8586_s5 = inlined_call_operand.vmem [shape: bf16[224,224], index: 5, kind: input, shape index: {}]   ;;  %s8587_s6 = inlined_call_operand.vmem [shape: bf16[224,256], index: 6, kind: input, shape index: {}]   ;;  %s8588_s7 = inlined_call_operand.vmem [shape: bf16[128,768], index: 7, kind: input, shape index: {}]   ;;  %s8589_s8 = inlined_call_operand.vmem [shape: f32[112,1], index: 8, kind: input, shape index: {}]   ;;  %s8590_s9 = inlined_call_operand.vmem [shape: f32[112,1], index: 9, kind: input, shape index: {}]   ;;  %s8591_s10 = inlined_call_operand.vmem [shape: f32[1,224], index: 10, kind: input, shape index: {}]   ;;  %s8592_s11 = inlined_call_operand.vmem [shape: bf16[112,112], index: 11, kind: input, shape index: {}]   ;;  %s8593_s12 = inlined_call_operand.vmem [shape: bf16[224,256], index: 12, kind: input, shape index: {}]   ;;  %s8594_s13 = inlined_call_operand.vmem [shape: bf16[7,112,10], index: 13, kind: input, shape index: {}]   ;;  %s8595_s14 = inlined_call_operand.vmem [shape: f32[1,10], index: 14, kind: input, shape index: {}]   ;;  %s8596_s15 = inlined_call_operand.hbm [shape: f32[16,10], index: 15, kind: output, shape index: {}]  }
   0x1   :  { %22 = vsyncpa [#allocation3 + $0x1], 0  ;;  %s6194_s18 = smov 0   ;;  %s6196_s19 = smov 0  }
   0x2   :  { %s6198_s20 = smov 0   ;;  %s6200_s21 = smov 0  }
   0x3 LB: > { %8628 = sst [smem:[#allocation5_spill]] %s6096_s18  ;;  %s6215_s22 = sadd.s32 4294967295, %s6108_s21   ;;  %s6108_s21 = sphi %s6200_s21, %s8728_s21   ;;  %s6104_s20 = sphi %s6198_s20, %s8730_s20   ;;  %s6100_s19 = sphi %s6196_s19, %s8732_s19   ;;  %s6096_s18 = sphi %s6194_s18, %s8731_s18  }
   0x4   : > { %8629 = sst [smem:[#allocation6_spill]] %s6104_s20  ;;  %s5169_s23 = sadd.s32 4294967294, %s6108_s21  }
   0x5   : > { %8630 = sst [smem:[#allocation7_spill]] %s6108_s21  ;;  %s6219_s24 = sadd.s32 1, %s6108_s21  }
   0x6   : > { %8631 = sst [smem:[#allocation8_spill]] %s6219_s24  ;;  %s355_s25 = sadd.s32 1, %s6104_s20 }
   0x7   : > { %s352_s26 = ssub.s32 %s6108_s21, %s6219_s24  ;;  %p365_p0 = scmp.ne.s32.totalorder %s6104_s20, %s6100_s19 }
   0x8   : > { %p353_p1 = scmp.eq.s32.totalorder %s352_s26, 0  ;;  %p366_p2 = scmp.eq.s32.totalorder %s6215_s22, 1 }
   0x9   : > { %p371_p3 = scmp.ne.s32.totalorder %s6100_s19, %s6096_s18  ;;  %p372_p4 = scmp.eq.s32.totalorder %s5169_s23, 1 }
   0xa   : > { %s6230_s27 = scalar_select %p353_p1, %s6104_s20, %s355_s25  }
   0xb   : > { %p6232_p5 = por %p366_p2, %p365_p0  ;;  %p6236_p6 = por %p372_p4, %p371_p3 }
   0xc   : > { %8632 = sst [smem:[#allocation9_spill]] %s6230_s27  ;;  %p5172_p7 = scmp.ge.s32.totalorder %s6108_s21, 1 }
   0xd   : > { %s8634_s29 = scalar_select %p6236_p6, 1, 0 }
   0xe   : > { %p441_p8 = scmp.lt.s32.totalorder %s6108_s21, 3 }
   0xf   : > { %8635 = sst [smem:[#allocation10_spill]] %s8634_s29 }
  0x10   : > { %p442_p9 = pnand %p5172_p7, %p441_p8 }
  0x12   : > { %445 = sbr.rel (%p442_p9) target bundleno = 2102 (0x836), region = 80 }
  0x19   : > { %v5774_v0 = vld [vmem:[%s8582_s1 + $0x4] ss:$24 sps:$4 sm:$0xff]   ;;  %vm647_vm0 = vcmask 1045504   ;;  %v5776_v1 = vld [vmem:[%s8582_s1] ss:$24 sps:$4 sm:$0xff]   ;;  %v8603_v2 = vmov 0  }
  0x1a   : > { %698 = vmatprep.mubr.bf16.mxu0 %v8603_v2  ;;  %s489_s25 = smul.u32 28, %s6215_s22  ;;  %871 = vmatprep.mubr.bf16.mxu1 %v8603_v2  ;;  %v5777_v3 = vld [vmem:[%s8582_s1 + $0x34] ss:$24 sps:$4 sm:$0x3f]   ;;  %v5782_v7 = vld [vmem:[%s8582_s1 + $0x8] ss:$24 sps:$4 sm:$0xff]  }
  0x1b   : > { %666 = vmatprep.subr.bf16.mxu0 %v5774_v0  ;;  %v5779_v4 = vld [vmem:[%s8582_s1 + $0x30] ss:$24 sps:$4 sm:$0x3f]   ;;  %5773 = vset.pattern.permute.xlu1 %v8603_v2  ;;  %v5780_v5 = vld [vmem:[%s8582_s1 + $0xc] ss:$24 sps:$4 sm:$0xff]   ;;  %vm604_vm1 = vcmask 228352  }
  0x1c   : > { %667 = vmatpush1.bf16.msra.mxu0 %v5776_v1  ;;  %p490_p10 = scmp.lt.s32.totalorder %s489_s25, 55  ;;  %5772 = vset.pattern.permute.xlu0 %v8603_v2  ;;  %v649_v6 = vsel %vm647_vm0, %v5779_v4, 0  ;;  %v5783_v8 = vld [vmem:[%s8582_s1 + $0x3c] ss:$24 sps:$4 sm:$0x3f]   ;;  %v1637_v10 = vld [vmem:[%s8584_s3] sm:$0xff] }
  0x1d   : > { %5187 = vmatprep.subr.msk.bf16.mxu0 %vm647_vm0, %v5777_v3  ;;  %839 = vmatprep.subr.bf16.mxu1 %v5780_v5  ;;  %v5785_v9 = vld [vmem:[%s8582_s1 + $0x38] ss:$24 sps:$4 sm:$0x3f]   ;;  %v5788_v11 = vld [vmem:[%s8582_s1 + $0x14] ss:$24 sps:$4 sm:$0xff]   ;;  %v1300_v12 = vld [vmem:[%s8583_s2] sm:$0xff] }
  0x1e   : > { %s8734_s25 = smov (!%p490_p10, %s489_s25), 55  ;;  %840 = vmatpush1.bf16.msra.mxu1 %v5782_v7  ;;  %v655_v13 = vsel %vm647_vm0, %v5785_v9, 0  ;;  %1667 = vperm.xlu1 %5773, %v1637_v10   ;;  %v1638_v16 = vld [vmem:[%s8584_s3 + $0x8] sm:$0xff]  ;;  %v1303_v22 = vld [vmem:[%s8583_s2 + $0x18] sm:$0xff]  ;;  %v1302_v24 = vld [vmem:[%s8583_s2 + $0x10] sm:$0xff]  ;;  %vm2279_vm3 = vcmask 785408  }
  0x1f   : > { %s5174_s29 = sshll.u32 %s8734_s25, 3  ;;  %5202 = vmatprep.subr.msk.bf16.mxu1 %vm647_vm0, %v5783_v8  ;;  %1330 = vperm.xlu0 %5772, %v1300_v12   ;;  %v5786_v18 = vld [vmem:[%s8582_s1 + $0x10] ss:$24 sps:$4 sm:$0xff]   ;;  %v1640_v25 = vld [vmem:[%s8584_s3 + $0x18] sm:$0xff]  ;;  %v1304_v34 = vld [vmem:[%s8583_s2 + $0x20] sm:$0xff]  ;;  %vm3970_vm5 = vcmask 916480  }
  0x20   : > { %669 = vmatpush1.bf16.msra.mxu0 %v649_v6  ;;  %s6286_s30 = scalar_lea.vmem %s8581_s0, %s5174_s29  ;;  %v1301_v19 = vld [vmem:[%s8583_s2 + $0x8] sm:$0xff]  ;;  %v5789_v26 = vld [vmem:[%s8582_s1 + $0x44] ss:$24 sps:$4 sm:$0x3f]   ;;  %v1639_v28 = vld [vmem:[%s8584_s3 + $0x10] sm:$0xff]  ;;  %vm6112_vm6 = vmmov 0  }
  0x21   : > { %v496_v14 = vld [vmem:[%s6286_s30] sm:$0xff]  ;;  %v497_v15 = vld [vmem:[%s6286_s30 + $0x8] sm:$0xff]  ;;  %1012 = vmatprep.subr.bf16.mxu0 %v5788_v11  ;;  %v498_v20 = vld [vmem:[%s6286_s30 + $0x10] sm:$0xff]  ;;  %s486_s27 = sand.u32 1, %s6100_s19   ;;  %vm5094_vm7 = vcmask 80896   ;;  %s6113_s17 = smov [#allocation2]  }
  0x22   : > { %v6294_v17 = vpack.c.bf16 %v497_v15, %v496_v14  ;;  %842 = vmatpush1.bf16.msra.mxu1 %v655_v13  ;;  %1672 = vperm.xlu1 %5773, %v1638_v16   ;;  %v499_v21 = vld [vmem:[%s6286_s30 + $0x18] sm:$0xff]  ;;  %v500_v29 = vld [vmem:[%s6286_s30 + $0x20] sm:$0xff]  ;;  %v501_v30 = vld [vmem:[%s6286_s30 + $0x28] sm:$0xff]  ;;  %s5173_s23 = sshll.u32 %s486_s27, 3 }
  0x23   : > { %1335 = vperm.xlu0 %5772, %v1301_v19   ;;  %v6313_v23 = vpack.c.bf16 %v499_v21, %v498_v20  ;;  %v5791_v27 = vld [vmem:[%s8582_s1 + $0x40] ss:$24 sps:$4 sm:$0x3f]   ;;  %v1305_v31 = vld [vmem:[%s8583_s2 + $0x28] sm:$0xff]  ;;  %v6343_v33 = vpack.c.bf16 %v501_v30, %v500_v29  ;;  %v502_v37 = vld [vmem:[%s6286_s30 + $0x30] sm:$0xff]  ;;  %s488_s24 = scalar_lea.vmem [#allocation2], %s5173_s23 }
  0x24   : > { %5188 = vmatmul.mubr.msk.bf16.vlgmr.msra.gmra.mrb[0].mxu0 %vm604_vm1, %v6294_v17  ;;  %v661_v32 = vsel %vm647_vm0, %v5791_v27, 0  ;;  %v1642_v35 = vld [vmem:[%s8584_s3 + $0x28] sm:$0xff]  ;;  %v1641_v36 = vld [vmem:[%s8584_s3 + $0x20] sm:$0xff]  ;;  %v503_v38 = vld [vmem:[%s6286_s30 + $0x38] sm:$0xff]  ;;  %s5110_s18 = sshll.u32 %s488_s24, 4  ;;  %s6050_s23 = sshll.u32 %s6113_s17, 4  ;;  %s8541_s18 = int_to_ptr.vmem [resolvable:$true] %s5110_s18  ;;  %s6051_s23 = int_to_ptr.vmem [resolvable:$false] %s6050_s23 }
  0x25   : > { %5203 = vmatmul.mubr.msk.bf16.vlgmr.msra.gmra.mrb[0].mxu1 %vm604_vm1, %v6294_v17  ;;  %708 = vmatprep.mubr.bf16.mxu0 %v8603_v2  ;;  %v1307_v39 = vld [vmem:[%s8583_s2 + $0x38] sm:$0xff]  ;;  %v6365_v40 = vpack.c.bf16 %v503_v38, %v502_v37  ;;  %v1306_v41 = vld [vmem:[%s8583_s2 + $0x30] sm:$0xff]  ;;  %v504_v44 = vld [vmem:[%s6286_s30 + $0x40] sm:$0xff]  ;;  %s6046_s16 = scalar_lea.vmem %s8541_s18, 128  ;;  %s6052_s20 = scalar_lea.vmem %s6051_s23, 256 }
  0x26   : > { %1013 = vmatpush1.bf16.msra.mxu0 %v5786_v18  ;;  %881 = vmatprep.mubr.bf16.mxu1 %v8603_v2  ;;  %v1644_v42 = vld [vmem:[%s8584_s3 + $0x38] sm:$0xff]  ;;  %v1643_v43 = vld [vmem:[%s8584_s3 + $0x30] sm:$0xff]  ;;  %v505_v45 = vld [vmem:[%s6286_s30 + $0x48] sm:$0xff]  ;;  %p6047_p11 = scmp.ne.s32.totalorder %s8541_s18, %s6046_s16  ;;  %p6053_p0 = scmp.lt.s32.totalorder %s8541_s18, %s6051_s23 }
  0x27   : > { %1345 = vperm.xlu1 %5773, %v1303_v22   ;;  %1340 = vperm.xlu0 %5772, %v1302_v24   ;;  %v1309_v46 = vld [vmem:[%s8583_s2 + $0x48] sm:$0xff]  ;;  %v1308_v47 = vld [vmem:[%s8583_s2 + $0x40] sm:$0xff]  ;;  %v6393_v49 = vpack.c.bf16 %v505_v45, %v504_v44  ;;  %v506_v50 = vld [vmem:[%s6286_s30 + $0x50] sm:$0xff]  ;;  %p6054_p1 = scmp.lt.s32.totalorder %s6052_s20, %s6046_s16 }
  0x28   : > { %5217 = vmatprep.subr.msk.bf16.mxu0 %vm647_vm0, %v5789_v26  ;;  %v1646_v48 = vld [vmem:[%s8584_s3 + $0x48] sm:$0xff]  ;;  %v1645_v51 = vld [vmem:[%s8584_s3 + $0x40] sm:$0xff]  ;;  %v507_v52 = vld [vmem:[%s6286_s30 + $0x58] sm:$0xff]  ;;  %p6048_p12 = pnand %p6047_p11, %p6232_p5 }
  0x29   : > { %v1311_v53 = vld [vmem:[%s8583_s2 + $0x58] sm:$0xff]  ;;  %v1310_v54 = vld [vmem:[%s8583_s2 + $0x50] sm:$0xff]  ;;  %v6415_v56 = vpack.c.bf16 %v507_v52, %v506_v50  ;;  %v508_v57 = vld [vmem:[%s6286_s30 + $0x60] sm:$0xff]  ;;  %p6055_p2 = por %p6054_p1, %p6053_p0 }
  0x2a   : > { %1015 = vmatpush1.bf16.msra.mxu0 %v661_v32  ;;  %v1648_v55 = vld [vmem:[%s8584_s3 + $0x58] sm:$0xff]  ;;  %v1647_v58 = vld [vmem:[%s8584_s3 + $0x50] sm:$0xff]  ;;  %v509_v59 = vld [vmem:[%s6286_s30 + $0x68] sm:$0xff]  ;;  %p6049_p13 = pneg %p6048_p12 }
  0x2b   : > { %1682 = vperm.xlu1 %5773, %v1640_v25   ;;  %1677 = vperm.xlu0 %5772, %v1639_v28   ;;  %v1313_v60 = vld [vmem:[%s8583_s2 + $0x68] sm:$0xff]  ;;  %v1312_v61 = vld [vmem:[%s8583_s2 + $0x60] sm:$0xff]  ;;  %v6437_v63 = vpack.c.bf16 %v509_v59, %v508_v57  ;;  %v510_v0 = vld [vmem:[%s6286_s30 + $0x70] sm:$0xff] }
  0x2c   : > { %5189 = vmatmul.mubr.msk.bf16.gmra.mrb[4].mxu0 %vm604_vm1, %v6313_v23  ;;  %v1650_v62 = vld [vmem:[%s8584_s3 + $0x68] sm:$0xff]  ;;  %v1649_v1 = vld [vmem:[%s8584_s3 + $0x60] sm:$0xff]  ;;  %v511_v3 = vld [vmem:[%s6286_s30 + $0x78] sm:$0xff]  ;;  %p6056_p3 = pnand %p6055_p2, %p6049_p13 }
  0x2d   : > { %5204 = vmatmul.mubr.msk.bf16.gmra.mrb[4].mxu1 %vm604_vm1, %v6313_v23  ;;  %718 = vmatprep.mubr.bf16.mxu0 %v8603_v2  ;;  %v1315_v4 = vld [vmem:[%s8583_s2 + $0x78] sm:$0xff]  ;;  %v1314_v5 = vld [vmem:[%s8583_s2 + $0x70] sm:$0xff]  ;;  %v6459_v7 = vpack.c.bf16 %v511_v3, %v510_v0  ;;  %v512_v8 = vld [vmem:[%s6286_s30 + $0x80] sm:$0xff] }
  0x2e   : > { %891 = vmatprep.mubr.bf16.mxu1 %v8603_v2  ;;  %v1652_v6 = vld [vmem:[%s8584_s3 + $0x78] sm:$0xff]  ;;  %v1651_v9 = vld [vmem:[%s8584_s3 + $0x70] sm:$0xff]  ;;  %v513_v10 = vld [vmem:[%s6286_s30 + $0x88] sm:$0xff] }
  0x2f   : > { %1355 = vperm.xlu1 %5773, %v1305_v31   ;;  %1350 = vperm.xlu0 %5772, %v1304_v34   ;;  %v1317_v11 = vld [vmem:[%s8583_s2 + $0x88] sm:$0xff]  ;;  %v1316_v12 = vld [vmem:[%s8583_s2 + $0x80] sm:$0xff]  ;;  %v6481_v14 = vpack.c.bf16 %v513_v10, %v512_v8  ;;  %v514_v15 = vld [vmem:[%s6286_s30 + $0x90] sm:$0xff] }
  0x30   : > { %v1654_v13 = vld [vmem:[%s8584_s3 + $0x88] sm:$0xff]  ;;  %v1653_v16 = vld [vmem:[%s8584_s3 + $0x80] sm:$0xff]  ;;  %v515_v18 = vld [vmem:[%s6286_s30 + $0x98] sm:$0xff] }
  0x31   : > { %v1319_v19 = vld [vmem:[%s8583_s2 + $0x98] sm:$0xff]  ;;  %v1318_v20 = vld [vmem:[%s8583_s2 + $0x90] sm:$0xff]  ;;  %v6503_v22 = vpack.c.bf16 %v515_v18, %v514_v15  ;;  %v516_v25 = vld [vmem:[%s6286_s30 + $0xa0] sm:$0xff] }
  0x32   : > { %v1656_v21 = vld [vmem:[%s8584_s3 + $0x98] sm:$0xff]  ;;  %v1655_v24 = vld [vmem:[%s8584_s3 + $0x90] sm:$0xff]  ;;  %v517_v26 = vld [vmem:[%s6286_s30 + $0xa8] sm:$0xff] }
  0x33   : > { %1692 = vperm.xlu1 %5773, %v1642_v35   ;;  %1687 = vperm.xlu0 %5772, %v1641_v36   ;;  %v1321_v27 = vld [vmem:[%s8583_s2 + $0xa8] sm:$0xff]  ;;  %v1320_v28 = vld [vmem:[%s8583_s2 + $0xa0] sm:$0xff]  ;;  %v6525_v30 = vpack.c.bf16 %v517_v26, %v516_v25  ;;  %v518_v32 = vld [vmem:[%s6286_s30 + $0xb0] sm:$0xff] }
  0x34   : > { %5190 = vmatmul.mubr.msk.bf16.gmra.mrb[8].mxu0 %vm604_vm1, %v6343_v33  ;;  %v1658_v29 = vld [vmem:[%s8584_s3 + $0xa8] sm:$0xff]  ;;  %v1657_v31 = vld [vmem:[%s8584_s3 + $0xa0] sm:$0xff]  ;;  %v519_v34 = vld [vmem:[%s6286_s30 + $0xb8] sm:$0xff] }
  0x35   : > { %5205 = vmatmul.mubr.msk.bf16.gmra.mrb[8].mxu1 %vm604_vm1, %v6343_v33  ;;  %728 = vmatprep.mubr.bf16.mxu0 %v8603_v2  ;;  %v1323_v35 = vld [vmem:[%s8583_s2 + $0xb8] sm:$0xff]  ;;  %v1322_v36 = vld [vmem:[%s8583_s2 + $0xb0] sm:$0xff]  ;;  %v6544_v37 = vpack.c.bf16 %v519_v34, %v518_v32  ;;  %v1324_v44 = vld [vmem:[%s8583_s2 + $0xc0] sm:$0xff] }
  0x36   : > { %901 = vmatprep.mubr.bf16.mxu1 %v8603_v2  ;;  %v1660_v38 = vld [vmem:[%s8584_s3 + $0xb8] sm:$0xff]  ;;  %v1662_v45 = vld [vmem:[%s8584_s3 + $0xc8] sm:$0xff]  ;;  %v1326_v52 = vld [vmem:[%s8583_s2 + $0xd0] sm:$0xff] }
  0x37   : > { %1365 = vperm.xlu1 %5773, %v1307_v39   ;;  %1360 = vperm.xlu0 %5772, %v1306_v41   ;;  %v1659_v39 = vld [vmem:[%s8584_s3 + $0xb0] sm:$0xff]  ;;  %v520_v41 = vld [vmem:[%s6286_s30 + $0xc0] sm:$0xff]  ;;  %v523_v50 = vld [vmem:[%s6286_s30 + $0xd8] sm:$0xff] }
  0x38   : > { %v3504_v57 = vld [vmem:[%s8589_s8 + $0x8] sm:$0xff]  ;;  %v3674_v0 = vld [vmem:[%s8590_s9 + $0x18] sm:$0xff]  ;;  %v3507_v3 = vld [vmem:[%s8589_s8 + $0x20] sm:$0xff] }
  0x39   : > { %v3672_v59 = vld [vmem:[%s8590_s9 + $0x8] sm:$0xff]  ;;  %v3681_v25 = vld [vmem:[%s8590_s9 + $0x50] sm:$0xff] }
  0x3a   : > { %v3512_v10 = vld [vmem:[%s8589_s8 + $0x48] sm:$0xff] }
  0x3b   : > { %1702 = vperm.xlu1 %5773, %v1644_v42   ;;  %1697 = vperm.xlu0 %5772, %v1643_v43   ;;  %v521_v42 = vld [vmem:[%s6286_s30 + $0xc8] sm:$0xff] }
  0x3c   : > { %5191 = vmatmul.mubr.msk.bf16.gmra.mrb[12].mxu0 %vm604_vm1, %v6365_v40  ;;  %v1325_v43 = vld [vmem:[%s8583_s2 + $0xc8] sm:$0xff] }
  0x3d   : > { %5206 = vmatmul.mubr.msk.bf16.gmra.mrb[12].mxu1 %vm604_vm1, %v6365_v40  ;;  %738 = vmatprep.mubr.bf16.mxu0 %v8603_v2  ;;  %v3516_v26 = vld [vmem:[%s8589_s8 + $0x68] sm:$0xff] }
  0x3e   : > { %911 = vmatprep.mubr.bf16.mxu1 %v8603_v2 }
  0x3f   : > { %1375 = vperm.xlu1 %5773, %v1309_v46   ;;  %1370 = vperm.xlu0 %5772, %v1308_v47   ;;  %v6569_v46 = vpack.c.bf16 %v521_v42, %v520_v41  ;;  %v1661_v47 = vld [vmem:[%s8584_s3 + $0xc0] sm:$0xff] }
  0x43   : > { %1712 = vperm.xlu1 %5773, %v1646_v48   ;;  %1707 = vperm.xlu0 %5772, %v1645_v51   ;;  %v522_v48 = vld [vmem:[%s6286_s30 + $0xd0] sm:$0xff]  ;;  %v1327_v51 = vld [vmem:[%s8583_s2 + $0xd8] sm:$0xff]  ;;  %s5545_s30 = sshll.u32 %s6215_s22, 7  ;;  %s5097_s22 = scalar_lea.sflag [#allocation3], %s486_s27 }
  0x44   : > { %5192 = vmatmul.mubr.msk.bf16.gmra.mrb[16].mxu0 %vm604_vm1, %v6393_v49  ;;  %s8539_s25 = scalar_lea.hbm %s8596_s15, %s5545_s30 }
  0x45   : > { %5207 = vmatmul.mubr.msk.bf16.gmra.mrb[16].mxu1 %vm604_vm1, %v6393_v49  ;;  %748 = vmatprep.mubr.bf16.mxu0 %v8603_v2 }
  0x46   : > { %921 = vmatprep.mubr.bf16.mxu1 %v8603_v2 }
  0x47   : > { %1385 = vperm.xlu1 %5773, %v1311_v53   ;;  %1380 = vperm.xlu0 %5772, %v1310_v54   ;;  %v1664_v53 = vld [vmem:[%s8584_s3 + $0xd8] sm:$0xff]  ;;  %v6591_v54 = vpack.c.bf16 %v523_v50, %v522_v48 }
  0x4b   : > { %1722 = vperm.xlu1 %5773, %v1648_v55   ;;  %1717 = vperm.xlu0 %5772, %v1647_v58   ;;  %v1663_v55 = vld [vmem:[%s8584_s3 + $0xd0] sm:$0xff]  ;;  %v3503_v58 = vld [vmem:[%s8589_s8] sm:$0xff] }
  0x4c   : > { %5193 = vmatmul.mubr.msk.bf16.gmra.mrb[20].mxu0 %vm604_vm1, %v6415_v56 }
  0x4d   : > { %5208 = vmatmul.mubr.msk.bf16.gmra.mrb[20].mxu1 %vm604_vm1, %v6415_v56  ;;  %758 = vmatprep.mubr.bf16.mxu0 %v8603_v2 }
  0x4e   : > { %931 = vmatprep.mubr.bf16.mxu1 %v8603_v2 }
  0x4f   : > { %1395 = vperm.xlu1 %5773, %v1313_v60   ;;  %1390 = vperm.xlu0 %5772, %v1312_v61   ;;  %v3671_v60 = vld [vmem:[%s8590_s9] sm:$0xff]  ;;  %v3506_v61 = vld [vmem:[%s8589_s8 + $0x18] sm:$0xff] }
  0x53   : > { %1732 = vperm.xlu1 %5773, %v1650_v62   ;;  %1727 = vperm.xlu0 %5772, %v1649_v1   ;;  %v3505_v62 = vld [vmem:[%s8589_s8 + $0x10] sm:$0xff]  ;;  %v3508_v1 = vld [vmem:[%s8589_s8 + $0x28] sm:$0xff] }
  0x54   : > { %5194 = vmatmul.mubr.msk.bf16.gmra.mrb[24].mxu0 %vm604_vm1, %v6437_v63 }
  0x55   : > { %5209 = vmatmul.mubr.msk.bf16.gmra.mrb[24].mxu1 %vm604_vm1, %v6437_v63  ;;  %768 = vmatprep.mubr.bf16.mxu0 %v8603_v2 }
  0x56   : > { %941 = vmatprep.mubr.bf16.mxu1 %v8603_v2 }
  0x57   : > { %1405 = vperm.xlu1 %5773, %v1315_v4   ;;  %1400 = vperm.xlu0 %5772, %v1314_v5   ;;  %v3675_v4 = vld [vmem:[%s8590_s9 + $0x20] sm:$0xff]  ;;  %v3510_v5 = vld [vmem:[%s8589_s8 + $0x38] sm:$0xff] }
  0x5b   : > { %1742 = vperm.xlu1 %5773, %v1652_v6   ;;  %1737 = vperm.xlu0 %5772, %v1651_v9   ;;  %v3509_v6 = vld [vmem:[%s8589_s8 + $0x30] sm:$0xff] }
  0x5c   : > { %5195 = vmatmul.mubr.msk.bf16.gmra.mrb[28].mxu0 %vm604_vm1, %v6459_v7  ;;  %v3677_v9 = vld [vmem:[%s8590_s9 + $0x30] sm:$0xff] }
  0x5d   : > { %5210 = vmatmul.mubr.msk.bf16.gmra.mrb[28].mxu1 %vm604_vm1, %v6459_v7  ;;  %778 = vmatprep.mubr.bf16.mxu0 %v8603_v2 }
  0x5e   : > { %951 = vmatprep.mubr.bf16.mxu1 %v8603_v2 }
  0x5f   : > { %1415 = vperm.xlu1 %5773, %v1317_v11   ;;  %1410 = vperm.xlu0 %5772, %v1316_v12  }
  0x63   : > { %1752 = vperm.xlu1 %5773, %v1654_v13   ;;  %1747 = vperm.xlu0 %5772, %v1653_v16   ;;  %v3680_v13 = vld [vmem:[%s8590_s9 + $0x48] sm:$0xff]  ;;  %v3679_v16 = vld [vmem:[%s8590_s9 + $0x40] sm:$0xff] }
  0x64   : > { %5196 = vmatmul.mubr.msk.bf16.gmra.mrb[32].mxu0 %vm604_vm1, %v6481_v14 }
  0x65   : > { %5211 = vmatmul.mubr.msk.bf16.gmra.mrb[32].mxu1 %vm604_vm1, %v6481_v14  ;;  %788 = vmatprep.mubr.bf16.mxu0 %v8603_v2 }
  0x66   : > { %961 = vmatprep.mubr.bf16.mxu1 %v8603_v2 }
  0x67   : > { %1425 = vperm.xlu1 %5773, %v1319_v19   ;;  %1420 = vperm.xlu0 %5772, %v1318_v20   ;;  %v3514_v19 = vld [vmem:[%s8589_s8 + $0x58] sm:$0xff] }
  0x68   : > { %v3682_v20 = vld [vmem:[%s8590_s9 + $0x58] sm:$0xff] }
  0x6b   : > { %1762 = vperm.xlu1 %5773, %v1656_v21   ;;  %1757 = vperm.xlu0 %5772, %v1655_v24  }
  0x6c   : > { %5197 = vmatmul.mubr.msk.bf16.gmra.mrb[36].mxu0 %vm604_vm1, %v6503_v22 }
  0x6d   : > { %5212 = vmatmul.mubr.msk.bf16.gmra.mrb[36].mxu1 %vm604_vm1, %v6503_v22  ;;  %798 = vmatprep.mubr.bf16.mxu0 %v8603_v2 }
  0x6e   : > { %971 = vmatprep.mubr.bf16.mxu1 %v8603_v2 }
  0x6f   : > { %1435 = vperm.xlu1 %5773, %v1321_v27   ;;  %1430 = vperm.xlu0 %5772, %v1320_v28   ;;  %v3515_v28 = vld [vmem:[%s8589_s8 + $0x60] sm:$0xff] }
  0x73   : > { %1772 = vperm.xlu1 %5773, %v1658_v29   ;;  %1767 = vperm.xlu0 %5772, %v1657_v31   ;;  %v3684_v29 = vld [vmem:[%s8590_s9 + $0x68] sm:$0xff]  ;;  %v3683_v31 = vld [vmem:[%s8590_s9 + $0x60] sm:$0xff] }
  0x74   : > { %5198 = vmatmul.mubr.msk.bf16.gmra.mrb[40].mxu0 %vm604_vm1, %v6525_v30 }
  0x75   : > { %5213 = vmatmul.mubr.msk.bf16.gmra.mrb[40].mxu1 %vm604_vm1, %v6525_v30  ;;  %808 = vmatprep.mubr.bf16.mxu0 %v8603_v2 }
  0x76   : > { %981 = vmatprep.mubr.bf16.mxu1 %v8603_v2 }
  0x77   : > { %1445 = vperm.xlu1 %5773, %v1323_v35   ;;  %1440 = vperm.xlu0 %5772, %v1322_v36  }
  0x7b   : > { %1782 = vperm.xlu1 %5773, %v1660_v38   ;;  %1777 = vperm.xlu0 %5772, %v1659_v39  }
  0x7c   : > { %5199 = vmatmul.mubr.msk.bf16.gmra.mrb[44].mxu0 %vm604_vm1, %v6544_v37 }
  0x7d   : > { %5214 = vmatmul.mubr.msk.bf16.gmra.mrb[44].mxu1 %vm604_vm1, %v6544_v37  ;;  %818 = vmatprep.mubr.bf16.mxu0 %v8603_v2 }
  0x7e   : > { %991 = vmatprep.mubr.bf16.mxu1 %v8603_v2 }
  0x7f   : > { %1455 = vperm.xlu1 %5773, %v1325_v43   ;;  %1450 = vperm.xlu0 %5772, %v1324_v44  }
  0x83   : > { %1792 = vperm.xlu1 %5773, %v1662_v45   ;;  %1787 = vperm.xlu0 %5772, %v1661_v47  }
  0x84   : > { %5200 = vmatmul.mubr.msk.bf16.gmra.mrb[48].mxu0 %vm604_vm1, %v6569_v46 }
  0x85   : > { %5215 = vmatmul.mubr.msk.bf16.gmra.mrb[48].mxu1 %vm604_vm1, %v6569_v46  ;;  %828 = vmatprep.mubr.bf16.mxu0 %v8603_v2 }
  0x86   : > { %1001 = vmatprep.mubr.bf16.mxu1 %v8603_v2 }
  0x87   : > { %1465 = vperm.xlu1 %5773, %v1327_v51   ;;  %1460 = vperm.xlu0 %5772, %v1326_v52  }
  0x8b   : > { %1802 = vperm.xlu1 %5773, %v1664_v53   ;;  %1797 = vperm.xlu0 %5772, %v1663_v55  }
  0x8c   : > { %5201 = vmatmul.mubr.msk.bf16.gmra.mrb[52].mxu0 %vm604_vm1, %v6591_v54 }
  0x8d   : > { %5216 = vmatmul.mubr.msk.bf16.gmra.mrb[52].mxu1 %vm604_vm1, %v6591_v54  ;;  %1044 = vmatprep.mubr.bf16.mxu0 %v8603_v2 }
  0x8f   : > { %3524 = vperm.xlu1 %5773, %v3504_v57   ;;  %3519 = vperm.xlu0 %5772, %v3503_v58  }
  0x93   : > { %3692 = vperm.xlu1 %5773, %v3672_v59   ;;  %3687 = vperm.xlu0 %5772, %v3671_v60  }
  0x94   : > { %5218 = vmatmul.mubr.msk.bf16.vlgmr.msra.gmra.mrb[56].mxu0 %vm604_vm1, %v6294_v17  ;;  %v3673_v17 = vld [vmem:[%s8590_s9 + $0x10] sm:$0xff] }
  0x95   : > { %1054 = vmatprep.mubr.bf16.mxu0 %v8603_v2 }
  0x97   : > { %3534 = vperm.xlu1 %5773, %v3506_v61   ;;  %3529 = vperm.xlu0 %5772, %v3505_v62  }
  0x9b   : > { %3702 = vperm.xlu1 %5773, %v3674_v0   ;;  %3697 = vperm.xlu0 %5772, %v3673_v17  }
  0x9c   : > { %5219 = vmatmul.mubr.msk.bf16.gmra.mrb[60].mxu0 %vm604_vm1, %v6313_v23  ;;  %v3676_v23 = vld [vmem:[%s8590_s9 + $0x28] sm:$0xff] }
  0x9d   : > { %1064 = vmatprep.mubr.bf16.mxu0 %v8603_v2  ;;  %v6666_v11 = vpop.permute.xlu1 %1667 }
  0x9e   : > { %v6652_v8 = vpop.permute.xlu0 %1330 }
  0x9f   : > { %3544 = vperm.xlu1 %5773, %v3508_v1   ;;  %3539 = vperm.xlu0 %5772, %v3507_v3  }
  0xa1   : > { %v6678_v15 = vpop.permute.xlu1 %1672 }
  0xa2   : > { %v6668_v12 = vpop.permute.xlu0 %1335 }
  0xa3   : > { %3712 = vperm.xlu1 %5773, %v3676_v23   ;;  %3707 = vperm.xlu0 %5772, %v3675_v4  }
  0xa4   : > { %5220 = vmatmul.mubr.msk.bf16.gmra.mrb[64].mxu0 %vm604_vm1, %v6343_v33  ;;  %v3678_v33 = vld [vmem:[%s8590_s9 + $0x38] sm:$0xff] }
  0xa5   : > { %1074 = vmatprep.mubr.bf16.mxu0 %v8603_v2 }
  0xa6   : > { %v6684_v18 = vpop.permute.xlu0 %1340  ;;  %v6695_v21 = vpop.permute.xlu1 %1345 }
  0xa7   : > { %3554 = vperm.xlu1 %5773, %v3510_v5   ;;  %3549 = vperm.xlu0 %5772, %v3509_v6  }
  0xaa   : > { %v6697_v24 = vpop.permute.xlu0 %1677  ;;  %v6708_v27 = vpop.permute.xlu1 %1682 }
  0xab   : > { %3722 = vperm.xlu1 %5773, %v3678_v33   ;;  %3717 = vperm.xlu0 %5772, %v3677_v9  }
  0xac   : > { %5221 = vmatmul.mubr.msk.bf16.gmra.mrb[68].mxu0 %vm604_vm1, %v6365_v40  ;;  %v3511_v40 = vld [vmem:[%s8589_s8 + $0x40] sm:$0xff] }
  0xad   : > { %1084 = vmatprep.mubr.bf16.mxu0 %v8603_v2 }
  0xae   : > { %v6724_v32 = vpop.permute.xlu1 %1355 }
  0xaf   : > { %3564 = vperm.xlu1 %5773, %v3512_v10   ;;  %3559 = vperm.xlu0 %5772, %v3511_v40  }
  0xb2   : > { %v6730_v35 = vpop.permute.xlu1 %1692 }
  0xb3   : > { %3732 = vperm.xlu1 %5773, %v3680_v13   ;;  %3727 = vperm.xlu0 %5772, %v3679_v16  }
  0xb4   : > { %5222 = vmatmul.mubr.msk.bf16.gmra.mrb[72].mxu0 %vm604_vm1, %v6393_v49  ;;  %v3513_v49 = vld [vmem:[%s8589_s8 + $0x50] sm:$0xff] }
  0xb5   : > { %1094 = vmatprep.mubr.bf16.mxu0 %v8603_v2 }
  0xb6   : > { %v6735_v36 = vpop.permute.xlu1 %1365 }
  0xb7   : > { %3574 = vperm.xlu1 %5773, %v3514_v19   ;;  %3569 = vperm.xlu0 %5772, %v3513_v49  }
  0xba   : > { %v6742_v39 = vpop.permute.xlu1 %1702 }
  0xbb   : > { %3742 = vperm.xlu1 %5773, %v3682_v20   ;;  %3737 = vperm.xlu0 %5772, %v3681_v25  }
  0xbc   : > { %5223 = vmatmul.mubr.msk.bf16.gmra.mrb[76].mxu0 %vm604_vm1, %v6415_v56  ;;  %v6713_v56 = vpop.permute.xlu0 %1350 }
  0xbd   : > { %1104 = vmatprep.mubr.bf16.mxu0 %v8603_v2 }
  0xbf   : > { %3584 = vperm.xlu1 %5773, %v3516_v26   ;;  %3579 = vperm.xlu0 %5772, %v3515_v28  }
  0xc0   : > { %v6726_v34 = vpop.permute.xlu0 %1687 }
  0xc3   : > { %3752 = vperm.xlu1 %5773, %v3684_v29   ;;  %3747 = vperm.xlu0 %5772, %v3683_v31  }
  0xc4   : > { %5224 = vmatmul.mubr.msk.bf16.gmra.mrb[80].mxu0 %vm604_vm1, %v6437_v63  ;;  %v6733_v63 = vpop.permute.xlu0 %1360 }
  0xc5   : > { %1114 = vmatprep.mubr.bf16.mxu0 %v8603_v2 }
  0xc8   : > { %v6737_v38 = vpop.permute.xlu0 %1697 }
  0xcc   : > { %5225 = vmatmul.mubr.msk.bf16.gmra.mrb[84].mxu0 %vm604_vm1, %v6459_v7  ;;  %v6744_v41 = vpop.permute.xlu0 %1370  ;;  %v6749_v7 = vpop.permute.xlu1 %1375 }
  0xcd   : > { %1124 = vmatprep.mubr.bf16.mxu0 %v8603_v2 }
  0xd0   : > { %v6751_v42 = vpop.permute.xlu0 %1707  ;;  %v6755_v43 = vpop.permute.xlu1 %1712 }
  0xd4   : > { %5226 = vmatmul.mubr.msk.bf16.gmra.mrb[88].mxu0 %vm604_vm1, %v6481_v14  ;;  %v6758_v14 = vpop.permute.xlu0 %1380  ;;  %v6760_v44 = vpop.permute.xlu1 %1385 }
  0xd5   : > { %1134 = vmatprep.mubr.bf16.mxu0 %v8603_v2 }
  0xd8   : > { %v6762_v45 = vpop.permute.xlu0 %1717 }
  0xd9   : > { %8636 = vst [vmem:[#allocation11_spill] sm:$0xff] %v6762_v45 }
  0xdc   : > { %5227 = vmatmul.mubr.msk.bf16.gmra.mrb[92].mxu0 %vm604_vm1, %v6503_v22  ;;  %v6767_v22 = vpop.permute.xlu1 %1722  ;;  %v6769_v47 = vpop.permute.xlu0 %1390 }
  0xdd   : > { %1144 = vmatprep.mubr.bf16.mxu0 %v8603_v2  ;;  %8637 = vst [vmem:[#allocation12_spill] sm:$0xff] %v6767_v22 }
  0xe0   : > { %v6776_v50 = vpop.permute.xlu1 %1395  ;;  %v6780_v52 = vpop.permute.xlu0 %1727 }
  0xe1   : > { %8638 = vst [vmem:[#allocation13_spill] sm:$0xff] %v6780_v52 }
  0xe4   : > { %5228 = vmatmul.mubr.msk.bf16.gmra.mrb[96].mxu0 %vm604_vm1, %v6525_v30  ;;  %v1241_v30 = vlaneseq  ;;  %v6802_v23 = vpop.permute.xlu1 %1732  ;;  %v6807_v6 = vpop.permute.xlu0 %1400 }
  0xe5   : > { %1154 = vmatprep.mubr.bf16.mxu0 %v8603_v2  ;;  %8639 = vst [vmem:[#allocation14_spill] sm:$0xff] %v6802_v23 }
  0xe6   : > { %v6774_v48 = vshrl.u32 %v1241_v30, 7 }
  0xe8   : > { %vm1243_vm2 = vcmp.lt.s32.totalorder %v6774_v48, 1  ;;  %vm1580_vm4 = vcmp.lt.s32.totalorder %v6774_v48, 7 }
  0xec   : > { %5229 = vmatmul.mubr.msk.bf16.gmra.mrb[100].mxu0 %vm604_vm1, %v6544_v37 }
  0xed   : > { %1164 = vmatprep.mubr.bf16.mxu0 %v8603_v2 }
  0xf4   : > { %5230 = vmatmul.mubr.msk.bf16.gmra.mrb[104].mxu0 %vm604_vm1, %v6569_v46 }
  0xf5   : > { %1174 = vmatprep.mubr.bf16.mxu0 %v8603_v2 }
  0xf7   : > { %v6778_v51 = vpop.f32.mrb[0].mxu0 }
  0xf8   : > { %v6782_v37 = vpop.f32.mrb[1].mxu0  ;;  %v6784_v53 = vpop.f32.mrb[0].mxu1  ;;  %v8606_v46 = vrot.slane %v6778_v51, 7 }
  0xf9   : > { %v704_v55 = vpop.f32.mrb[2].mxu0  ;;  %v6786_v57 = vpop.f32.mrb[1].mxu1  ;;  %v8605_v61 = vrot.slane %v6782_v37, 7 }
  0xfa   : > { %v1187_v58 = vrot.slane %v704_v55, 7  ;;  %v706_v59 = vpop.f32.mrb[3].mxu0  ;;  %v877_v60 = vpop.f32.mrb[2].mxu1 }
  0xfb   : > { %v1188_v62 = vrot.slane %v706_v59, 7  ;;  %v879_v0 = vpop.f32.mrb[3].mxu1 }
  0xfc   : > { %5231 = vmatmul.mubr.msk.bf16.gmra.mrb[108].mxu0 %vm604_vm1, %v6591_v54  ;;  %v1296_v17 = vsel %vm1243_vm2, %v8606_v46, %v1187_v58 }
  0xfd   : > { %v1470_v1 = vmul.f32 %v6668_v12, %v1296_v17  ;;  %v1297_v3 = vsel %vm1243_vm2, %v8605_v61, %v1188_v62 }
  0xfe   : > { %v1471_v4 = vmul.f32 %v6668_v12, %v1297_v3 }
  0xff   : > { %v6805_v5 = vadd.f32 %v1470_v1, %v877_v60  ;;  %v710_v54 = vpop.f32.mrb[4].mxu0 }
 0x100   : > { %v1189_v33 = vrot.slane %v710_v54, 7  ;;  %v6809_v9 = vadd.f32 %v1471_v4, %v879_v0  ;;  %v712_v10 = vpop.f32.mrb[5].mxu0  ;;  %v883_v40 = vpop.f32.mrb[4].mxu1 }
 0x101   : > { %v1190_v13 = vrot.slane %v712_v10, 7  ;;  %v714_v16 = vpop.f32.mrb[6].mxu0  ;;  %v885_v19 = vpop.f32.mrb[5].mxu1 }
 0x102   : > { %v1191_v49 = vrot.slane %v714_v16, 7  ;;  %v716_v20 = vpop.f32.mrb[7].mxu0  ;;  %v1294_v25 = vsel %vm1243_vm2, %v1187_v58, %v1189_v33  ;;  %v887_v26 = vpop.f32.mrb[6].mxu1 }
 0x103   : > { %v1192_v12 = vrot.slane %v716_v20, 7  ;;  %v1472_v28 = vmul.f32 %v6684_v18, %v1294_v25  ;;  %v1295_v29 = vsel %vm1243_vm2, %v1188_v62, %v1190_v13  ;;  %v889_v31 = vpop.f32.mrb[7].mxu1  ;;  %v6824_v0 = vpop.permute.xlu1 %1405 }
 0x104   : > { %v1473_v30 = vmul.f32 %v6684_v18, %v1295_v29  ;;  %v1292_v55 = vsel %vm1243_vm2, %v1189_v33, %v1191_v49  ;;  %v6829_v62 = vpop.permute.xlu0 %1737 }
 0x105   : > { %v6819_v59 = vadd.f32 %v1472_v28, %v883_v40  ;;  %v1474_v60 = vmul.f32 %v6695_v21, %v1292_v55  ;;  %v1293_v58 = vsel %vm1243_vm2, %v1190_v13, %v1192_v12  ;;  %8640 = vst [vmem:[#allocation15_spill] sm:$0xff] %v6829_v62 }
 0x106   : > { %v6826_v17 = vadd.f32 %v1473_v30, %v885_v19  ;;  %v1475_v1 = vmul.f32 %v6695_v21, %v1293_v58 }
 0x107   : > { %v6831_v3 = vadd.f32 %v1474_v60, %v887_v26  ;;  %v720_v18 = vpop.f32.mrb[8].mxu0 }
 0x108   : > { %v1193_v4 = vrot.slane %v720_v18, 7  ;;  %v6833_v54 = vadd.f32 %v1475_v1, %v889_v31  ;;  %v722_v33 = vpop.f32.mrb[9].mxu0  ;;  %v893_v10 = vpop.f32.mrb[8].mxu1 }
 0x109   : > { %v1194_v40 = vrot.slane %v722_v33, 7  ;;  %v724_v16 = vpop.f32.mrb[10].mxu0  ;;  %v895_v20 = vpop.f32.mrb[9].mxu1 }
 0x10a   : > { %v1195_v13 = vrot.slane %v724_v16, 7  ;;  %v726_v25 = vpop.f32.mrb[11].mxu0  ;;  %v1290_v19 = vsel %vm1243_vm2, %v1191_v49, %v1193_v4  ;;  %v897_v28 = vpop.f32.mrb[10].mxu1 }
 0x10b   : > { %v1196_v21 = vrot.slane %v726_v25, 7  ;;  %v1476_v29 = vmul.f32 %v6713_v56, %v1290_v19  ;;  %v1291_v26 = vsel %vm1243_vm2, %v1192_v12, %v1194_v40  ;;  %v899_v30 = vpop.f32.mrb[11].mxu1  ;;  %v6848_v1 = vpop.permute.xlu1 %1742 }
 0x10c   : > { %v1477_v31 = vmul.f32 %v6713_v56, %v1291_v26  ;;  %v1288_v55 = vsel %vm1243_vm2, %v1193_v4, %v1195_v13  ;;  %8641 = vst [vmem:[#allocation16_spill] sm:$0xff] %v6848_v1  ;;  %v6853_v12 = vpop.permute.xlu0 %1410 }
 0x10d   : > { %v6843_v60 = vadd.f32 %v1476_v29, %v893_v10  ;;  %v1478_v58 = vmul.f32 %v6724_v32, %v1288_v55  ;;  %v1289_v49 = vsel %vm1243_vm2, %v1194_v40, %v1196_v21 }
 0x10e   : > { %v6850_v18 = vadd.f32 %v1477_v31, %v895_v20  ;;  %v1479_v33 = vmul.f32 %v6724_v32, %v1289_v49 }
 0x10f   : > { %v6855_v16 = vadd.f32 %v1478_v58, %v897_v28  ;;  %v730_v56 = vpop.f32.mrb[12].mxu0 }
 0x110   : > { %v1197_v25 = vrot.slane %v730_v56, 7  ;;  %v6857_v4 = vadd.f32 %v1479_v33, %v899_v30  ;;  %v732_v10 = vpop.f32.mrb[13].mxu0  ;;  %v903_v19 = vpop.f32.mrb[12].mxu1 }
 0x111   : > { %v1198_v29 = vrot.slane %v732_v10, 7  ;;  %v734_v26 = vpop.f32.mrb[14].mxu0  ;;  %v905_v55 = vpop.f32.mrb[13].mxu1 }
 0x112   : > { %v1199_v40 = vrot.slane %v734_v26, 7  ;;  %v736_v2 = vpop.f32.mrb[15].mxu0  ;;  %v1286_v20 = vsel %vm1243_vm2, %v1195_v13, %v1197_v25  ;;  %v907_v31 = vpop.f32.mrb[14].mxu1 }
 0x113   : > { %v1200_v32 = vrot.slane %v736_v2, 7  ;;  %v1480_v49 = vmul.f32 %v6733_v63, %v1286_v20  ;;  %v1287_v28 = vsel %vm1243_vm2, %v1196_v21, %v1198_v29  ;;  %v909_v58 = vpop.f32.mrb[15].mxu1  ;;  %v6872_v26 = vpop.permute.xlu1 %1415 }
 0x114   : > { %v1481_v30 = vmul.f32 %v6733_v63, %v1287_v28  ;;  %v1284_v33 = vsel %vm1243_vm2, %v1197_v25, %v1199_v40  ;;  %v6877_v21 = vpop.permute.xlu0 %1747 }
 0x115   : > { %v6867_v56 = vadd.f32 %v1480_v49, %v903_v19  ;;  %v1482_v10 = vmul.f32 %v6735_v36, %v1284_v33  ;;  %v1285_v13 = vsel %vm1243_vm2, %v1198_v29, %v1200_v32  ;;  %8642 = vst [vmem:[#allocation17_spill] sm:$0xff] %v6877_v21 }
 0x116   : > { %v6874_v2 = vadd.f32 %v1481_v30, %v905_v55  ;;  %v1483_v20 = vmul.f32 %v6735_v36, %v1285_v13 }
 0x117   : > { %v6879_v61 = vadd.f32 %v1482_v10, %v907_v31  ;;  %v740_v63 = vpop.f32.mrb[16].mxu0 }
 0x118   : > { %v1201_v28 = vrot.slane %v740_v63, 7  ;;  %v6881_v25 = vadd.f32 %v1483_v20, %v909_v58  ;;  %v742_v19 = vpop.f32.mrb[17].mxu0  ;;  %v913_v49 = vpop.f32.mrb[16].mxu1 }
 0x119   : > { %v1202_v33 = vrot.slane %v742_v19, 7  ;;  %v744_v46 = vpop.f32.mrb[18].mxu0  ;;  %v915_v1 = vpop.f32.mrb[17].mxu1 }
 0x11a   : > { %v1203_v29 = vrot.slane %v744_v46, 7  ;;  %v746_v62 = vpop.f32.mrb[19].mxu0  ;;  %v1282_v55 = vsel %vm1243_vm2, %v1199_v40, %v1201_v28  ;;  %v917_v30 = vpop.f32.mrb[18].mxu1 }
 0x11b   : > { %v1204_v36 = vrot.slane %v746_v62, 7  ;;  %v1484_v13 = vmul.f32 %v6744_v41, %v1282_v55  ;;  %v1283_v31 = vsel %vm1243_vm2, %v1200_v32, %v1202_v33  ;;  %v919_v10 = vpop.f32.mrb[19].mxu1  ;;  %v6896_v19 = vpop.permute.xlu1 %1752 }
 0x11c   : > { %v1485_v58 = vmul.f32 %v6744_v41, %v1283_v31  ;;  %v1280_v20 = vsel %vm1243_vm2, %v1201_v28, %v1203_v29  ;;  %8643 = vst [vmem:[#allocation18_spill] sm:$0xff] %v6896_v19  ;;  %v6901_v32 = vpop.permute.xlu0 %1420 }
 0x11d   : > { %v6891_v63 = vadd.f32 %v1484_v13, %v913_v49  ;;  %v1486_v46 = vmul.f32 %v6749_v7, %v1280_v20  ;;  %v1281_v40 = vsel %vm1243_vm2, %v1202_v33, %v1204_v36 }
 0x11e   : > { %v6898_v62 = vadd.f32 %v1485_v58, %v915_v1  ;;  %v1487_v55 = vmul.f32 %v6749_v7, %v1281_v40 }
 0x11f   : > { %v6903_v21 = vadd.f32 %v1486_v46, %v917_v30  ;;  %v750_v41 = vpop.f32.mrb[20].mxu0 }
 0x120   : > { %v1205_v31 = vrot.slane %v750_v41, 7  ;;  %v6905_v28 = vadd.f32 %v1487_v55, %v919_v10  ;;  %v752_v49 = vpop.f32.mrb[21].mxu0  ;;  %v923_v13 = vpop.f32.mrb[20].mxu1 }
 0x121   : > { %v1206_v20 = vrot.slane %v752_v49, 7  ;;  %v754_v23 = vpop.f32.mrb[22].mxu0  ;;  %v925_v52 = vpop.f32.mrb[21].mxu1 }
 0x122   : > { %8644 = vst [vmem:[#allocation19_spill] sm:$0xff] %v6905_v28  ;;  %v1207_v33 = vrot.slane %v754_v23, 7  ;;  %v756_v22 = vpop.f32.mrb[23].mxu0  ;;  %v1278_v1 = vsel %vm1243_vm2, %v1203_v29, %v1205_v31  ;;  %v927_v58 = vpop.f32.mrb[22].mxu1 }
 0x123   : > { %v1208_v7 = vrot.slane %v756_v22, 7  ;;  %v1488_v40 = vmul.f32 %v6758_v14, %v1278_v1  ;;  %v1279_v30 = vsel %vm1243_vm2, %v1204_v36, %v1206_v20  ;;  %v929_v46 = vpop.f32.mrb[23].mxu1  ;;  %v6920_v49 = vpop.permute.xlu1 %1425 }
 0x124   : > { %v1489_v10 = vmul.f32 %v6758_v14, %v1279_v30  ;;  %v1276_v55 = vsel %vm1243_vm2, %v1205_v31, %v1207_v33  ;;  %v6925_v36 = vpop.permute.xlu0 %1757 }
 0x125   : > { %v6915_v41 = vadd.f32 %v1488_v40, %v923_v13  ;;  %v1490_v23 = vmul.f32 %v6760_v44, %v1276_v55  ;;  %v1277_v29 = vsel %vm1243_vm2, %v1206_v20, %v1208_v7  ;;  %8646 = vst [vmem:[#allocation21_spill] sm:$0xff] %v6925_v36 }
 0x126   : > { %v6922_v22 = vadd.f32 %v1489_v10, %v925_v52  ;;  %v1491_v1 = vmul.f32 %v6760_v44, %v1277_v29 }
 0x127   : > { %8645 = vst [vmem:[#allocation20_spill] sm:$0xff] %v6915_v41  ;;  %v6927_v19 = vadd.f32 %v1490_v23, %v927_v58  ;;  %v760_v14 = vpop.f32.mrb[24].mxu0 }
 0x128   : > { %v1209_v30 = vrot.slane %v760_v14, 7  ;;  %v6929_v31 = vadd.f32 %v1491_v1, %v929_v46  ;;  %v762_v13 = vpop.f32.mrb[25].mxu0  ;;  %v933_v40 = vpop.f32.mrb[24].mxu1 }
 0x129   : > { %8647 = vst [vmem:[#allocation22_spill] sm:$0xff] %v6927_v19  ;;  %v1210_v55 = vrot.slane %v762_v13, 7  ;;  %v764_v41 = vpop.f32.mrb[26].mxu0  ;;  %v935_v28 = vpop.f32.mrb[25].mxu1 }
 0x12a   : > { %8648 = vst [vmem:[#allocation23_spill] sm:$0xff] %v6929_v31  ;;  %v1211_v20 = vrot.slane %v764_v41, 7  ;;  %v766_v45 = vpop.f32.mrb[27].mxu0  ;;  %v1274_v52 = vsel %vm1243_vm2, %v1207_v33, %v1209_v30  ;;  %v937_v10 = vpop.f32.mrb[26].mxu1 }
 0x12b   : > { %v1212_v44 = vrot.slane %v766_v45, 7  ;;  %v1492_v29 = vmul.f32 %v6769_v47, %v1274_v52  ;;  %v1275_v58 = vsel %vm1243_vm2, %v1208_v7, %v1210_v55  ;;  %v939_v23 = vpop.f32.mrb[27].mxu1  ;;  %v6944_v13 = vpop.permute.xlu1 %1762 }
 0x12c   : > { %v1493_v46 = vmul.f32 %v6769_v47, %v1275_v58  ;;  %v1272_v1 = vsel %vm1243_vm2, %v1209_v30, %v1211_v20  ;;  %8650 = vst [vmem:[#allocation25_spill] sm:$0xff] %v6944_v13  ;;  %v6949_v7 = vpop.permute.xlu0 %1430 }
 0x12d   : > { %v6939_v14 = vadd.f32 %v1492_v29, %v933_v40  ;;  %v1494_v41 = vmul.f32 %v6776_v50, %v1272_v1  ;;  %v1273_v33 = vsel %vm1243_vm2, %v1210_v55, %v1212_v44 }
 0x12e   : > { %v6946_v45 = vadd.f32 %v1493_v46, %v935_v28  ;;  %v1495_v52 = vmul.f32 %v6776_v50, %v1273_v33 }
 0x12f   : > { %8649 = vst [vmem:[#allocation24_spill] sm:$0xff] %v6939_v14  ;;  %v6951_v36 = vadd.f32 %v1494_v41, %v937_v10  ;;  %v770_v47 = vpop.f32.mrb[28].mxu0 }
 0x130   : > { %v1213_v58 = vrot.slane %v770_v47, 7  ;;  %v6953_v30 = vadd.f32 %v1495_v52, %v939_v23  ;;  %v772_v40 = vpop.f32.mrb[29].mxu0  ;;  %v943_v29 = vpop.f32.mrb[28].mxu1 }
 0x131   : > { %8651 = vst [vmem:[#allocation26_spill] sm:$0xff] %v6951_v36  ;;  %v1214_v1 = vrot.slane %v772_v40, 7  ;;  %v774_v14 = vpop.f32.mrb[30].mxu0  ;;  %v945_v31 = vpop.f32.mrb[29].mxu1 }
 0x132   : > { %8652 = vst [vmem:[#allocation27_spill] sm:$0xff] %v6953_v30  ;;  %v1215_v55 = vrot.slane %v774_v14, 7  ;;  %v776_v19 = vpop.f32.mrb[31].mxu0  ;;  %v1270_v28 = vsel %vm1243_vm2, %v1211_v20, %v1213_v58  ;;  %v947_v46 = vpop.f32.mrb[30].mxu1 }
 0x133   : > { %v1216_v50 = vrot.slane %v776_v19, 7  ;;  %v1496_v33 = vmul.f32 %v6807_v6, %v1270_v28  ;;  %v1271_v10 = vsel %vm1243_vm2, %v1212_v44, %v1214_v1  ;;  %v949_v41 = vpop.f32.mrb[31].mxu1  ;;  %v6968_v40 = vpop.permute.xlu1 %1435 }
 0x134   : > { %v1497_v23 = vmul.f32 %v6807_v6, %v1271_v10  ;;  %v1268_v52 = vsel %vm1243_vm2, %v1213_v58, %v1215_v55  ;;  %v6973_v44 = vpop.permute.xlu0 %1767 }
 0x135   : > { %v6963_v47 = vadd.f32 %v1496_v33, %v943_v29  ;;  %v1498_v14 = vmul.f32 %v6824_v0, %v1268_v52  ;;  %v1269_v20 = vsel %vm1243_vm2, %v1214_v1, %v1216_v50  ;;  %8654 = vst [vmem:[#allocation29_spill] sm:$0xff] %v6973_v44 }
 0x136   : > { %v6970_v19 = vadd.f32 %v1497_v23, %v945_v31  ;;  %v1499_v28 = vmul.f32 %v6824_v0, %v1269_v20 }
 0x137   : > { %8653 = vst [vmem:[#allocation28_spill] sm:$0xff] %v6963_v47  ;;  %v6975_v13 = vadd.f32 %v1498_v14, %v947_v46  ;;  %v780_v6 = vpop.f32.mrb[32].mxu0 }
 0x138   : > { %v1217_v10 = vrot.slane %v780_v6, 7  ;;  %v6977_v58 = vadd.f32 %v1499_v28, %v949_v41  ;;  %v782_v29 = vpop.f32.mrb[33].mxu0  ;;  %v953_v33 = vpop.f32.mrb[32].mxu1 }
 0x139   : > { %8655 = vst [vmem:[#allocation30_spill] sm:$0xff] %v6975_v13  ;;  %v1218_v52 = vrot.slane %v782_v29, 7  ;;  %v784_v47 = vpop.f32.mrb[34].mxu0  ;;  %v955_v30 = vpop.f32.mrb[33].mxu1 }
 0x13a   : > { %8656 = vst [vmem:[#allocation31_spill] sm:$0xff] %v6977_v58  ;;  %v1219_v1 = vrot.slane %v784_v47, 7  ;;  %v786_v36 = vpop.f32.mrb[35].mxu0  ;;  %v1266_v31 = vsel %vm1243_vm2, %v1215_v55, %v1217_v10  ;;  %v957_v23 = vpop.f32.mrb[34].mxu1 }
 0x13b   : > { %v1220_v0 = vrot.slane %v786_v36, 7  ;;  %v1500_v20 = vmul.f32 %v6853_v12, %v1266_v31  ;;  %v1267_v46 = vsel %vm1243_vm2, %v1216_v50, %v1218_v52  ;;  %v959_v14 = vpop.f32.mrb[35].mxu1  ;;  %v6992_v29 = vpop.permute.xlu1 %1772 }
 0x13c   : > { %v1501_v41 = vmul.f32 %v6853_v12, %v1267_v46  ;;  %v1264_v28 = vsel %vm1243_vm2, %v1217_v10, %v1219_v1  ;;  %8658 = vst [vmem:[#allocation33_spill] sm:$0xff] %v6992_v29  ;;  %v6997_v50 = vpop.permute.xlu0 %1440 }
 0x13d   : > { %v6987_v6 = vadd.f32 %v1500_v20, %v953_v33  ;;  %v1502_v47 = vmul.f32 %v6872_v26, %v1264_v28  ;;  %v1265_v55 = vsel %vm1243_vm2, %v1218_v52, %v1220_v0 }
 0x13e   : > { %v6994_v36 = vadd.f32 %v1501_v41, %v955_v30  ;;  %v1503_v31 = vmul.f32 %v6872_v26, %v1265_v55 }
 0x13f   : > { %8657 = vst [vmem:[#allocation32_spill] sm:$0xff] %v6987_v6  ;;  %v6999_v44 = vadd.f32 %v1502_v47, %v957_v23  ;;  %v790_v12 = vpop.f32.mrb[36].mxu0 }
 0x140   : > { %v1221_v46 = vrot.slane %v790_v12, 7  ;;  %v7001_v10 = vadd.f32 %v1503_v31, %v959_v14  ;;  %v792_v33 = vpop.f32.mrb[37].mxu0  ;;  %v963_v20 = vpop.f32.mrb[36].mxu1 }
 0x141   : > { %8659 = vst [vmem:[#allocation34_spill] sm:$0xff] %v6999_v44  ;;  %v1222_v28 = vrot.slane %v792_v33, 7  ;;  %v794_v6 = vpop.f32.mrb[38].mxu0  ;;  %v965_v58 = vpop.f32.mrb[37].mxu1 }
 0x142   : > { %8660 = vst [vmem:[#allocation35_spill] sm:$0xff] %v7001_v10  ;;  %v1223_v52 = vrot.slane %v794_v6, 7  ;;  %v796_v13 = vpop.f32.mrb[39].mxu0  ;;  %v1262_v30 = vsel %vm1243_vm2, %v1219_v1, %v1221_v46  ;;  %v967_v41 = vpop.f32.mrb[38].mxu1 }
 0x143   : > { %v1224_v26 = vrot.slane %v796_v13, 7  ;;  %v1504_v55 = vmul.f32 %v6901_v32, %v1262_v30  ;;  %v1263_v23 = vsel %vm1243_vm2, %v1220_v0, %v1222_v28  ;;  %v969_v47 = vpop.f32.mrb[39].mxu1  ;;  %v1446_v33 = vpop.permute.xlu1 %1445 }
 0x144   : > { %v1505_v14 = vmul.f32 %v6901_v32, %v1263_v23  ;;  %v1260_v31 = vsel %vm1243_vm2, %v1221_v46, %v1223_v52  ;;  %v7019_v29 = vpop.permute.xlu0 %1777 }
 0x145   : > { %v7011_v12 = vadd.f32 %v1504_v55, %v963_v20  ;;  %v1506_v6 = vmul.f32 %v6920_v49, %v1260_v31  ;;  %v1261_v1 = vsel %vm1243_vm2, %v1222_v28, %v1224_v26  ;;  %8662 = vst [vmem:[#allocation37_spill] sm:$0xff] %v7019_v29 }
 0x146   : > { %v7016_v13 = vadd.f32 %v1505_v14, %v965_v58  ;;  %v1507_v30 = vmul.f32 %v6920_v49, %v1261_v1 }
 0x147   : > { %8661 = vst [vmem:[#allocation36_spill] sm:$0xff] %v7011_v12  ;;  %v7021_v0 = vadd.f32 %v1506_v6, %v967_v41  ;;  %v800_v32 = vpop.f32.mrb[40].mxu0 }
 0x148   : > { %v1225_v23 = vrot.slane %v800_v32, 7  ;;  %v7023_v10 = vadd.f32 %v1507_v30, %v969_v47  ;;  %v802_v46 = vpop.f32.mrb[41].mxu0  ;;  %v973_v20 = vpop.f32.mrb[40].mxu1 }
 0x149   : > { %8663 = vst [vmem:[#allocation38_spill] sm:$0xff] %v7021_v0  ;;  %v1226_v55 = vrot.slane %v802_v46, 7  ;;  %v804_v31 = vpop.f32.mrb[42].mxu0  ;;  %v975_v12 = vpop.f32.mrb[41].mxu1 }
 0x14a   : > { %8664 = vst [vmem:[#allocation39_spill] sm:$0xff] %v7023_v10  ;;  %v1227_v44 = vrot.slane %v804_v31, 7  ;;  %v806_v28 = vpop.f32.mrb[43].mxu0  ;;  %v1258_v58 = vsel %vm1243_vm2, %v1223_v52, %v1225_v23  ;;  %v977_v14 = vpop.f32.mrb[42].mxu1 }
 0x14b   : > { %v1228_v49 = vrot.slane %v806_v28, 7  ;;  %v1508_v1 = vmul.f32 %v6949_v7, %v1258_v58  ;;  %v1259_v41 = vsel %vm1243_vm2, %v1224_v26, %v1226_v55  ;;  %v979_v6 = vpop.f32.mrb[43].mxu1  ;;  %v7038_v31 = vpop.permute.xlu1 %1782 }
 0x14c   : > { %v1509_v47 = vmul.f32 %v6949_v7, %v1259_v41  ;;  %v1256_v30 = vsel %vm1243_vm2, %v1225_v23, %v1227_v44  ;;  %8666 = vst [vmem:[#allocation41_spill] sm:$0xff] %v7038_v31  ;;  %v1451_v26 = vpop.permute.xlu0 %1450 }
 0x14d   : > { %v7033_v32 = vadd.f32 %v1508_v1, %v973_v20  ;;  %v1510_v46 = vmul.f32 %v6968_v40, %v1256_v30  ;;  %v1257_v52 = vsel %vm1243_vm2, %v1226_v55, %v1228_v49 }
 0x14e   : > { %v7040_v28 = vadd.f32 %v1509_v47, %v975_v12  ;;  %v1511_v58 = vmul.f32 %v6968_v40, %v1257_v52 }
 0x14f   : > { %8665 = vst [vmem:[#allocation40_spill] sm:$0xff] %v7033_v32  ;;  %v7043_v29 = vadd.f32 %v1510_v46, %v977_v14  ;;  %v810_v7 = vpop.f32.mrb[44].mxu0 }
 0x150   : > { %8667 = vst [vmem:[#allocation42_spill] sm:$0xff] %v7040_v28  ;;  %v1229_v41 = vrot.slane %v810_v7, 7  ;;  %v7045_v10 = vadd.f32 %v1511_v58, %v979_v6  ;;  %v812_v23 = vpop.f32.mrb[45].mxu0  ;;  %v983_v20 = vpop.f32.mrb[44].mxu1 }
 0x151   : > { %8668 = vst [vmem:[#allocation43_spill] sm:$0xff] %v7043_v29  ;;  %v1230_v1 = vrot.slane %v812_v23, 7  ;;  %v814_v30 = vpop.f32.mrb[46].mxu0  ;;  %v985_v32 = vpop.f32.mrb[45].mxu1 }
 0x152   : > { %8669 = vst [vmem:[#allocation44_spill] sm:$0xff] %v7045_v10  ;;  %v1231_v0 = vrot.slane %v814_v30, 7  ;;  %v816_v55 = vpop.f32.mrb[47].mxu0  ;;  %v1254_v12 = vsel %vm1243_vm2, %v1227_v44, %v1229_v41  ;;  %v987_v47 = vpop.f32.mrb[46].mxu1 }
 0x153   : > { %v1232_v31 = vrot.slane %v816_v55, 7  ;;  %v1512_v40 = vmul.f32 %v6997_v50, %v1254_v12  ;;  %v1255_v14 = vsel %vm1243_vm2, %v1228_v49, %v1230_v1  ;;  %v989_v46 = vpop.f32.mrb[47].mxu1  ;;  %v1456_v44 = vpop.permute.xlu1 %1455 }
 0x154   : > { %v1513_v6 = vmul.f32 %v6997_v50, %v1255_v14  ;;  %v1252_v52 = vsel %vm1243_vm2, %v1229_v41, %v1231_v0  ;;  %v7061_v12 = vpop.permute.xlu0 %1787 }
 0x155   : > { %v7055_v58 = vadd.f32 %v1512_v40, %v983_v20  ;;  %v1514_v7 = vmul.f32 %v1446_v33, %v1252_v52  ;;  %v1253_v23 = vsel %vm1243_vm2, %v1230_v1, %v1232_v31  ;;  %8671 = vst [vmem:[#allocation46_spill] sm:$0xff] %v7061_v12 }
 0x156   : > { %v7059_v30 = vadd.f32 %v1513_v6, %v985_v32  ;;  %v1515_v55 = vmul.f32 %v1446_v33, %v1253_v23 }
 0x157   : > { %8670 = vst [vmem:[#allocation45_spill] sm:$0xff] %v7055_v58  ;;  %v7063_v10 = vadd.f32 %v1514_v7, %v987_v47  ;;  %v820_v49 = vpop.f32.mrb[48].mxu0 }
 0x158   : > { %v1233_v29 = vrot.slane %v820_v49, 7  ;;  %v7065_v50 = vadd.f32 %v1515_v55, %v989_v46  ;;  %v822_v14 = vpop.f32.mrb[49].mxu0  ;;  %v993_v41 = vpop.f32.mrb[48].mxu1 }
 0x159   : > { %8672 = vst [vmem:[#allocation47_spill] sm:$0xff] %v7063_v10  ;;  %v1234_v20 = vrot.slane %v822_v14, 7  ;;  %v824_v40 = vpop.f32.mrb[50].mxu0  ;;  %v995_v52 = vpop.f32.mrb[49].mxu1 }
 0x15a   : > { %8673 = vst [vmem:[#allocation48_spill] sm:$0xff] %v7065_v50  ;;  %v1235_v58 = vrot.slane %v824_v40, 7  ;;  %v826_v28 = vpop.f32.mrb[51].mxu0  ;;  %v1250_v32 = vsel %vm1243_vm2, %v1231_v0, %v1233_v29  ;;  %v997_v1 = vpop.f32.mrb[50].mxu1 }
 0x15b   : > { %v1236_v33 = vrot.slane %v826_v28, 7  ;;  %v1516_v6 = vmul.f32 %v1451_v26, %v1250_v32  ;;  %v1251_v47 = vsel %vm1243_vm2, %v1232_v31, %v1234_v20  ;;  %v999_v7 = vpop.f32.mrb[51].mxu1  ;;  %v7077_v40 = vpop.permute.xlu1 %1792 }
 0x15c   : > { %v1517_v23 = vmul.f32 %v1451_v26, %v1251_v47  ;;  %v1248_v46 = vsel %vm1243_vm2, %v1233_v29, %v1235_v58  ;;  %v1461_v32 = vpop.permute.xlu0 %1460 }
 0x15d   : > { %v7073_v55 = vadd.f32 %v1516_v6, %v993_v41  ;;  %v1518_v49 = vmul.f32 %v1456_v44, %v1248_v46  ;;  %v1249_v14 = vsel %vm1243_vm2, %v1234_v20, %v1236_v33 }
 0x15e   : > { %v7079_v0 = vadd.f32 %v1517_v23, %v995_v52  ;;  %v1519_v28 = vmul.f32 %v1456_v44, %v1249_v14 }
 0x15f   : > { %8674 = vst [vmem:[#allocation49_spill] sm:$0xff] %v7073_v55  ;;  %v7081_v50 = vadd.f32 %v1518_v49, %v997_v1  ;;  %v830_v31 = vpop.f32.mrb[52].mxu0  ;;  %v1466_v14 = vpop.permute.xlu1 %1465 }
 0x160   : > { %v1237_v12 = vrot.slane %v830_v31, 7  ;;  %v7083_v26 = vadd.f32 %v1519_v28, %v999_v7  ;;  %v832_v47 = vpop.f32.mrb[53].mxu0  ;;  %v1003_v29 = vpop.f32.mrb[52].mxu1  ;;  %v5794_v7 = vld [vmem:[%s8586_s5 + $0x4] ss:$8 sps:$4 sm:$0xff]   ;;  %v8676_v28 = vrot.slane %v6778_v51, 7 }
 0x161   : > { %v1238_v41 = vrot.slane %v832_v47, 7  ;;  %v834_v6 = vpop.f32.mrb[54].mxu0  ;;  %v1005_v46 = vpop.f32.mrb[53].mxu1  ;;  %5260 = vmatprep.mubr.msk.bf16.mxu1 %vm2279_vm3, %v5794_v7 }
 0x162   : > { %8675 = vst [vmem:[#allocation50_spill] sm:$0xff] %v7083_v26  ;;  %v1239_v55 = vrot.slane %v834_v6, 7  ;;  %v836_v10 = vpop.f32.mrb[55].mxu0  ;;  %v1246_v20 = vsel %vm1243_vm2, %v1235_v58, %v1237_v12  ;;  %v1007_v52 = vpop.f32.mrb[54].mxu1 }
 0x163   : > { %v1240_v23 = vrot.slane %v836_v10, 7  ;;  %v1520_v44 = vmul.f32 %v1461_v32, %v1246_v20  ;;  %v1247_v1 = vsel %vm1243_vm2, %v1236_v33, %v1238_v41  ;;  %v1009_v49 = vpop.f32.mrb[55].mxu1  ;;  %v8677_v33 = vrot.slane %v6782_v37, 7 }
 0x164   : > { %v1298_v31 = vsel %vm1243_vm2, %v1239_v55, %v8676_v28  ;;  %v1521_v47 = vmul.f32 %v1461_v32, %v1247_v1  ;;  %v1244_v58 = vsel %vm1243_vm2, %v1237_v12, %v1239_v55 }
 0x165   : > { %v1468_v10 = vmul.f32 %v6652_v8, %v1298_v31  ;;  %v1299_v6 = vsel %vm1243_vm2, %v1240_v23, %v8677_v33  ;;  %v7103_v20 = vadd.f32 %v1520_v44, %v1003_v29  ;;  %v1522_v26 = vmul.f32 %v1466_v14, %v1244_v58 }
 0x166   : > { %v1469_v51 = vmul.f32 %v6652_v8, %v1299_v6  ;;  %v7107_v28 = vadd.f32 %v1521_v47, %v1005_v46  ;;  %v1245_v12 = vsel %vm1243_vm2, %v1238_v41, %v1240_v23  ;;  %v1973_v47 = vld [vmem:[%s8585_s4] sm:$0x3]  ;;  %v8623_v58 = vsub.s32 1, %v6774_v48 }
 0x167   : > { %v1861_v55 = vadd.f32 %v1468_v10, %v6784_v53  ;;  %v7112_v32 = vadd.f32 %v1522_v26, %v1007_v52  ;;  %v1523_v37 = vmul.f32 %v1466_v14, %v1245_v12  ;;  %v7114_v1 = vpop.f32.mrb[56].mxu0 }
 0x168   : > { %v1862_v29 = vadd.f32 %v1469_v51, %v6786_v57  ;;  %v7117_v44 = vpop.f32.mrb[57].mxu0  ;;  %v8625_v8 = vrot.slane %v7114_v1, 1 }
 0x169   : > { %v7119_v31 = vadd.f32 %v1523_v37, %v1009_v49  ;;  %v1050_v7 = vpop.f32.mrb[58].mxu0  ;;  %v8622_v53 = vrot.slane %v7117_v44, 1  ;;  %v8624_v49 = vsub.s32 0, %v6774_v48 }
 0x16a   : > { %v1526_v46 = vrot.slane %v1050_v7, 1  ;;  %v1052_v41 = vpop.f32.mrb[59].mxu0 }
 0x16b   : > { %v1527_v26 = vrot.slane %v1052_v41, 1  ;;  %v7141_v41 = vrot.slane %v1973_v47, %v8624_v49 }
 0x16c   : > { %v1633_v52 = vsel %vm1580_vm4, %v8625_v8, %v1526_v46 }
 0x16d   : > { %v1805_v57 = vmul.f32 %v6666_v11, %v1633_v52  ;;  %v1634_v23 = vsel %vm1580_vm4, %v8622_v53, %v1527_v26  ;;  %v7147_v53 = vrot.slane %v1973_v47, %v8623_v58 }
 0x16e   : > { %v1806_v14 = vmul.f32 %v6666_v11, %v1634_v23 }
 0x16f   : > { %v1917_v10 = vadd.f32 %v1861_v55, %v1805_v57  ;;  %v1056_v33 = vpop.f32.mrb[60].mxu0 }
 0x170   : > { %v1918_v6 = vadd.f32 %v1862_v29, %v1806_v14  ;;  %v1528_v51 = vrot.slane %v1056_v33, 1  ;;  %v1058_v12 = vpop.f32.mrb[61].mxu0 }
 0x171   : > { %v1529_v37 = vrot.slane %v1058_v12, 1  ;;  %v1060_v7 = vpop.f32.mrb[62].mxu0  ;;  %v1985_v47 = vadd.f32 %v7141_v41, %v1917_v10 }
 0x172   : > { %v1631_v11 = vsel %vm1580_vm4, %v1526_v46, %v1528_v51  ;;  %v1530_v52 = vrot.slane %v1060_v7, 1  ;;  %v1062_v23 = vpop.f32.mrb[63].mxu0 }
 0x173   : > { %v1807_v55 = vmul.f32 %v6678_v15, %v1631_v11  ;;  %v1632_v29 = vsel %vm1580_vm4, %v1527_v26, %v1529_v37  ;;  %v1531_v57 = vrot.slane %v1062_v23, 1  ;;  %v1986_v26 = vadd.f32 %v7147_v53, %v1918_v6 }
 0x174   : > { %v1808_v14 = vmul.f32 %v6678_v15, %v1632_v29  ;;  %v1629_v33 = vsel %vm1580_vm4, %v1528_v51, %v1530_v52  ;;  %v2041_v10 = vmax.f32 %v1985_v47, 0.0 }
 0x175   : > { %v1919_v12 = vadd.f32 %v6805_v5, %v1807_v55  ;;  %v1809_v46 = vmul.f32 %v6697_v24, %v1629_v33  ;;  %v1630_v7 = vsel %vm1580_vm4, %v1529_v37, %v1531_v57 }
 0x176   : > { %v1920_v11 = vadd.f32 %v6809_v9, %v1808_v14  ;;  %v1810_v58 = vmul.f32 %v6697_v24, %v1630_v7  ;;  %v2042_v14 = vmax.f32 %v1986_v26, 0.0 }
 0x177   : > { %v1921_v15 = vadd.f32 %v6819_v59, %v1809_v46  ;;  %v1066_v23 = vpop.f32.mrb[64].mxu0  ;;  %v1987_v51 = vadd.f32 %v7141_v41, %v1919_v12 }
 0x178   : > { %v1922_v5 = vadd.f32 %v6826_v17, %v1810_v58  ;;  %v1532_v55 = vrot.slane %v1066_v23, 1  ;;  %v1068_v29 = vpop.f32.mrb[65].mxu0  ;;  %v1988_v33 = vadd.f32 %v7147_v53, %v1920_v11 }
 0x179   : > { %v1533_v37 = vrot.slane %v1068_v29, 1  ;;  %v1070_v49 = vpop.f32.mrb[66].mxu0  ;;  %v2043_v8 = vmax.f32 %v1987_v51, 0.0  ;;  %v1989_v26 = vadd.f32 %v7141_v41, %v1921_v15 }
 0x17a   : > { %v1627_v24 = vsel %vm1580_vm4, %v1530_v52, %v1532_v55  ;;  %v1534_v9 = vrot.slane %v1070_v49, 1  ;;  %v1072_v6 = vpop.f32.mrb[67].mxu0  ;;  %v2044_v59 = vmax.f32 %v1988_v33, 0.0 }
 0x17b   : > { %v1811_v46 = vmul.f32 %v6708_v27, %v1627_v24  ;;  %v1628_v17 = vsel %vm1580_vm4, %v1531_v57, %v1533_v37  ;;  %v1535_v58 = vrot.slane %v1072_v6, 1  ;;  %v2125_v12 = vpack.c.bf16 %v2043_v8, %v2041_v10 }
 0x17c   : > { %v1812_v7 = vmul.f32 %v6708_v27, %v1628_v17  ;;  %v1625_v47 = vsel %vm1580_vm4, %v1532_v55, %v1534_v9  ;;  %v2126_v11 = vpack.c.bf16 %v2044_v59, %v2042_v14  ;;  %v1990_v27 = vadd.f32 %v7147_v53, %v1922_v5 }
 0x17d   : > { %v1923_v23 = vadd.f32 %v6831_v3, %v1811_v46  ;;  %v1813_v49 = vmul.f32 %v6726_v34, %v1625_v47  ;;  %v1626_v52 = vsel %vm1580_vm4, %v1533_v37, %v1535_v58 }
 0x17e   : > { %v1924_v51 = vadd.f32 %v6833_v54, %v1812_v7  ;;  %v1814_v57 = vmul.f32 %v6726_v34, %v1626_v52  ;;  %2322 = vmatprep.subr.bf16.mxu1 %v2126_v11  ;;  %v2045_v54 = vmax.f32 %v1989_v26, 0.0 }
 0x17f   : > { %v1925_v8 = vadd.f32 %v6843_v60, %v1813_v49  ;;  %v1076_v55 = vpop.f32.mrb[68].mxu0  ;;  %2323 = vmatpush1.bf16.msra.mxu1 %v2125_v12  ;;  %v1991_v3 = vadd.f32 %v7141_v41, %v1923_v23  ;;  %v2046_v60 = vmax.f32 %v1990_v27, 0.0 }
 0x180   : > { %v1926_v29 = vadd.f32 %v6850_v18, %v1814_v57  ;;  %v1536_v33 = vrot.slane %v1076_v55, 1  ;;  %v1078_v10 = vpop.f32.mrb[69].mxu0  ;;  %v1992_v37 = vadd.f32 %v7147_v53, %v1924_v51 }
 0x181   : > { %v1537_v15 = vrot.slane %v1078_v10, 1  ;;  %v1080_v24 = vpop.f32.mrb[70].mxu0  ;;  %v2047_v6 = vmax.f32 %v1991_v3, 0.0  ;;  %v1993_v52 = vadd.f32 %v7141_v41, %v1925_v8 }
 0x182   : > { %v1623_v34 = vsel %vm1580_vm4, %v1534_v9, %v1536_v33  ;;  %v1538_v5 = vrot.slane %v1080_v24, 1  ;;  %v1082_v14 = vpop.f32.mrb[71].mxu0  ;;  %v2048_v59 = vmax.f32 %v1992_v37, 0.0 }
 0x183   : > { %v1815_v46 = vmul.f32 %v6730_v35, %v1623_v34  ;;  %v1624_v18 = vsel %vm1580_vm4, %v1535_v58, %v1537_v15  ;;  %v1539_v17 = vrot.slane %v1082_v14, 1  ;;  %v2127_v12 = vpack.c.bf16 %v2047_v6, %v2045_v54 }
 0x184   : > { %v1816_v7 = vmul.f32 %v6730_v35, %v1624_v18  ;;  %v1621_v47 = vsel %vm1580_vm4, %v1536_v33, %v1538_v5  ;;  %v2128_v11 = vpack.c.bf16 %v2048_v59, %v2046_v60  ;;  %v1994_v35 = vadd.f32 %v7147_v53, %v1926_v29 }
 0x185   : > { %v1927_v23 = vadd.f32 %v6855_v16, %v1815_v46  ;;  %v1817_v9 = vmul.f32 %v6737_v38, %v1621_v47  ;;  %v1622_v49 = vsel %vm1580_vm4, %v1537_v15, %v1539_v17 }
 0x186   : > { %v1928_v26 = vadd.f32 %v6857_v4, %v1816_v7  ;;  %v1818_v58 = vmul.f32 %v6737_v38, %v1622_v49  ;;  %2324 = vmatprep.subr.bf16.mxu1 %v2128_v11  ;;  %v2049_v4 = vmax.f32 %v1993_v52, 0.0 }
 0x187   : > { %v1929_v51 = vadd.f32 %v6867_v56, %v1817_v9  ;;  %v1086_v57 = vpop.f32.mrb[72].mxu0  ;;  %2325 = vmatpush1.bf16.msra.mxu1 %v2127_v12  ;;  %v1995_v16 = vadd.f32 %v7141_v41, %v1927_v23  ;;  %v2050_v56 = vmax.f32 %v1994_v35, 0.0 }
 0x188   : > { %v1930_v27 = vadd.f32 %v6874_v2, %v1818_v58  ;;  %v1540_v55 = vrot.slane %v1086_v57, 1  ;;  %v1088_v3 = vpop.f32.mrb[73].mxu0  ;;  %v1996_v33 = vadd.f32 %v7147_v53, %v1928_v26 }
 0x189   : > { %v1541_v8 = vrot.slane %v1088_v3, 1  ;;  %v1090_v10 = vpop.f32.mrb[74].mxu0  ;;  %v2051_v37 = vmax.f32 %v1995_v16, 0.0  ;;  %v1997_v12 = vadd.f32 %v7141_v41, %v1929_v51 }
 0x18a   : > { %v1619_v38 = vsel %vm1580_vm4, %v1538_v5, %v1540_v55  ;;  %v1542_v29 = vrot.slane %v1090_v10, 1  ;;  %v1092_v15 = vpop.f32.mrb[75].mxu0  ;;  %v2052_v24 = vmax.f32 %v1996_v33, 0.0 }
 0x18b   : > { %v1819_v54 = vmul.f32 %v6742_v39, %v1619_v38  ;;  %v1620_v2 = vsel %vm1580_vm4, %v1539_v17, %v1541_v8  ;;  %v1543_v6 = vrot.slane %v1092_v15, 1  ;;  %v2129_v34 = vpack.c.bf16 %v2051_v37, %v2049_v4  ;;  %v8678_v37 = vld [vmem:[#allocation11_spill] sm:$0xff] }
 0x18c   : > { %v1820_v14 = vmul.f32 %v6742_v39, %v1620_v2  ;;  %v1617_v60 = vsel %vm1580_vm4, %v1540_v55, %v1542_v29  ;;  %v2130_v59 = vpack.c.bf16 %v2052_v24, %v2050_v56  ;;  %v1998_v39 = vadd.f32 %v7147_v53, %v1930_v27  ;;  %v8679_v56 = vld [vmem:[#allocation19_spill] sm:$0xff]  ;;  %v8680_v2 = vld [vmem:[#allocation20_spill] sm:$0xff] }
 0x18d   : > { %v1931_v46 = vadd.f32 %v6879_v61, %v1819_v54  ;;  %v1821_v5 = vmul.f32 %v6751_v42, %v1617_v60  ;;  %v1618_v18 = vsel %vm1580_vm4, %v1541_v8, %v1543_v6 }
 0x18e   : > { %v1932_v7 = vadd.f32 %v6881_v25, %v1820_v14  ;;  %v1822_v17 = vmul.f32 %v6751_v42, %v1618_v18  ;;  %2326 = vmatprep.subr.bf16.mxu1 %v2130_v59  ;;  %v2053_v25 = vmax.f32 %v1997_v12, 0.0 }
 0x18f   : > { %v1933_v47 = vadd.f32 %v6891_v63, %v1821_v5  ;;  %v1096_v11 = vpop.f32.mrb[76].mxu0  ;;  %2327 = vmatpush1.bf16.msra.mxu1 %v2129_v34  ;;  %v1999_v61 = vadd.f32 %v7141_v41, %v1931_v46  ;;  %v2054_v63 = vmax.f32 %v1998_v39, 0.0 }
 0x190   : > { %v1934_v23 = vadd.f32 %v6898_v62, %v1822_v17  ;;  %v1544_v9 = vrot.slane %v1096_v11, 1  ;;  %v1098_v49 = vpop.f32.mrb[77].mxu0  ;;  %v2000_v52 = vadd.f32 %v7147_v53, %v1932_v7 }
 0x191   : > { %v1545_v26 = vrot.slane %v1098_v49, 1  ;;  %v1100_v58 = vpop.f32.mrb[78].mxu0  ;;  %v2055_v35 = vmax.f32 %v1999_v61, 0.0  ;;  %v2001_v15 = vadd.f32 %v7141_v41, %v1933_v47 }
 0x192   : > { %v1615_v42 = vsel %vm1580_vm4, %v1542_v29, %v1544_v9  ;;  %v1546_v51 = vrot.slane %v1100_v58, 1  ;;  %v1102_v57 = vpop.f32.mrb[79].mxu0  ;;  %v2056_v16 = vmax.f32 %v2000_v52, 0.0 }
 0x193   : > { %v1823_v27 = vmul.f32 %v6755_v43, %v1615_v42  ;;  %v1616_v62 = vsel %vm1580_vm4, %v1543_v6, %v1545_v26  ;;  %v1547_v55 = vrot.slane %v1102_v57, 1  ;;  %v2131_v3 = vpack.c.bf16 %v2055_v35, %v2053_v25  ;;  %v8682_v35 = vld [vmem:[#allocation22_spill] sm:$0xff] }
 0x194   : > { %v1824_v33 = vmul.f32 %v6755_v43, %v1616_v62  ;;  %v1613_v8 = vsel %vm1580_vm4, %v1544_v9, %v1546_v51  ;;  %v2132_v10 = vpack.c.bf16 %v2056_v16, %v2054_v63  ;;  %v2002_v43 = vadd.f32 %v7147_v53, %v1934_v23  ;;  %v8681_v23 = vld [vmem:[#allocation12_spill] sm:$0xff] }
 0x195   : > { %v1935_v4 = vadd.f32 %v6903_v21, %v1823_v27  ;;  %v1825_v38 = vmul.f32 %v8678_v37, %v1613_v8  ;;  %v1614_v29 = vsel %vm1580_vm4, %v1545_v26, %v1547_v55  ;;  %v2057_v12 = vmax.f32 %v2001_v15, 0.0  ;;  %v8684_v27 = vld [vmem:[#allocation23_spill] sm:$0xff] }
 0x196   : > { %v1936_v24 = vadd.f32 %v8679_v56, %v1824_v33  ;;  %v1826_v54 = vmul.f32 %v8678_v37, %v1614_v29  ;;  %2328 = vmatprep.subr.bf16.mxu1 %v2132_v10  ;;  %v2058_v11 = vmax.f32 %v2002_v43, 0.0  ;;  %v8685_v33 = vld [vmem:[#allocation24_spill] sm:$0xff] }
 0x197   : > { %v1937_v6 = vadd.f32 %v8680_v2, %v1825_v38  ;;  %v1106_v34 = vpop.f32.mrb[80].mxu0  ;;  %2329 = vmatpush1.bf16.msra.mxu1 %v2131_v3  ;;  %v2003_v21 = vadd.f32 %v7141_v41, %v1935_v4 }
 0x198   : > { %v1938_v14 = vadd.f32 %v6922_v22, %v1826_v54  ;;  %v1548_v60 = vrot.slane %v1106_v34, 1  ;;  %v1108_v59 = vpop.f32.mrb[81].mxu0  ;;  %v2004_v46 = vadd.f32 %v7147_v53, %v1936_v24 }
 0x199   : > { %v1549_v5 = vrot.slane %v1108_v59, 1  ;;  %v1110_v18 = vpop.f32.mrb[82].mxu0  ;;  %v2059_v7 = vmax.f32 %v2003_v21, 0.0  ;;  %v2005_v16 = vadd.f32 %v7141_v41, %v1937_v6 }
 0x19a   : > { %v1611_v17 = vsel %vm1580_vm4, %v1546_v51, %v1548_v60  ;;  %v1550_v39 = vrot.slane %v1110_v18, 1  ;;  %v1112_v47 = vpop.f32.mrb[83].mxu0  ;;  %v2060_v61 = vmax.f32 %v2004_v46, 0.0  ;;  %v8683_v51 = vld [vmem:[#allocation13_spill] sm:$0xff]  ;;  %v2006_v3 = vadd.f32 %v7147_v53, %v1938_v14 }
 0x19b   : > { %v1827_v9 = vmul.f32 %v8681_v23, %v1611_v17  ;;  %v1612_v22 = vsel %vm1580_vm4, %v1547_v55, %v1549_v5  ;;  %v1551_v49 = vrot.slane %v1112_v47, 1  ;;  %v2133_v52 = vpack.c.bf16 %v2059_v7, %v2057_v12  ;;  %v8687_v17 = vld [vmem:[#allocation26_spill] sm:$0xff] }
 0x19c   : > { %v1828_v26 = vmul.f32 %v8681_v23, %v1612_v22  ;;  %v1609_v58 = vsel %vm1580_vm4, %v1548_v60, %v1550_v39  ;;  %v2134_v25 = vpack.c.bf16 %v2060_v61, %v2058_v11  ;;  %v2061_v54 = vmax.f32 %v2005_v16, 0.0  ;;  %v8686_v60 = vld [vmem:[#allocation14_spill] sm:$0xff] }
 0x19d   : > { %v1939_v42 = vadd.f32 %v8682_v35, %v1827_v9  ;;  %v1829_v57 = vmul.f32 %v8683_v51, %v1609_v58  ;;  %v1610_v63 = vsel %vm1580_vm4, %v1549_v5, %v1551_v49  ;;  %v2062_v21 = vmax.f32 %v2006_v3, 0.0  ;;  %v8689_v9 = vld [vmem:[#allocation27_spill] sm:$0xff] }
 0x19e   : > { %v1940_v62 = vadd.f32 %v8684_v27, %v1828_v26  ;;  %v1830_v55 = vmul.f32 %v8683_v51, %v1610_v63  ;;  %2330 = vmatprep.subr.bf16.mxu1 %v2134_v25  ;;  %v8690_v26 = vld [vmem:[#allocation28_spill] sm:$0xff] }
 0x19f   : > { %v1941_v8 = vadd.f32 %v8685_v33, %v1829_v57  ;;  %v1116_v10 = vpop.f32.mrb[84].mxu0  ;;  %2331 = vmatpush1.bf16.msra.mxu1 %v2133_v52  ;;  %v2007_v4 = vadd.f32 %v7141_v41, %v1939_v42 }
 0x1a0   : > { %v1942_v37 = vadd.f32 %v6946_v45, %v1830_v55  ;;  %v1552_v38 = vrot.slane %v1116_v10, 1  ;;  %v1118_v29 = vpop.f32.mrb[85].mxu0  ;;  %v2008_v15 = vadd.f32 %v7147_v53, %v1940_v62 }
 0x1a1   : > { %v1553_v56 = vrot.slane %v1118_v29, 1  ;;  %v1120_v24 = vpop.f32.mrb[86].mxu0  ;;  %v2063_v43 = vmax.f32 %v2007_v4, 0.0  ;;  %v2009_v23 = vadd.f32 %v7141_v41, %v1941_v8 }
 0x1a2   : > { %v1607_v2 = vsel %vm1580_vm4, %v1550_v39, %v1552_v38  ;;  %v1554_v6 = vrot.slane %v1120_v24, 1  ;;  %v1122_v34 = vpop.f32.mrb[87].mxu0  ;;  %v2064_v14 = vmax.f32 %v2008_v15, 0.0  ;;  %v8688_v39 = vld [vmem:[#allocation15_spill] sm:$0xff]  ;;  %v2010_v52 = vadd.f32 %v7147_v53, %v1942_v37  ;;  %v8691_v37 = vld [vmem:[#allocation16_spill] sm:$0xff] }
 0x1a3   : > { %v1831_v59 = vmul.f32 %v8686_v60, %v1607_v2  ;;  %v1608_v45 = vsel %vm1580_vm4, %v1551_v49, %v1553_v56  ;;  %v1555_v46 = vrot.slane %v1122_v34, 1  ;;  %v2135_v5 = vpack.c.bf16 %v2063_v43, %v2061_v54  ;;  %v8692_v43 = vld [vmem:[#allocation30_spill] sm:$0xff] }
 0x1a4   : > { %v1832_v18 = vmul.f32 %v8686_v60, %v1608_v45  ;;  %v1605_v12 = vsel %vm1580_vm4, %v1552_v38, %v1554_v6  ;;  %v2136_v7 = vpack.c.bf16 %v2064_v14, %v2062_v21  ;;  %v2065_v62 = vmax.f32 %v2009_v23, 0.0  ;;  %v8694_v60 = vld [vmem:[#allocation31_spill] sm:$0xff] }
 0x1a5   : > { %v1943_v47 = vadd.f32 %v8687_v17, %v1831_v59  ;;  %v1833_v11 = vmul.f32 %v8688_v39, %v1605_v12  ;;  %v1606_v61 = vsel %vm1580_vm4, %v1553_v56, %v1555_v46  ;;  %v2066_v10 = vmax.f32 %v2010_v52, 0.0 }
 0x1a6   : > { %v1944_v22 = vadd.f32 %v8689_v9, %v1832_v18  ;;  %v1834_v49 = vmul.f32 %v8688_v39, %v1606_v61  ;;  %2332 = vmatprep.subr.bf16.mxu1 %v2136_v7 }
 0x1a7   : > { %v1945_v58 = vadd.f32 %v8690_v26, %v1833_v11  ;;  %v1126_v25 = vpop.f32.mrb[88].mxu0  ;;  %2333 = vmatpush1.bf16.msra.mxu1 %v2135_v5  ;;  %v2011_v35 = vadd.f32 %v7141_v41, %v1943_v47  ;;  %v8695_v5 = vld [vmem:[#allocation32_spill] sm:$0xff] }
 0x1a8   : > { %v1946_v42 = vadd.f32 %v6970_v19, %v1834_v49  ;;  %v1556_v51 = vrot.slane %v1126_v25, 1  ;;  %v1128_v57 = vpop.f32.mrb[89].mxu0  ;;  %v2012_v63 = vadd.f32 %v7147_v53, %v1944_v22 }
 0x1a9   : > { %v1557_v16 = vrot.slane %v1128_v57, 1  ;;  %v1130_v27 = vpop.f32.mrb[90].mxu0  ;;  %v2067_v55 = vmax.f32 %v2011_v35, 0.0  ;;  %v2013_v14 = vadd.f32 %v7141_v41, %v1945_v58  ;;  %v8696_v35 = vld [vmem:[#allocation18_spill] sm:$0xff] }
 0x1aa   : > { %v1603_v3 = vsel %vm1580_vm4, %v1554_v6, %v1556_v51  ;;  %v1558_v33 = vrot.slane %v1130_v27, 1  ;;  %v1132_v8 = vpop.f32.mrb[91].mxu0  ;;  %v2068_v4 = vmax.f32 %v2012_v63, 0.0  ;;  %v8693_v6 = vld [vmem:[#allocation17_spill] sm:$0xff] }
 0x1ab   : > { %v1835_v38 = vmul.f32 %v8691_v37, %v1603_v3  ;;  %v1604_v19 = vsel %vm1580_vm4, %v1555_v46, %v1557_v16  ;;  %v1559_v29 = vrot.slane %v1132_v8, 1  ;;  %v2137_v15 = vpack.c.bf16 %v2067_v55, %v2065_v62  ;;  %v8697_v62 = vld [vmem:[#allocation34_spill] sm:$0xff]  ;;  %v8698_v3 = vld [vmem:[#allocation21_spill] sm:$0xff] }
 0x1ac   : > { %v1836_v56 = vmul.f32 %v8691_v37, %v1604_v19  ;;  %v1601_v24 = vsel %vm1580_vm4, %v1556_v51, %v1558_v33  ;;  %v2138_v54 = vpack.c.bf16 %v2068_v4, %v2066_v10  ;;  %v2014_v46 = vadd.f32 %v7147_v53, %v1946_v42  ;;  %v8699_v4 = vld [vmem:[#allocation35_spill] sm:$0xff] }
 0x1ad   : > { %v1947_v2 = vadd.f32 %v8692_v43, %v1835_v38  ;;  %v1837_v34 = vmul.f32 %v8693_v6, %v1601_v24  ;;  %v1602_v21 = vsel %vm1580_vm4, %v1557_v16, %v1559_v29  ;;  %v2069_v9 = vmax.f32 %v2013_v14, 0.0 }
 0x1ae   : > { %v1948_v59 = vadd.f32 %v8694_v60, %v1836_v56  ;;  %v1838_v45 = vmul.f32 %v8693_v6, %v1602_v21  ;;  %2334 = vmatprep.subr.bf16.mxu1 %v2138_v54  ;;  %v2070_v58 = vmax.f32 %v2014_v46, 0.0 }
 0x1af   : > { %v1949_v18 = vadd.f32 %v8695_v5, %v1837_v34  ;;  %v1136_v12 = vpop.f32.mrb[92].mxu0  ;;  %2335 = vmatpush1.bf16.msra.mxu1 %v2137_v15  ;;  %v2015_v7 = vadd.f32 %v7141_v41, %v1947_v2 }
 0x1b0   : > { %v1950_v17 = vadd.f32 %v6994_v36, %v1838_v45  ;;  %v1560_v47 = vrot.slane %v1136_v12, 1  ;;  %v1138_v39 = vpop.f32.mrb[93].mxu0  ;;  %v2016_v11 = vadd.f32 %v7147_v53, %v1948_v59  ;;  %v8701_v12 = vld [vmem:[#allocation25_spill] sm:$0xff] }
 0x1b1   : > { %v1561_v61 = vrot.slane %v1138_v39, 1  ;;  %v1140_v23 = vpop.f32.mrb[94].mxu0  ;;  %v2071_v22 = vmax.f32 %v2015_v7, 0.0  ;;  %v2017_v10 = vadd.f32 %v7141_v41, %v1949_v18 }
 0x1b2   : > { %v1599_v49 = vsel %vm1580_vm4, %v1558_v33, %v1560_v47  ;;  %v1562_v52 = vrot.slane %v1140_v23, 1  ;;  %v1142_v26 = vpop.f32.mrb[95].mxu0  ;;  %v2072_v25 = vmax.f32 %v2016_v11, 0.0  ;;  %v2018_v19 = vadd.f32 %v7147_v53, %v1950_v17  ;;  %v8702_v23 = vld [vmem:[#allocation38_spill] sm:$0xff] }
 0x1b3   : > { %v1839_v42 = vmul.f32 %v8696_v35, %v1599_v49  ;;  %v1600_v36 = vsel %vm1580_vm4, %v1559_v29, %v1561_v61  ;;  %v1563_v51 = vrot.slane %v1142_v26, 1  ;;  %v2139_v57 = vpack.c.bf16 %v2071_v22, %v2069_v9  ;;  %v8700_v29 = vld [vmem:[#allocation36_spill] sm:$0xff]  ;;  %v8703_v22 = vld [vmem:[#allocation29_spill] sm:$0xff] }
 0x1b4   : > { %v1840_v63 = vmul.f32 %v8696_v35, %v1600_v36  ;;  %v1597_v16 = vsel %vm1580_vm4, %v1560_v47, %v1562_v52  ;;  %v2140_v27 = vpack.c.bf16 %v2072_v25, %v2070_v58  ;;  %v2073_v14 = vmax.f32 %v2017_v10, 0.0  ;;  %v8704_v58 = vld [vmem:[#allocation39_spill] sm:$0xff]  ;;  %v8705_v36 = vld [vmem:[#allocation40_spill] sm:$0xff] }
 0x1b5   : > { %v1951_v55 = vadd.f32 %v8697_v62, %v1839_v42  ;;  %v1841_v33 = vmul.f32 %v8698_v3, %v1597_v16  ;;  %v1598_v8 = vsel %vm1580_vm4, %v1561_v61, %v1563_v51  ;;  %v2074_v5 = vmax.f32 %v2018_v19, 0.0  ;;  %v8706_v16 = vld [vmem:[#allocation42_spill] sm:$0xff] }
 0x1b6   : > { %v1952_v37 = vadd.f32 %v8699_v4, %v1840_v63  ;;  %v1842_v38 = vmul.f32 %v8698_v3, %v1598_v8  ;;  %2336 = vmatprep.subr.bf16.mxu1 %v2140_v27 }
 0x1b7   : > { %v1953_v15 = vadd.f32 %v8700_v29, %v1841_v33  ;;  %v1146_v56 = vpop.f32.mrb[96].mxu0  ;;  %2337 = vmatpush1.bf16.msra.mxu1 %v2139_v57  ;;  %v2019_v24 = vadd.f32 %v7141_v41, %v1951_v55 }
 0x1b8   : > { %v1954_v54 = vadd.f32 %v7016_v13, %v1842_v38  ;;  %v1564_v43 = vrot.slane %v1146_v56, 1  ;;  %v1148_v2 = vpop.f32.mrb[97].mxu0  ;;  %v2020_v6 = vadd.f32 %v7147_v53, %v1952_v37  ;;  %v8707_v56 = vld [vmem:[#allocation33_spill] sm:$0xff] }
 0x1b9   : > { %v1565_v34 = vrot.slane %v1148_v2, 1  ;;  %v1150_v21 = vpop.f32.mrb[98].mxu0  ;;  %v2075_v60 = vmax.f32 %v2019_v24, 0.0  ;;  %v2021_v26 = vadd.f32 %v7141_v41, %v1953_v15 }
 0x1ba   : > { %v1595_v59 = vsel %vm1580_vm4, %v1562_v52, %v1564_v43  ;;  %v1566_v45 = vrot.slane %v1150_v21, 1  ;;  %v1152_v46 = vpop.f32.mrb[99].mxu0  ;;  %v2076_v18 = vmax.f32 %v2020_v6, 0.0  ;;  %v2022_v42 = vadd.f32 %v7147_v53, %v1954_v54 }
 0x1bb   : > { %v1843_v7 = vmul.f32 %v8701_v12, %v1595_v59  ;;  %v1596_v13 = vsel %vm1580_vm4, %v1563_v51, %v1565_v34  ;;  %v1567_v17 = vrot.slane %v1152_v46, 1  ;;  %v2141_v47 = vpack.c.bf16 %v2075_v60, %v2073_v14  ;;  %v8708_v14 = vld [vmem:[#allocation43_spill] sm:$0xff]  ;;  %v8709_v59 = vld [vmem:[#allocation37_spill] sm:$0xff] }
 0x1bc   : > { %v1844_v39 = vmul.f32 %v8701_v12, %v1596_v13  ;;  %v1593_v11 = vsel %vm1580_vm4, %v1564_v43, %v1566_v45  ;;  %v2142_v61 = vpack.c.bf16 %v2076_v18, %v2074_v5  ;;  %v2077_v10 = vmax.f32 %v2021_v26, 0.0  ;;  %v8710_v18 = vld [vmem:[#allocation44_spill] sm:$0xff] }
 0x1bd   : > { %v1955_v9 = vadd.f32 %v8702_v23, %v1843_v7  ;;  %v1845_v49 = vmul.f32 %v8703_v22, %v1593_v11  ;;  %v1594_v52 = vsel %vm1580_vm4, %v1565_v34, %v1567_v17  ;;  %v2078_v29 = vmax.f32 %v2022_v42, 0.0 }
 0x1be   : > { %v1956_v25 = vadd.f32 %v8704_v58, %v1844_v39  ;;  %v1846_v35 = vmul.f32 %v8703_v22, %v1594_v52  ;;  %2338 = vmatprep.subr.bf16.mxu1 %v2142_v61 }
 0x1bf   : > { %v1957_v51 = vadd.f32 %v8705_v36, %v1845_v49  ;;  %v1156_v57 = vpop.f32.mrb[100].mxu0  ;;  %2339 = vmatpush1.bf16.msra.mxu1 %v2141_v47  ;;  %v2023_v63 = vadd.f32 %v7141_v41, %v1955_v9 }
 0x1c0   : > { %v1958_v27 = vadd.f32 %v8706_v16, %v1846_v35  ;;  %v1568_v62 = vrot.slane %v1156_v57, 1  ;;  %v1158_v55 = vpop.f32.mrb[101].mxu0  ;;  %v2024_v3 = vadd.f32 %v7147_v53, %v1956_v25  ;;  %v8712_v57 = vld [vmem:[#allocation41_spill] sm:$0xff] }
 0x1c1   : > { %v1569_v33 = vrot.slane %v1158_v55, 1  ;;  %v1160_v8 = vpop.f32.mrb[102].mxu0  ;;  %v2079_v4 = vmax.f32 %v2023_v63, 0.0  ;;  %v2025_v5 = vadd.f32 %v7141_v41, %v1957_v51 }
 0x1c2   : > { %v1591_v37 = vsel %vm1580_vm4, %v1566_v45, %v1568_v62  ;;  %v1570_v38 = vrot.slane %v1160_v8, 1  ;;  %v1162_v19 = vpop.f32.mrb[103].mxu0  ;;  %v2080_v15 = vmax.f32 %v2024_v3, 0.0  ;;  %v2026_v13 = vadd.f32 %v7147_v53, %v1958_v27  ;;  %v8713_v8 = vld [vmem:[#allocation47_spill] sm:$0xff] }
 0x1c3   : > { %v1847_v24 = vmul.f32 %v8707_v56, %v1591_v37  ;;  %v1592_v54 = vsel %vm1580_vm4, %v1567_v17, %v1569_v33  ;;  %v1571_v43 = vrot.slane %v1162_v19, 1  ;;  %v2143_v2 = vpack.c.bf16 %v2079_v4, %v2077_v10  ;;  %v8711_v17 = vld [vmem:[#allocation45_spill] sm:$0xff]  ;;  %v8714_v4 = vld [vmem:[#allocation46_spill] sm:$0xff] }
 0x1c4   : > { %v1848_v6 = vmul.f32 %v8707_v56, %v1592_v54  ;;  %v1589_v34 = vsel %vm1580_vm4, %v1568_v62, %v1570_v38  ;;  %v2144_v21 = vpack.c.bf16 %v2080_v15, %v2078_v29  ;;  %v2081_v26 = vmax.f32 %v2025_v5, 0.0  ;;  %v8715_v29 = vld [vmem:[#allocation48_spill] sm:$0xff]  ;;  %v5836_v54 = vld [vmem:[%s8587_s6 + $0x4] ss:$8 sps:$4 sm:$0xff]  }
 0x1c5   : > { %v1959_v60 = vadd.f32 %v8708_v14, %v1847_v24  ;;  %v1849_v45 = vmul.f32 %v8709_v59, %v1589_v34  ;;  %v1590_v46 = vsel %vm1580_vm4, %v1569_v33, %v1571_v43  ;;  %v2082_v36 = vmax.f32 %v2026_v13, 0.0  ;;  %v5834_v24 = vld [vmem:[%s8587_s6] ss:$8 sps:$4 sm:$0xff]   ;;  %2726 = vmatprep.subr.bf16.mxu0 %v5836_v54 }
 0x1c6   : > { %v1960_v12 = vadd.f32 %v8710_v18, %v1848_v6  ;;  %v1850_v7 = vmul.f32 %v8709_v59, %v1590_v46  ;;  %2340 = vmatprep.subr.bf16.mxu1 %v2144_v21  ;;  %v5839_v21 = vld [vmem:[%s8587_s6 + $0x14] ss:$8 sps:$4 sm:$0xff]   ;;  %2727 = vmatpush1.bf16.msra.mxu0 %v5834_v24 }
 0x1c7   : > { %v1961_v47 = vadd.f32 %v8711_v17, %v1849_v45  ;;  %v1166_v39 = vpop.f32.mrb[104].mxu0  ;;  %2341 = vmatpush1.bf16.msra.mxu1 %v2143_v2  ;;  %v2027_v11 = vadd.f32 %v7141_v41, %v1959_v60  ;;  %v5837_v17 = vld [vmem:[%s8587_s6 + $0x10] ss:$8 sps:$4 sm:$0xff]   ;;  %2728 = vmatprep.subr.bf16.mxu0 %v5839_v21 }
 0x1c8   : > { %v1962_v61 = vadd.f32 %v7059_v30, %v1850_v7  ;;  %v1572_v23 = vrot.slane %v1166_v39, 1  ;;  %v1168_v9 = vpop.f32.mrb[105].mxu0  ;;  %v2028_v22 = vadd.f32 %v7147_v53, %v1960_v12 }
 0x1c9   : > { %v1573_v49 = vrot.slane %v1168_v9, 1  ;;  %v1170_v52 = vpop.f32.mrb[106].mxu0  ;;  %v2083_v58 = vmax.f32 %v2027_v11, 0.0  ;;  %v2029_v19 = vadd.f32 %v7141_v41, %v1961_v47 }
 0x1ca   : > { %v1587_v25 = vsel %vm1580_vm4, %v1570_v38, %v1572_v23  ;;  %v1574_v35 = vrot.slane %v1170_v52, 1  ;;  %v1172_v42 = vpop.f32.mrb[107].mxu0  ;;  %v2084_v51 = vmax.f32 %v2028_v22, 0.0  ;;  %v2030_v33 = vadd.f32 %v7147_v53, %v1962_v61  ;;  %2729 = vmatpush1.bf16.msra.mxu0 %v5837_v17  ;;  %v5806_v17 = vld [vmem:[%s8586_s5 + $0x40] ss:$8 sps:$4 sm:$0xff]  }
 0x1cb   : > { %v1851_v63 = vmul.f32 %v8712_v57, %v1587_v25  ;;  %v1588_v30 = vsel %vm1580_vm4, %v1571_v43, %v1573_v49  ;;  %v1575_v16 = vrot.slane %v1172_v42, 1  ;;  %v2145_v27 = vpack.c.bf16 %v2083_v58, %v2081_v26  ;;  %v8716_v43 = vld [vmem:[#allocation49_spill] sm:$0xff]  ;;  %v1803_v26 = vpop.permute.xlu1 %1802  ;;  %v1798_v58 = vpop.permute.xlu0 %1797 }
 0x1cc   : > { %v1852_v62 = vmul.f32 %v8712_v57, %v1588_v30  ;;  %v1585_v55 = vsel %vm1580_vm4, %v1572_v23, %v1574_v35  ;;  %v2146_v3 = vpack.c.bf16 %v2084_v51, %v2082_v36  ;;  %v2086_v46 = vmax.f32 %v2030_v33, 0.0  ;;  %v5842_v23 = vld [vmem:[%s8587_s6 + $0x24] ss:$8 sps:$4 sm:$0xff]  }
 0x1cd   : > { %v1963_v10 = vadd.f32 %v8713_v8, %v1851_v63  ;;  %v1853_v37 = vmul.f32 %v8714_v4, %v1585_v55  ;;  %v1586_v38 = vsel %vm1580_vm4, %v1573_v49, %v1575_v16  ;;  %v2085_v12 = vmax.f32 %v2029_v19, 0.0  ;;  %2730 = vmatprep.subr.bf16.mxu0 %v5842_v23  ;;  %v5815_v23 = vld [vmem:[%s8586_s5 + $0x70] ss:$8 sps:$4 sm:$0xff]  }
 0x1ce   : > { %v1964_v15 = vadd.f32 %v8715_v29, %v1852_v62  ;;  %v1854_v56 = vmul.f32 %v8714_v4, %v1586_v38  ;;  %2342 = vmatprep.subr.bf16.mxu1 %v2146_v3  ;;  %v8717_v42 = vrot.slane %v7114_v1, 1  ;;  %v8719_v1 = vrot.slane %v7117_v44, 1 }
 0x1cf   : > { %v1965_v2 = vadd.f32 %v8716_v43, %v1853_v37  ;;  %v1176_v6 = vpop.f32.mrb[108].mxu0  ;;  %2343 = vmatpush1.bf16.msra.mxu1 %v2145_v27  ;;  %v2031_v34 = vadd.f32 %v7141_v41, %v1963_v10  ;;  %v8718_v27 = vld [vmem:[#allocation50_spill] sm:$0xff] }
 0x1d0   : > { %v1966_v14 = vadd.f32 %v7079_v0, %v1854_v56  ;;  %v1576_v60 = vrot.slane %v1176_v6, 1  ;;  %v1178_v59 = vpop.f32.mrb[109].mxu0  ;;  %v2032_v45 = vadd.f32 %v7147_v53, %v1964_v15 }
 0x1d1   : > { %v1577_v5 = vrot.slane %v1178_v59, 1  ;;  %v1180_v18 = vpop.f32.mrb[110].mxu0  ;;  %v2087_v7 = vmax.f32 %v2031_v34, 0.0  ;;  %v2033_v13 = vadd.f32 %v7141_v41, %v1965_v2 }
 0x1d2   : > { %v1583_v0 = vsel %vm1580_vm4, %v1574_v35, %v1576_v60  ;;  %v1578_v47 = vrot.slane %v1180_v18, 1  ;;  %v1182_v39 = vpop.f32.mrb[111].mxu0  ;;  %v2088_v11 = vmax.f32 %v2032_v45, 0.0  ;;  %v2034_v61 = vadd.f32 %v7147_v53, %v1966_v14  ;;  %v5795_v45 = vld [vmem:[%s8586_s5 + $0x14] ss:$8 sps:$4 sm:$0xff]  }
 0x1d3   : > { %v1855_v9 = vmul.f32 %v7077_v40, %v1583_v0  ;;  %v1584_v22 = vsel %vm1580_vm4, %v1575_v16, %v1577_v5  ;;  %v1579_v49 = vrot.slane %v1182_v39, 1  ;;  %v2147_v52 = vpack.c.bf16 %v2087_v7, %v2085_v12  ;;  %v5800_v18 = vld [vmem:[%s8586_s5 + $0x20] ss:$8 sps:$4 sm:$0xff]   ;;  %v5801_v12 = vld [vmem:[%s8586_s5 + $0x34] ss:$8 sps:$4 sm:$0xff]  }
 0x1d4   : > { %v1856_v25 = vmul.f32 %v7077_v40, %v1584_v22  ;;  %v1581_v35 = vsel %vm1580_vm4, %v1576_v60, %v1578_v47  ;;  %v1635_v36 = vsel %vm1580_vm4, %v1578_v47, %v8717_v42  ;;  %v2148_v51 = vpack.c.bf16 %v2088_v11, %v2086_v46  ;;  %v5840_v40 = vld [vmem:[%s8587_s6 + $0x20] ss:$8 sps:$4 sm:$0xff]   ;;  %v5797_v46 = vld [vmem:[%s8586_s5 + $0x10] ss:$8 sps:$4 sm:$0xff]   ;;  %v5807_v0 = vld [vmem:[%s8586_s5 + $0x54] ss:$8 sps:$4 sm:$0xff]  }
 0x1d5   : > { %v1967_v57 = vadd.f32 %v7081_v50, %v1855_v9  ;;  %v1857_v63 = vmul.f32 %v1798_v58, %v1581_v35  ;;  %v1859_v30 = vmul.f32 %v1803_v26, %v1635_v36  ;;  %v1582_v16 = vsel %vm1580_vm4, %v1577_v5, %v1579_v49  ;;  %v5845_v50 = vld [vmem:[%s8587_s6 + $0x34] ss:$8 sps:$4 sm:$0xff]   ;;  %2731 = vmatpush1.bf16.msra.mxu0 %v5840_v40  ;;  %v5846_v60 = vld [vmem:[%s8587_s6 + $0x40] ss:$8 sps:$4 sm:$0xff]   ;;  %v5798_v5 = vld [vmem:[%s8586_s5 + $0x24] ss:$8 sps:$4 sm:$0xff]  }
 0x1d6   : > { %v1968_v62 = vadd.f32 %v8718_v27, %v1856_v25  ;;  %v1636_v55 = vsel %vm1580_vm4, %v1579_v49, %v8719_v1  ;;  %v1858_v3 = vmul.f32 %v1798_v58, %v1582_v16  ;;  %2344 = vmatprep.subr.bf16.mxu1 %v2148_v51  ;;  %v2089_v38 = vmax.f32 %v2033_v13, 0.0  ;;  %2732 = vmatprep.subr.bf16.mxu0 %v5845_v50  ;;  %v5803_v7 = vld [vmem:[%s8586_s5 + $0x30] ss:$8 sps:$4 sm:$0xff]   ;;  %v5804_v13 = vld [vmem:[%s8586_s5 + $0x44] ss:$8 sps:$4 sm:$0xff]  }
 0x1d7   : > { %v1969_v33 = vadd.f32 %v7103_v20, %v1857_v63  ;;  %v1971_v8 = vadd.f32 %v7112_v32, %v1859_v30  ;;  %v1860_v10 = vmul.f32 %v1803_v26, %v1636_v55  ;;  %2345 = vmatpush1.bf16.msra.mxu1 %v2147_v52  ;;  %v2035_v4 = vadd.f32 %v7141_v41, %v1967_v57  ;;  %v5843_v20 = vld [vmem:[%s8587_s6 + $0x30] ss:$8 sps:$4 sm:$0xff]   ;;  %v5810_v39 = vld [vmem:[%s8586_s5 + $0x64] ss:$8 sps:$4 sm:$0xff]   ;;  %v5812_v11 = vld [vmem:[%s8586_s5 + $0x60] ss:$8 sps:$4 sm:$0xff]  }
 0x1d8   : > { %v1970_v44 = vadd.f32 %v7107_v28, %v1858_v3  ;;  %v2036_v37 = vadd.f32 %v7147_v53, %v1968_v62  ;;  %v2090_v32 = vmax.f32 %v2034_v61, 0.0  ;;  %v5848_v28 = vld [vmem:[%s8587_s6 + $0x44] ss:$8 sps:$4 sm:$0xff]   ;;  %v5809_v47 = vld [vmem:[%s8586_s5 + $0x50] ss:$8 sps:$4 sm:$0xff]   ;;  %v8720_v1 = vmov 0  }
 0x1d9   : > { %v1972_v19 = vadd.f32 %v7119_v31, %v1860_v10  ;;  %v2091_v29 = vmax.f32 %v2035_v4, 0.0  ;;  %v2037_v15 = vadd.f32 %v7141_v41, %v1969_v33  ;;  %v2039_v56 = vadd.f32 %v7141_v41, %v1971_v8  ;;  %2733 = vmatpush1.bf16.msra.mxu0 %v5843_v20  ;;  %v5813_v61 = vld [vmem:[%s8586_s5 + $0x74] ss:$8 sps:$4 sm:$0xff]   ;;  %v5816_v9 = vld [vmem:[%s8586_s5 + $0x84] ss:$8 sps:$4 sm:$0xff]  }
 0x1da   : > { %v2092_v24 = vmax.f32 %v2036_v37, 0.0  ;;  %v2038_v54 = vadd.f32 %v7147_v53, %v1970_v44  ;;  %2734 = vmatprep.subr.bf16.mxu0 %v5848_v28  ;;  %v5818_v22 = vld [vmem:[%s8586_s5 + $0x80] ss:$8 sps:$4 sm:$0xff]   ;;  %v5819_v49 = vld [vmem:[%s8586_s5 + $0x94] ss:$8 sps:$4 sm:$0xff]  }
 0x1db   : > { %v2149_v31 = vpack.c.bf16 %v2091_v29, %v2089_v38  ;;  %v2040_v43 = vadd.f32 %v7147_v53, %v1972_v19  ;;  %v2093_v2 = vmax.f32 %v2037_v15, 0.0  ;;  %v2095_v6 = vmax.f32 %v2039_v56, 0.0  ;;  %v5792_v53 = vld [vmem:[%s8586_s5] ss:$8 sps:$4 sm:$0xff]   ;;  %v5821_v52 = vld [vmem:[%s8586_s5 + $0x90] ss:$8 sps:$4 sm:$0xff]  }
 0x1dc   : > { %v2150_v41 = vpack.c.bf16 %v2092_v24, %v2090_v32  ;;  %v2094_v34 = vmax.f32 %v2038_v54, 0.0  ;;  %v5822_v26 = vld [vmem:[%s8586_s5 + $0xa4] ss:$8 sps:$4 sm:$0xff]   ;;  %v5824_v58 = vld [vmem:[%s8586_s5 + $0xa0] ss:$8 sps:$4 sm:$0xff]  }
 0x1dd   : > { %v2096_v21 = vmax.f32 %v2040_v43, 0.0  ;;  %v2151_v14 = vpack.c.bf16 %v2095_v6, %v2093_v2  ;;  %2735 = vmatpush1.bf16.msra.mxu0 %v5846_v60  ;;  %v5825_v25 = vld [vmem:[%s8586_s5 + $0xb4] ss:$8 sps:$4 sm:$0xff]   ;;  %v5827_v35 = vld [vmem:[%s8586_s5 + $0xb0] ss:$8 sps:$4 sm:$0xff]  }
 0x1de   : > { %2346 = vmatprep.subr.bf16.mxu1 %v2150_v41  ;;  %v5849_v42 = vld [vmem:[%s8587_s6 + $0x50] ss:$8 sps:$4 sm:$0xff]   ;;  %v5851_v36 = vld [vmem:[%s8587_s6 + $0x54] ss:$8 sps:$4 sm:$0xff]   ;;  %v5828_v51 = vld [vmem:[%s8586_s5 + $0xc4] ss:$8 sps:$4 sm:$0xff]  }
 0x1df   : > { %2347 = vmatpush1.bf16.msra.mxu1 %v2149_v31  ;;  %v2152_v59 = vpack.c.bf16 %v2096_v21, %v2094_v34  ;;  %2736 = vmatprep.subr.bf16.mxu0 %v5851_v36  ;;  %v5830_v57 = vld [vmem:[%s8586_s5 + $0xc0] ss:$8 sps:$4 sm:$0xff]   ;;  %v5854_v30 = vld [vmem:[%s8587_s6 + $0x64] ss:$8 sps:$4 sm:$0xff]   ;;  %v5831_v16 = vld [vmem:[%s8586_s5 + $0xd4] ss:$8 sps:$4 sm:$0xff]  }
 0x1e0   : > { %v5852_v63 = vld [vmem:[%s8587_s6 + $0x60] ss:$8 sps:$4 sm:$0xff]   ;;  %v5833_v40 = vld [vmem:[%s8586_s5 + $0xd0] ss:$8 sps:$4 sm:$0xff]   ;;  %v5857_v62 = vld [vmem:[%s8587_s6 + $0x74] ss:$8 sps:$4 sm:$0xff]  }
 0x1e1   : > { %2348 = vmatprep.subr.bf16.mxu1 %v2152_v59  ;;  %2737 = vmatpush1.bf16.msra.mxu0 %v5849_v42  ;;  %v5855_v27 = vld [vmem:[%s8587_s6 + $0x70] ss:$8 sps:$4 sm:$0xff]   ;;  %v5858_v55 = vld [vmem:[%s8587_s6 + $0x80] ss:$8 sps:$4 sm:$0xff]   ;;  %v5860_v3 = vld [vmem:[%s8587_s6 + $0x84] ss:$8 sps:$4 sm:$0xff]  }
 0x1e2   : > { %2738 = vmatprep.subr.bf16.mxu0 %v5854_v30  ;;  %v5861_v50 = vld [vmem:[%s8587_s6 + $0x90] ss:$8 sps:$4 sm:$0xff]   ;;  %v5863_v33 = vld [vmem:[%s8587_s6 + $0x94] ss:$8 sps:$4 sm:$0xff]   ;;  %v5864_v8 = vld [vmem:[%s8587_s6 + $0xa0] ss:$8 sps:$4 sm:$0xff]  }
 0x1e3   : > { %2349 = vmatpush1.bf16.msra.mxu1 %v2151_v14  ;;  %v5866_v10 = vld [vmem:[%s8587_s6 + $0xa4] ss:$8 sps:$4 sm:$0xff]   ;;  %v5867_v4 = vld [vmem:[%s8587_s6 + $0xb0] ss:$8 sps:$4 sm:$0xff]   ;;  %v5869_v44 = vld [vmem:[%s8587_s6 + $0xb4] ss:$8 sps:$4 sm:$0xff]  }
 0x1e4   : > { %v5870_v37 = vld [vmem:[%s8587_s6 + $0xc0] ss:$8 sps:$4 sm:$0xff]   ;;  %v5872_v38 = vld [vmem:[%s8587_s6 + $0xc4] ss:$8 sps:$4 sm:$0xff]   ;;  %v5873_v19 = vld [vmem:[%s8587_s6 + $0xd0] ss:$8 sps:$4 sm:$0xff]  }
 0x1e5   : > { %2739 = vmatpush1.bf16.msra.mxu0 %v5852_v63  ;;  %v5875_v29 = vld [vmem:[%s8587_s6 + $0xd4] ss:$8 sps:$4 sm:$0xff]   ;;  %v5876_v15 = vld [vmem:[%s8588_s7] ss:$24 sps:$4 sm:$0xff]   ;;  %v5879_v32 = vld [vmem:[%s8588_s7 + $0x30] ss:$24 sps:$4 sm:$0xff]  }
 0x1e6   : > { %2355 = vmatmul.mubr.bf16.vlgmr.msra.gmra.mrb[56].mxu1 %v5792_v53  ;;  %2740 = vmatprep.subr.bf16.mxu0 %v5857_v62  ;;  %v5878_v56 = vld [vmem:[%s8588_s7 + $0x4] ss:$24 sps:$4 sm:$0xff]   ;;  %v5881_v20 = vld [vmem:[%s8588_s7 + $0x34] ss:$24 sps:$4 sm:$0xff]   ;;  %v5882_v28 = vld [vmem:[%s8588_s7 + $0x60] ss:$24 sps:$4 sm:$0xff]  }
 0x1e7   : > { %5261 = vmatprep.mubr.msk.bf16.mxu1 %vm2279_vm3, %v5795_v45  ;;  %3138 = vmatprep.subr.bf16.mxu1 %v5878_v56  ;;  %v5884_v24 = vld [vmem:[%s8588_s7 + $0x64] ss:$24 sps:$4 sm:$0xff]   ;;  %v5887_v31 = vld [vmem:[%s8588_s7 + $0x94] ss:$24 sps:$4 sm:$0xff]   ;;  %v5885_v43 = vld [vmem:[%s8588_s7 + $0x90] ss:$24 sps:$4 sm:$0xff]  }
 0x1e8   : > { %3139 = vmatpush1.bf16.msra.mxu1 %v5876_v15  ;;  %v5896_v54 = vld [vmem:[%s8588_s7 + $0xc] ss:$24 sps:$4 sm:$0xff]   ;;  %v5888_v41 = vld [vmem:[%s8588_s7 + $0xc0] ss:$24 sps:$4 sm:$0xff]   ;;  %v5891_v59 = vld [vmem:[%s8588_s7 + $0xf0] ss:$24 sps:$4 sm:$0xff]  }
 0x1e9   : > { %2741 = vmatpush1.bf16.msra.mxu0 %v5855_v27  ;;  %3140 = vmatprep.subr.bf16.mxu1 %v5881_v20  ;;  %v5890_v2 = vld [vmem:[%s8588_s7 + $0xc4] ss:$24 sps:$4 sm:$0xff]   ;;  %v5893_v21 = vld [vmem:[%s8588_s7 + $0xf4] ss:$24 sps:$4 sm:$0xff]  }
 0x1ea   : > { %2742 = vmatprep.subr.bf16.mxu0 %v5860_v3  ;;  %v5905_v53 = vld [vmem:[%s8588_s7 + $0x124] ss:$24 sps:$4 sm:$0xff]  }
 0x1eb   : > { %v5902_v56 = vld [vmem:[%s8588_s7 + $0x6c] ss:$24 sps:$4 sm:$0xff]  }
 0x1ec   : > { %3141 = vmatpush1.bf16.msra.mxu1 %v5879_v32 }
 0x1ed   : > { %2743 = vmatpush1.bf16.msra.mxu0 %v5858_v55  ;;  %3142 = vmatprep.subr.bf16.mxu1 %v5884_v24 }
 0x1ee   : > { %2365 = vmatmul.mubr.bf16.gmra.mrb[60].mxu1 %v5797_v46  ;;  %2744 = vmatprep.subr.bf16.mxu0 %v5863_v33  ;;  %v5903_v46 = vld [vmem:[%s8588_s7 + $0x120] ss:$24 sps:$4 sm:$0xff]  }
 0x1ef   : > { %5262 = vmatprep.mubr.msk.bf16.mxu1 %vm2279_vm3, %v5798_v5  ;;  %v5894_v33 = vld [vmem:[%s8588_s7 + $0x8] ss:$24 sps:$4 sm:$0xff]  }
 0x1f0   : > { %3143 = vmatpush1.bf16.msra.mxu1 %v5882_v28  ;;  %v5908_v28 = vld [vmem:[%s8588_s7 + $0x9c] ss:$24 sps:$4 sm:$0xff]  }
 0x1f1   : > { %2745 = vmatpush1.bf16.msra.mxu0 %v5861_v50  ;;  %3144 = vmatprep.subr.bf16.mxu1 %v5887_v31 }
 0x1f2   : > { %2746 = vmatprep.subr.bf16.mxu0 %v5866_v10 }
 0x1f4   : > { %3145 = vmatpush1.bf16.msra.mxu1 %v5885_v43 }
 0x1f5   : > { %2747 = vmatpush1.bf16.msra.mxu0 %v5864_v8  ;;  %3146 = vmatprep.subr.bf16.mxu1 %v5890_v2  ;;  %v5899_v8 = vld [vmem:[%s8588_s7 + $0x3c] ss:$24 sps:$4 sm:$0xff]  }
 0x1f6   : > { %2375 = vmatmul.mubr.bf16.gmra.mrb[64].mxu1 %v5800_v18  ;;  %2748 = vmatprep.subr.bf16.mxu0 %v5869_v44 }
 0x1f7   : > { %5263 = vmatprep.mubr.msk.bf16.mxu1 %vm2279_vm3, %v5801_v12 }
 0x1f8   : > { %3147 = vmatpush1.bf16.msra.mxu1 %v5888_v41 }
 0x1f9   : > { %2749 = vmatpush1.bf16.msra.mxu0 %v5867_v4  ;;  %3148 = vmatprep.subr.bf16.mxu1 %v5893_v21 }
 0x1fa   : > { %2750 = vmatprep.subr.bf16.mxu0 %v5872_v38 }
 0x1fc   : > { %3149 = vmatpush1.bf16.msra.mxu1 %v5891_v59 }
 0x1fd   : > { %2751 = vmatpush1.bf16.msra.mxu0 %v5870_v37  ;;  %3150 = vmatprep.subr.bf16.mxu1 %v5905_v53 }
 0x1fe   : > { %2385 = vmatmul.mubr.bf16.gmra.mrb[68].mxu1 %v5803_v7  ;;  %2752 = vmatprep.subr.bf16.mxu0 %v5875_v29 }
 0x1ff   : > { %5264 = vmatprep.mubr.msk.bf16.mxu1 %vm2279_vm3, %v5804_v13 }
 0x200   : > { %3151 = vmatpush1.bf16.msra.mxu1 %v5903_v46  ;;  %v5909_v46 = vld [vmem:[%s8588_s7 + $0xc8] ss:$24 sps:$4 sm:$0xff]  }
 0x201   : > { %2753 = vmatpush1.bf16.msra.mxu0 %v5873_v19  ;;  %v5897_v19 = vld [vmem:[%s8588_s7 + $0x38] ss:$24 sps:$4 sm:$0xff]  }
 0x202   : > { %3241 = vmatprep.subr.bf16.mxu0 %v5896_v54  ;;  %v5900_v54 = vld [vmem:[%s8588_s7 + $0x68] ss:$24 sps:$4 sm:$0xff]  }
 0x206   : > { %2395 = vmatmul.mubr.bf16.gmra.mrb[72].mxu1 %v5806_v17 }
 0x207   : > { %5265 = vmatprep.mubr.msk.bf16.mxu1 %vm2279_vm3, %v5807_v0 }
 0x20e   : > { %2405 = vmatmul.mubr.bf16.gmra.mrb[76].mxu1 %v5809_v47 }
 0x20f   : > { %5266 = vmatprep.mubr.msk.bf16.mxu1 %vm2279_vm3, %v5810_v39 }
 0x216   : > { %2415 = vmatmul.mubr.bf16.gmra.mrb[80].mxu1 %v5812_v11 }
 0x217   : > { %5267 = vmatprep.mubr.msk.bf16.mxu1 %vm2279_vm3, %v5813_v61 }
 0x21e   : > { %2425 = vmatmul.mubr.bf16.gmra.mrb[84].mxu1 %v5815_v23 }
 0x21f   : > { %5268 = vmatprep.mubr.msk.bf16.mxu1 %vm2279_vm3, %v5816_v9 }
 0x226   : > { %2435 = vmatmul.mubr.bf16.gmra.mrb[88].mxu1 %v5818_v22 }
 0x227   : > { %5269 = vmatprep.mubr.msk.bf16.mxu1 %vm2279_vm3, %v5819_v49 }
 0x22e   : > { %2445 = vmatmul.mubr.bf16.gmra.mrb[92].mxu1 %v5821_v52 }
 0x22f   : > { %5270 = vmatprep.mubr.msk.bf16.mxu1 %vm2279_vm3, %v5822_v26 }
 0x236   : > { %2455 = vmatmul.mubr.bf16.gmra.mrb[96].mxu1 %v5824_v58 }
 0x237   : > { %5271 = vmatprep.mubr.msk.bf16.mxu1 %vm2279_vm3, %v5825_v25 }
 0x23e   : > { %2465 = vmatmul.mubr.bf16.gmra.mrb[100].mxu1 %v5827_v35 }
 0x23f   : > { %5272 = vmatprep.mubr.msk.bf16.mxu1 %vm2279_vm3, %v5828_v51 }
 0x246   : > { %2475 = vmatmul.mubr.bf16.gmra.mrb[104].mxu1 %v5830_v57 }
 0x247   : > { %5273 = vmatprep.mubr.msk.bf16.mxu1 %vm2279_vm3, %v5831_v16 }
 0x24e   : > { %2485 = vmatmul.mubr.bf16.gmra.mrb[108].mxu1 %v5833_v40 }
 0x24f   : > { %3170 = vmatprep.mubr.bf16.mxu1 %v8720_v1 }
 0x2b9   : > { %v2356_v6 = vpop.f32.mrb[56].mxu1 }
 0x2ba   : > { %v2358_v34 = vpop.f32.mrb[57].mxu1 }
 0x2bb   : > { %v2360_v14 = vpop.f32.mrb[58].mxu1 }
 0x2bc   : > { %v2362_v60 = vpop.f32.mrb[59].mxu1 }
 0x2c1   : > { %v2366_v45 = vpop.f32.mrb[60].mxu1 }
 0x2c2   : > { %v2368_v5 = vpop.f32.mrb[61].mxu1 }
 0x2c3   : > { %v2370_v18 = vpop.f32.mrb[62].mxu1 }
 0x2c4   : > { %v2372_v12 = vpop.f32.mrb[63].mxu1 }
 0x2c9   : > { %v7643_v7 = vpop.f32.mrb[64].mxu1 }
 0x2ca   : > { %v7645_v13 = vpop.f32.mrb[65].mxu1 }
 0x2cb   : > { %v7647_v17 = vpop.f32.mrb[66].mxu1 }
 0x2cc   : > { %v7649_v0 = vpop.f32.mrb[67].mxu1 }
 0x2d1   : > { %v7651_v47 = vpop.f32.mrb[68].mxu1 }
 0x2d2   : > { %v7653_v39 = vpop.f32.mrb[69].mxu1 }
 0x2d3   : > { %v7655_v11 = vpop.f32.mrb[70].mxu1 }
 0x2d4   : > { %v7657_v61 = vpop.f32.mrb[71].mxu1 }
 0x2d9   : > { %v7659_v23 = vpop.f32.mrb[72].mxu1 }
 0x2da   : > { %v7661_v9 = vpop.f32.mrb[73].mxu1 }
 0x2db   : > { %v7663_v22 = vpop.f32.mrb[74].mxu1 }
 0x2dc   : > { %v7665_v49 = vpop.f32.mrb[75].mxu1 }
 0x2e1   : > { %v7667_v52 = vpop.f32.mrb[76].mxu1 }
 0x2e2   : > { %v7669_v26 = vpop.f32.mrb[77].mxu1 }
 0x2e3   : > { %v7671_v58 = vpop.f32.mrb[78].mxu1 }
 0x2e4   : > { %v7673_v25 = vpop.f32.mrb[79].mxu1 }
 0x2e9   : > { %v7675_v35 = vpop.f32.mrb[80].mxu1 }
 0x2ea   : > { %v7677_v42 = vpop.f32.mrb[81].mxu1 }
 0x2eb   : > { %v7679_v36 = vpop.f32.mrb[82].mxu1 }
 0x2ec   : > { %v7681_v51 = vpop.f32.mrb[83].mxu1 }
 0x2f1   : > { %v2426_v57 = vpop.f32.mrb[84].mxu1 }
 0x2f2   : > { %v2495_v63 = vmax.f32 %v2356_v6, %v2426_v57  ;;  %v2428_v30 = vpop.f32.mrb[85].mxu1 }
 0x2f3   : > { %v2496_v16 = vmax.f32 %v2358_v34, %v2428_v30  ;;  %v2430_v40 = vpop.f32.mrb[86].mxu1  ;;  %v5906_v34 = vld [vmem:[%s8588_s7 + $0x98] ss:$24 sps:$4 sm:$0xff]  }
 0x2f4   : > { %v2497_v27 = vmax.f32 %v2360_v14, %v2430_v40  ;;  %v2432_v62 = vpop.f32.mrb[87].mxu1 }
 0x2f5   : > { %v2498_v55 = vmax.f32 %v2362_v60, %v2432_v62  ;;  %v5911_v60 = vld [vmem:[%s8588_s7 + $0xcc] ss:$24 sps:$4 sm:$0xff]  }
 0x2f6   : > { %v2523_v3 = vpack.c.bf16 %v2497_v27, %v2495_v63 }
 0x2f7   : > { %v2524_v50 = vpack.c.bf16 %v2498_v55, %v2496_v16 }
 0x2f9   : > { %v2436_v10 = vpop.f32.mrb[88].mxu1  ;;  %5302 = vmatprep.mubr.msk.bf16.mxu0 %vm2279_vm3, %v2524_v50 }
 0x2fa   : > { %v2499_v4 = vmax.f32 %v2366_v45, %v2436_v10  ;;  %v2438_v44 = vpop.f32.mrb[89].mxu1  ;;  %2759 = vmatmul.mubr.bf16.vlgmr.msra.gmra.mrb[112].mxu0 %v2523_v3 }
 0x2fb   : > { %v2500_v37 = vmax.f32 %v2368_v5, %v2438_v44  ;;  %v2440_v38 = vpop.f32.mrb[90].mxu1  ;;  %3242 = vmatpush1.bf16.msra.mxu0 %v5894_v33  ;;  %v5914_v5 = vld [vmem:[%s8588_s7 + $0xfc] ss:$24 sps:$4 sm:$0xff]  }
 0x2fc   : > { %v2501_v29 = vmax.f32 %v2370_v18, %v2440_v38  ;;  %v2442_v15 = vpop.f32.mrb[91].mxu1  ;;  %3243 = vmatprep.subr.bf16.mxu0 %v5899_v8 }
 0x2fd   : > { %v2502_v20 = vmax.f32 %v2372_v12, %v2442_v15 }
 0x2fe   : > { %v2525_v32 = vpack.c.bf16 %v2501_v29, %v2499_v4 }
 0x2ff   : > { %v2526_v24 = vpack.c.bf16 %v2502_v20, %v2500_v37  ;;  %3244 = vmatpush1.bf16.msra.mxu0 %v5897_v19 }
 0x300   : > { %3245 = vmatprep.subr.bf16.mxu0 %v5902_v56 }
 0x301   : > { %v2446_v31 = vpop.f32.mrb[92].mxu1  ;;  %5303 = vmatprep.mubr.msk.bf16.mxu0 %vm2279_vm3, %v2526_v24 }
 0x302   : > { %v2503_v43 = vmax.f32 %v7643_v7, %v2446_v31  ;;  %v2448_v2 = vpop.f32.mrb[93].mxu1  ;;  %2769 = vmatmul.mubr.bf16.gmra.mrb[116].mxu0 %v2525_v32 }
 0x303   : > { %v2504_v6 = vmax.f32 %v7645_v13, %v2448_v2  ;;  %v2450_v41 = vpop.f32.mrb[94].mxu1  ;;  %3246 = vmatpush1.bf16.msra.mxu0 %v5900_v54  ;;  %v5923_v54 = vld [vmem:[%s8588_s7 + $0x15c] ss:$24 sps:$4 sm:$0xff]  }
 0x304   : > { %v2505_v21 = vmax.f32 %v7647_v17, %v2450_v41  ;;  %v2452_v14 = vpop.f32.mrb[95].mxu1  ;;  %3247 = vmatprep.subr.bf16.mxu0 %v5908_v28  ;;  %v5926_v28 = vld [vmem:[%s8588_s7 + $0x14] ss:$24 sps:$4 sm:$0xff]  }
 0x305   : > { %v2506_v59 = vmax.f32 %v7649_v0, %v2452_v14  ;;  %v5912_v0 = vld [vmem:[%s8588_s7 + $0xf8] ss:$24 sps:$4 sm:$0xff]  }
 0x306   : > { %v2527_v53 = vpack.c.bf16 %v2505_v21, %v2503_v43  ;;  %v5924_v14 = vld [vmem:[%s8588_s7 + $0x10] ss:$24 sps:$4 sm:$0xff]  }
 0x307   : > { %v2528_v45 = vpack.c.bf16 %v2506_v59, %v2504_v6  ;;  %3248 = vmatpush1.bf16.msra.mxu0 %v5906_v34 }
 0x308   : > { %3249 = vmatprep.subr.bf16.mxu0 %v5911_v60  ;;  %v5929_v60 = vld [vmem:[%s8588_s7 + $0x44] ss:$24 sps:$4 sm:$0xff]  }
 0x309   : > { %v2456_v18 = vpop.f32.mrb[96].mxu1  ;;  %5304 = vmatprep.mubr.msk.bf16.mxu0 %vm2279_vm3, %v2528_v45 }
 0x30a   : > { %v2507_v12 = vmax.f32 %v7651_v47, %v2456_v18  ;;  %v2458_v7 = vpop.f32.mrb[97].mxu1  ;;  %2779 = vmatmul.mubr.bf16.gmra.mrb[120].mxu0 %v2527_v53 }
 0x30b   : > { %v2508_v13 = vmax.f32 %v7653_v39, %v2458_v7  ;;  %v2460_v17 = vpop.f32.mrb[98].mxu1  ;;  %3250 = vmatpush1.bf16.msra.mxu0 %v5909_v46 }
 0x30c   : > { %v2509_v57 = vmax.f32 %v7655_v11, %v2460_v17  ;;  %v2462_v63 = vpop.f32.mrb[99].mxu1  ;;  %3251 = vmatprep.subr.bf16.mxu0 %v5914_v5  ;;  %v5927_v5 = vld [vmem:[%s8588_s7 + $0x40] ss:$24 sps:$4 sm:$0xff]   ;;  %v5930_v17 = vld [vmem:[%s8588_s7 + $0x70] ss:$24 sps:$4 sm:$0xff]  }
 0x30d   : > { %v2510_v30 = vmax.f32 %v7657_v61, %v2462_v63 }
 0x30e   : > { %v2529_v16 = vpack.c.bf16 %v2509_v57, %v2507_v12  ;;  %v5932_v12 = vld [vmem:[%s8588_s7 + $0x74] ss:$24 sps:$4 sm:$0xff]  }
 0x30f   : > { %v2530_v40 = vpack.c.bf16 %v2510_v30, %v2508_v13  ;;  %3252 = vmatpush1.bf16.msra.mxu0 %v5912_v0  ;;  %v5935_v0 = vld [vmem:[%s8588_s7 + $0xa4] ss:$24 sps:$4 sm:$0xff]  }
 0x311   : > { %v2466_v47 = vpop.f32.mrb[100].mxu1  ;;  %5305 = vmatprep.mubr.msk.bf16.mxu0 %vm2279_vm3, %v2530_v40  ;;  %v5933_v40 = vld [vmem:[%s8588_s7 + $0xa0] ss:$24 sps:$4 sm:$0xff]  }
 0x312   : > { %v2511_v39 = vmax.f32 %v7659_v23, %v2466_v47  ;;  %v2468_v27 = vpop.f32.mrb[101].mxu1  ;;  %2789 = vmatmul.mubr.bf16.gmra.mrb[124].mxu0 %v2529_v16 }
 0x313   : > { %v2512_v62 = vmax.f32 %v7661_v9, %v2468_v27  ;;  %v2470_v55 = vpop.f32.mrb[102].mxu1 }
 0x314   : > { %v2513_v3 = vmax.f32 %v7663_v22, %v2470_v55  ;;  %v2472_v11 = vpop.f32.mrb[103].mxu1  ;;  %v5936_v55 = vld [vmem:[%s8588_s7 + $0xd0] ss:$24 sps:$4 sm:$0xff]  }
 0x315   : > { %v2514_v50 = vmax.f32 %v7665_v49, %v2472_v11 }
 0x316   : > { %v2531_v33 = vpack.c.bf16 %v2513_v3, %v2511_v39  ;;  %v5938_v39 = vld [vmem:[%s8588_s7 + $0xd4] ss:$24 sps:$4 sm:$0xff]   ;;  %v5941_v3 = vld [vmem:[%s8588_s7 + $0x104] ss:$24 sps:$4 sm:$0xff]  }
 0x317   : > { %v2532_v61 = vpack.c.bf16 %v2514_v50, %v2512_v62 }
 0x319   : > { %v2476_v8 = vpop.f32.mrb[104].mxu1  ;;  %5306 = vmatprep.mubr.msk.bf16.mxu0 %vm2279_vm3, %v2532_v61 }
 0x31a   : > { %v2515_v10 = vmax.f32 %v7667_v52, %v2476_v8  ;;  %v2478_v4 = vpop.f32.mrb[105].mxu1  ;;  %2799 = vmatmul.mubr.bf16.gmra.mrb[128].mxu0 %v2531_v33  ;;  %v5939_v8 = vld [vmem:[%s8588_s7 + $0x100] ss:$24 sps:$4 sm:$0xff]  }
 0x31b   : > { %v2516_v23 = vmax.f32 %v7669_v26, %v2478_v4  ;;  %v2480_v44 = vpop.f32.mrb[106].mxu1  ;;  %v5944_v4 = vld [vmem:[%s8588_s7 + $0x134] ss:$24 sps:$4 sm:$0xff]  }
 0x31c   : > { %v2517_v9 = vmax.f32 %v7671_v58, %v2480_v44  ;;  %v2482_v37 = vpop.f32.mrb[107].mxu1 }
 0x31d   : > { %v2518_v22 = vmax.f32 %v7673_v25, %v2482_v37  ;;  %v5915_v25 = vld [vmem:[%s8588_s7 + $0x128] ss:$24 sps:$4 sm:$0xff]   ;;  %v5947_v37 = vld [vmem:[%s8588_s7 + $0x164] ss:$24 sps:$4 sm:$0xff]  }
 0x31e   : > { %v2533_v38 = vpack.c.bf16 %v2517_v9, %v2515_v10  ;;  %v5942_v9 = vld [vmem:[%s8588_s7 + $0x130] ss:$24 sps:$4 sm:$0xff]  }
 0x31f   : > { %v2534_v19 = vpack.c.bf16 %v2518_v22, %v2516_v23 }
 0x321   : > { %v2486_v49 = vpop.f32.mrb[108].mxu1  ;;  %5307 = vmatprep.mubr.msk.bf16.mxu0 %vm2279_vm3, %v2534_v19 }
 0x322   : > { %v2519_v29 = vmax.f32 %v7675_v35, %v2486_v49  ;;  %v2488_v15 = vpop.f32.mrb[109].mxu1  ;;  %2809 = vmatmul.mubr.bf16.gmra.mrb[132].mxu0 %v2533_v38  ;;  %v5917_v35 = vld [vmem:[%s8588_s7 + $0x12c] ss:$24 sps:$4 sm:$0xff]  }
 0x323   : > { %v2520_v52 = vmax.f32 %v7677_v42, %v2488_v15  ;;  %v2490_v56 = vpop.f32.mrb[110].mxu1  ;;  %3253 = vmatprep.subr.bf16.mxu0 %v5917_v35  ;;  %v5918_v42 = vld [vmem:[%s8588_s7 + $0x150] ss:$24 sps:$4 sm:$0xff]  }
 0x324   : > { %v2521_v26 = vmax.f32 %v7679_v36, %v2490_v56  ;;  %v2492_v20 = vpop.f32.mrb[111].mxu1  ;;  %v5920_v36 = vld [vmem:[%s8588_s7 + $0x154] ss:$24 sps:$4 sm:$0xff]   ;;  %3254 = vmatpush1.bf16.msra.mxu0 %v5915_v25 }
 0x325   : > { %v2522_v58 = vmax.f32 %v7681_v51, %v2492_v20  ;;  %3152 = vmatprep.subr.bf16.mxu1 %v5920_v36  ;;  %v5921_v51 = vld [vmem:[%s8588_s7 + $0x158] ss:$24 sps:$4 sm:$0xff]   ;;  %3255 = vmatprep.subr.bf16.mxu0 %v5923_v54 }
 0x326   : > { %v2535_v32 = vpack.c.bf16 %v2521_v26, %v2519_v29  ;;  %3153 = vmatpush1.bf16.msra.mxu1 %v5918_v42  ;;  %v5945_v29 = vld [vmem:[%s8588_s7 + $0x160] ss:$24 sps:$4 sm:$0xff]  }
 0x327   : > { %v2536_v24 = vpack.c.bf16 %v2522_v58, %v2520_v52  ;;  %3344 = vmatprep.subr.bf16.mxu1 %v5926_v28 }
 0x328   : > { %3256 = vmatpush1.bf16.msra.mxu0 %v5921_v51 }
 0x329   : > { %5308 = vmatprep.mubr.msk.bf16.mxu0 %vm2279_vm3, %v2536_v24 }
 0x32a   : > { %2819 = vmatmul.mubr.bf16.gmra.mrb[136].mxu0 %v2535_v32 }
 0x32b   : > { %3273 = vmatprep.mubr.bf16.mxu0 %v8720_v1 }
 0x3cd   : > { %v2760_v31 = vpop.f32.mrb[112].mxu0 }
 0x3ce   : > { %v2762_v43 = vpop.f32.mrb[113].mxu0 }
 0x3cf   : > { %v2829_v2 = vmax.f32 %v2760_v31, %v2762_v43  ;;  %v2764_v6 = vpop.f32.mrb[114].mxu0 }
 0x3d0   : > { %v2766_v41 = vpop.f32.mrb[115].mxu0 }
 0x3d1   : > { %v2830_v34 = vmax.f32 %v2764_v6, %v2766_v41  ;;  %v3525_v6 = vpop.permute.xlu1 %3524 }
 0x3d3   : > { %v7765_v21 = vpack.c.bf16 %v2830_v34, %v2829_v2  ;;  %v7845_v2 = vpop.permute.xlu0 %3519 }
 0x3d5   : > { %v2770_v59 = vpop.f32.mrb[116].mxu0  ;;  %3171 = vmatmul.mubr.bf16.vlgmr.msra.gmra.mrb[112].mxu1 %v7765_v21  ;;  %3274 = vmatmul.mubr.bf16.vlgmr.msra.gmra.mrb[140].mxu0 %v7765_v21  ;;  %v7849_v34 = vpop.permute.xlu1 %3692 }
 0x3d6   : > { %v2772_v53 = vpop.f32.mrb[117].mxu0  ;;  %3180 = vmatprep.mubr.bf16.mxu1 %v8720_v1  ;;  %3283 = vmatprep.mubr.bf16.mxu0 %v8720_v1 }
 0x3d7   : > { %v2831_v45 = vmax.f32 %v2770_v59, %v2772_v53  ;;  %v2774_v46 = vpop.f32.mrb[118].mxu0  ;;  %3345 = vmatpush1.bf16.msra.mxu1 %v5924_v14  ;;  %v7847_v41 = vpop.permute.xlu0 %3687 }
 0x3d8   : > { %v2776_v18 = vpop.f32.mrb[119].mxu0  ;;  %3346 = vmatprep.subr.bf16.mxu1 %v5929_v60 }
 0x3d9   : > { %v2832_v7 = vmax.f32 %v2774_v46, %v2776_v18  ;;  %v3535_v14 = vpop.permute.xlu1 %3534 }
 0x3db   : > { %v7783_v13 = vpack.c.bf16 %v2832_v7, %v2831_v45  ;;  %3347 = vmatpush1.bf16.msra.mxu1 %v5927_v5 }
 0x3dc   : > { %3348 = vmatprep.subr.bf16.mxu1 %v5932_v12 }
 0x3dd   : > { %v2780_v57 = vpop.f32.mrb[120].mxu0  ;;  %3181 = vmatmul.mubr.bf16.gmra.mrb[116].mxu1 %v7783_v13  ;;  %3284 = vmatmul.mubr.bf16.gmra.mrb[144].mxu0 %v7783_v13  ;;  %v7853_v59 = vpop.permute.xlu1 %3702 }
 0x3de   : > { %v2782_v63 = vpop.f32.mrb[121].mxu0  ;;  %3190 = vmatprep.mubr.bf16.mxu1 %v8720_v1  ;;  %3293 = vmatprep.mubr.bf16.mxu0 %v8720_v1 }
 0x3df   : > { %v2833_v30 = vmax.f32 %v2780_v57, %v2782_v63  ;;  %v2784_v16 = vpop.f32.mrb[122].mxu0  ;;  %3349 = vmatpush1.bf16.msra.mxu1 %v5930_v17 }
 0x3e0   : > { %v2786_v47 = vpop.f32.mrb[123].mxu0  ;;  %3350 = vmatprep.subr.bf16.mxu1 %v5935_v0 }
 0x3e1   : > { %v2834_v27 = vmax.f32 %v2784_v16, %v2786_v47  ;;  %v7857_v45 = vpop.permute.xlu1 %3544 }
 0x3e3   : > { %v7801_v62 = vpack.c.bf16 %v2834_v27, %v2833_v30  ;;  %3351 = vmatpush1.bf16.msra.mxu1 %v5933_v40 }
 0x3e4   : > { %3352 = vmatprep.subr.bf16.mxu1 %v5938_v39 }
 0x3e5   : > { %v2790_v11 = vpop.f32.mrb[124].mxu0  ;;  %3191 = vmatmul.mubr.bf16.gmra.mrb[120].mxu1 %v7801_v62  ;;  %3294 = vmatmul.mubr.bf16.gmra.mrb[148].mxu0 %v7801_v62  ;;  %v7861_v5 = vpop.permute.xlu1 %3712 }
 0x3e6   : > { %v2792_v50 = vpop.f32.mrb[125].mxu0  ;;  %3200 = vmatprep.mubr.bf16.mxu1 %v8720_v1  ;;  %3303 = vmatprep.mubr.bf16.mxu0 %v8720_v1 }
 0x3e7   : > { %v2835_v33 = vmax.f32 %v2790_v11, %v2792_v50  ;;  %v2794_v61 = vpop.f32.mrb[126].mxu0  ;;  %3353 = vmatpush1.bf16.msra.mxu1 %v5936_v55 }
 0x3e8   : > { %v2796_v10 = vpop.f32.mrb[127].mxu0  ;;  %3354 = vmatprep.subr.bf16.mxu1 %v5941_v3 }
 0x3e9   : > { %v2836_v23 = vmax.f32 %v2794_v61, %v2796_v10  ;;  %v7883_v3 = vpop.permute.xlu1 %3554 }
 0x3eb   : > { %v2846_v44 = vpack.c.bf16 %v2836_v23, %v2835_v33  ;;  %3355 = vmatpush1.bf16.msra.mxu1 %v5939_v8 }
 0x3ec   : > { %3356 = vmatprep.subr.bf16.mxu1 %v5944_v4 }
 0x3ed   : > { %v2800_v22 = vpop.f32.mrb[128].mxu0  ;;  %3201 = vmatmul.mubr.bf16.gmra.mrb[124].mxu1 %v2846_v44  ;;  %3304 = vmatmul.mubr.bf16.gmra.mrb[152].mxu0 %v2846_v44 }
 0x3ee   : > { %v2802_v38 = vpop.f32.mrb[129].mxu0  ;;  %3210 = vmatprep.mubr.bf16.mxu1 %v8720_v1  ;;  %3313 = vmatprep.mubr.bf16.mxu0 %v8720_v1 }
 0x3ef   : > { %v2837_v19 = vmax.f32 %v2800_v22, %v2802_v38  ;;  %v2804_v49 = vpop.f32.mrb[130].mxu0  ;;  %3357 = vmatpush1.bf16.msra.mxu1 %v5942_v9 }
 0x3f0   : > { %v2806_v15 = vpop.f32.mrb[131].mxu0  ;;  %3358 = vmatprep.subr.bf16.mxu1 %v5947_v37 }
 0x3f1   : > { %v2838_v52 = vmax.f32 %v2804_v49, %v2806_v15 }
 0x3f3   : > { %v2847_v56 = vpack.c.bf16 %v2838_v52, %v2837_v19  ;;  %3359 = vmatpush1.bf16.msra.mxu1 %v5945_v29 }
 0x3f5   : > { %v2810_v26 = vpop.f32.mrb[132].mxu0  ;;  %3211 = vmatmul.mubr.bf16.gmra.mrb[128].mxu1 %v2847_v56  ;;  %3314 = vmatmul.mubr.bf16.gmra.mrb[156].mxu0 %v2847_v56 }
 0x3f6   : > { %v2812_v20 = vpop.f32.mrb[133].mxu0  ;;  %3220 = vmatprep.mubr.bf16.mxu1 %v8720_v1  ;;  %3323 = vmatprep.mubr.bf16.mxu0 %v8720_v1 }
 0x3f7   : > { %v2839_v58 = vmax.f32 %v2810_v26, %v2812_v20  ;;  %v2814_v32 = vpop.f32.mrb[134].mxu0 }
 0x3f8   : > { %v2816_v24 = vpop.f32.mrb[135].mxu0 }
 0x3f9   : > { %v2840_v25 = vmax.f32 %v2814_v32, %v2816_v24 }
 0x3fb   : > { %v2848_v35 = vpack.c.bf16 %v2840_v25, %v2839_v58  ;;  %v7901_v25 = vpop.permute.xlu1 %3722 }
 0x3fd   : > { %v2820_v42 = vpop.f32.mrb[136].mxu0  ;;  %3221 = vmatmul.mubr.bf16.gmra.mrb[132].mxu1 %v2848_v35  ;;  %3324 = vmatmul.mubr.bf16.gmra.mrb[160].mxu0 %v2848_v35 }
 0x3fe   : > { %v2822_v36 = vpop.f32.mrb[137].mxu0  ;;  %3230 = vmatprep.mubr.bf16.mxu1 %v8720_v1  ;;  %3333 = vmatprep.mubr.bf16.mxu0 %v8720_v1 }
 0x3ff   : > { %v2841_v51 = vmax.f32 %v2820_v42, %v2822_v36  ;;  %v2824_v54 = vpop.f32.mrb[138].mxu0 }
 0x400   : > { %v2826_v28 = vpop.f32.mrb[139].mxu0 }
 0x401   : > { %v2842_v31 = vmax.f32 %v2824_v54, %v2826_v28 }
 0x403   : > { %v2849_v43 = vpack.c.bf16 %v2842_v31, %v2841_v51 }
 0x405   : > { %3231 = vmatmul.mubr.bf16.gmra.mrb[136].mxu1 %v2849_v43  ;;  %3334 = vmatmul.mubr.bf16.gmra.mrb[164].mxu0 %v2849_v43 }
 0x406   : > { %3376 = vmatprep.mubr.bf16.mxu1 %v8720_v1  ;;  %4024 = vmatprep.mubr.bf16.mxu0 %v8720_v1 }
 0x40d   : > { %3377 = vmatmul.mubr.bf16.vlgmr.msra.gmra.mrb[140].mxu1 %v7765_v21  ;;  %v3530_v21 = vpop.permute.xlu0 %3529 }
 0x40e   : > { %3386 = vmatprep.mubr.bf16.mxu1 %v8720_v1 }
 0x411   : > { %v7851_v60 = vpop.permute.xlu0 %3697 }
 0x415   : > { %3387 = vmatmul.mubr.bf16.gmra.mrb[144].mxu1 %v7783_v13  ;;  %v7855_v53 = vpop.permute.xlu0 %3539 }
 0x416   : > { %3396 = vmatprep.mubr.bf16.mxu1 %v8720_v1 }
 0x419   : > { %v7859_v46 = vpop.permute.xlu0 %3707 }
 0x41d   : > { %3397 = vmatmul.mubr.bf16.gmra.mrb[148].mxu1 %v7801_v62  ;;  %v7863_v18 = vpop.permute.xlu0 %3549 }
 0x41e   : > { %3406 = vmatprep.mubr.bf16.mxu1 %v8720_v1 }
 0x421   : > { %v7885_v11 = vpop.permute.xlu0 %3717 }
 0x425   : > { %3407 = vmatmul.mubr.bf16.gmra.mrb[152].mxu1 %v2846_v44 }
 0x426   : > { %3416 = vmatprep.mubr.bf16.mxu1 %v8720_v1 }
 0x42d   : > { %3417 = vmatmul.mubr.bf16.gmra.mrb[156].mxu1 %v2847_v56 }
 0x42e   : > { %3426 = vmatprep.mubr.bf16.mxu1 %v8720_v1 }
 0x435   : > { %3427 = vmatmul.mubr.bf16.gmra.mrb[160].mxu1 %v2848_v35  ;;  %v7903_v35 = vpop.permute.xlu0 %3559 }
 0x436   : > { %3436 = vmatprep.mubr.bf16.mxu1 %v8720_v1 }
 0x43d   : > { %3437 = vmatmul.mubr.bf16.gmra.mrb[164].mxu1 %v2849_v43 }
 0x4a8   : > { %v7865_v12 = vpop.f32.mrb[112].mxu1  ;;  %v7867_v7 = vpop.f32.mrb[140].mxu0 }
 0x4a9   : > { %v7869_v13 = vpop.f32.mrb[113].mxu1  ;;  %v7871_v17 = vpop.f32.mrb[141].mxu0  ;;  %v3447_v63 = vrot.slane %v7865_v12, 7  ;;  %v5961_v12 = vld [vmem:[%s8593_s12 + $0x20] ss:$8 sps:$4 sm:$0xff]  }
 0x4aa   : > { %v3176_v0 = vpop.f32.mrb[114].mxu1  ;;  %v3279_v57 = vpop.f32.mrb[142].mxu0  ;;  %v8626_v47 = vrot.slane %v7869_v13, 7 }
 0x4ab   : > { %v3449_v30 = vrot.slane %v3176_v0, 7  ;;  %v3178_v16 = vpop.f32.mrb[115].mxu1  ;;  %v3281_v40 = vpop.f32.mrb[143].mxu0 }
 0x4ac   : > { %v3450_v39 = vrot.slane %v3178_v16, 7 }
 0x4ad   : > { %v3499_v27 = vsel %vm1243_vm2, %v3447_v63, %v3449_v30 }
 0x4ae   : > { %v3589_v62 = vmul.f32 %v3525_v6, %v3499_v27  ;;  %v3500_v55 = vsel %vm1243_vm2, %v8626_v47, %v3450_v39 }
 0x4af   : > { %v3590_v50 = vmul.f32 %v3525_v6, %v3500_v55 }
 0x4b0   : > { %v7887_v33 = vadd.f32 %v3589_v62, %v3279_v57  ;;  %v3182_v61 = vpop.f32.mrb[116].mxu1  ;;  %v3285_v8 = vpop.f32.mrb[144].mxu0 }
 0x4b1   : > { %v7889_v10 = vadd.f32 %v3590_v50, %v3281_v40  ;;  %v3451_v4 = vrot.slane %v3182_v61, 7  ;;  %v3184_v23 = vpop.f32.mrb[117].mxu1  ;;  %v3287_v44 = vpop.f32.mrb[145].mxu0 }
 0x4b2   : > { %v3452_v9 = vrot.slane %v3184_v23, 7  ;;  %v3186_v37 = vpop.f32.mrb[118].mxu1  ;;  %v3289_v22 = vpop.f32.mrb[146].mxu0 }
 0x4b3   : > { %v3497_v38 = vsel %vm1243_vm2, %v3449_v30, %v3451_v4  ;;  %v3453_v19 = vrot.slane %v3186_v37, 7  ;;  %v3188_v49 = vpop.f32.mrb[119].mxu1  ;;  %v3291_v29 = vpop.f32.mrb[147].mxu0 }
 0x4b4   : > { %v3591_v15 = vmul.f32 %v3530_v21, %v3497_v38  ;;  %v3498_v52 = vsel %vm1243_vm2, %v3450_v39, %v3452_v9  ;;  %v3454_v56 = vrot.slane %v3188_v49, 7 }
 0x4b5   : > { %v3592_v26 = vmul.f32 %v3530_v21, %v3498_v52  ;;  %v3495_v20 = vsel %vm1243_vm2, %v3451_v4, %v3453_v19 }
 0x4b6   : > { %v7897_v58 = vadd.f32 %v3591_v15, %v3285_v8  ;;  %v3593_v32 = vmul.f32 %v3535_v14, %v3495_v20  ;;  %v3496_v24 = vsel %vm1243_vm2, %v3452_v9, %v3454_v56  ;;  %v7924_v9 = vpop.permute.xlu0 %3727 }
 0x4b7   : > { %v7905_v42 = vadd.f32 %v3592_v26, %v3287_v44  ;;  %v3594_v36 = vmul.f32 %v3535_v14, %v3496_v24  ;;  %v3565_v44 = vpop.permute.xlu1 %3564 }
 0x4b8   : > { %v7907_v51 = vadd.f32 %v3593_v32, %v3289_v22  ;;  %v3192_v54 = vpop.f32.mrb[120].mxu1  ;;  %v3295_v28 = vpop.f32.mrb[148].mxu0 }
 0x4b9   : > { %v7909_v31 = vadd.f32 %v3594_v36, %v3291_v29  ;;  %v3455_v43 = vrot.slane %v3192_v54, 7  ;;  %v3194_v6 = vpop.f32.mrb[121].mxu1  ;;  %v3297_v21 = vpop.f32.mrb[149].mxu0 }
 0x4ba   : > { %v3456_v0 = vrot.slane %v3194_v6, 7  ;;  %v3196_v57 = vpop.f32.mrb[122].mxu1  ;;  %v3299_v30 = vpop.f32.mrb[150].mxu0 }
 0x4bb   : > { %v3493_v16 = vsel %vm1243_vm2, %v3453_v19, %v3455_v43  ;;  %v3457_v40 = vrot.slane %v3196_v57, 7  ;;  %v3198_v39 = vpop.f32.mrb[123].mxu1  ;;  %v3301_v27 = vpop.f32.mrb[151].mxu0 }
 0x4bc   : > { %v3595_v14 = vmul.f32 %v7855_v53, %v3493_v16  ;;  %v3494_v62 = vsel %vm1243_vm2, %v3454_v56, %v3456_v0  ;;  %v3458_v55 = vrot.slane %v3198_v39, 7  ;;  %v7946_v16 = vpop.permute.xlu1 %3732 }
 0x4bd   : > { %v3596_v50 = vmul.f32 %v7855_v53, %v3494_v62  ;;  %v3491_v61 = vsel %vm1243_vm2, %v3455_v43, %v3457_v40 }
 0x4be   : > { %v7919_v8 = vadd.f32 %v3595_v14, %v3295_v28  ;;  %v3597_v4 = vmul.f32 %v7857_v45, %v3491_v61  ;;  %v3492_v23 = vsel %vm1243_vm2, %v3456_v0, %v3458_v55 }
 0x4bf   : > { %v7926_v37 = vadd.f32 %v3596_v50, %v3297_v21  ;;  %v3598_v22 = vmul.f32 %v7857_v45, %v3492_v23 }
 0x4c0   : > { %v7929_v38 = vadd.f32 %v3597_v4, %v3299_v30  ;;  %v3202_v53 = vpop.f32.mrb[124].mxu1  ;;  %v3305_v19 = vpop.f32.mrb[152].mxu0 }
 0x4c1   : > { %v7931_v49 = vadd.f32 %v3598_v22, %v3301_v27  ;;  %v3459_v29 = vrot.slane %v3202_v53, 7  ;;  %v3204_v15 = vpop.f32.mrb[125].mxu1  ;;  %v3307_v52 = vpop.f32.mrb[153].mxu0 }
 0x4c2   : > { %v3460_v56 = vrot.slane %v3204_v15, 7  ;;  %v3206_v26 = vpop.f32.mrb[126].mxu1  ;;  %v3309_v20 = vpop.f32.mrb[154].mxu0 }
 0x4c3   : > { %v3489_v32 = vsel %vm1243_vm2, %v3457_v40, %v3459_v29  ;;  %v3461_v24 = vrot.slane %v3206_v26, 7  ;;  %v3208_v36 = vpop.f32.mrb[127].mxu1  ;;  %v3311_v54 = vpop.f32.mrb[155].mxu0 }
 0x4c4   : > { %v3599_v45 = vmul.f32 %v7863_v18, %v3489_v32  ;;  %v3490_v28 = vsel %vm1243_vm2, %v3458_v55, %v3460_v56  ;;  %v3462_v43 = vrot.slane %v3208_v36, 7  ;;  %v3570_v40 = vpop.permute.xlu0 %3569 }
 0x4c5   : > { %v3600_v6 = vmul.f32 %v7863_v18, %v3490_v28  ;;  %v3487_v21 = vsel %vm1243_vm2, %v3459_v29, %v3461_v24 }
 0x4c6   : > { %v7941_v0 = vadd.f32 %v3599_v45, %v3305_v19  ;;  %v3601_v57 = vmul.f32 %v7883_v3, %v3487_v21  ;;  %v3488_v30 = vsel %vm1243_vm2, %v3460_v56, %v3462_v43  ;;  %v3575_v45 = vpop.permute.xlu1 %3574 }
 0x4c7   : > { %v7948_v39 = vadd.f32 %v3600_v6, %v3307_v52  ;;  %v3602_v27 = vmul.f32 %v7883_v3, %v3488_v30 }
 0x4c8   : > { %v7951_v14 = vadd.f32 %v3601_v57, %v3309_v20  ;;  %v3212_v18 = vpop.f32.mrb[128].mxu1  ;;  %v3315_v62 = vpop.f32.mrb[156].mxu0 }
 0x4c9   : > { %v7953_v55 = vadd.f32 %v3602_v27, %v3311_v54  ;;  %v3463_v50 = vrot.slane %v3212_v18, 7  ;;  %v3214_v61 = vpop.f32.mrb[129].mxu1  ;;  %v3317_v4 = vpop.f32.mrb[157].mxu0 }
 0x4ca   : > { %v3464_v23 = vrot.slane %v3214_v61, 7  ;;  %v3216_v22 = vpop.f32.mrb[130].mxu1  ;;  %v3319_v53 = vpop.f32.mrb[158].mxu0 }
 0x4cb   : > { %v3485_v19 = vsel %vm1243_vm2, %v3461_v24, %v3463_v50  ;;  %v3465_v29 = vrot.slane %v3216_v22, 7  ;;  %v3218_v15 = vpop.f32.mrb[131].mxu1  ;;  %v3321_v52 = vpop.f32.mrb[159].mxu0 }
 0x4cc   : > { %v3603_v3 = vmul.f32 %v7903_v35, %v3485_v19  ;;  %v3486_v56 = vsel %vm1243_vm2, %v3462_v43, %v3464_v23  ;;  %v3466_v26 = vrot.slane %v3218_v15, 7  ;;  %v7967_v28 = vpop.permute.xlu0 %3737 }
 0x4cd   : > { %v3604_v20 = vmul.f32 %v7903_v35, %v3486_v56  ;;  %v3483_v32 = vsel %vm1243_vm2, %v3463_v50, %v3465_v29 }
 0x4ce   : > { %v7963_v36 = vadd.f32 %v3603_v3, %v3315_v62  ;;  %v3605_v54 = vmul.f32 %v3565_v44, %v3483_v32  ;;  %v3484_v24 = vsel %vm1243_vm2, %v3464_v23, %v3466_v26 }
 0x4cf   : > { %v7969_v6 = vadd.f32 %v3604_v20, %v3317_v4  ;;  %v3606_v21 = vmul.f32 %v3565_v44, %v3484_v24  ;;  %v7985_v24 = vpop.permute.xlu1 %3742 }
 0x4d0   : > { %v7971_v57 = vadd.f32 %v3605_v54, %v3319_v53  ;;  %v3222_v43 = vpop.f32.mrb[132].mxu1  ;;  %v3325_v30 = vpop.f32.mrb[160].mxu0 }
 0x4d1   : > { %v7973_v35 = vadd.f32 %v3606_v21, %v3321_v52  ;;  %v3467_v27 = vrot.slane %v3222_v43, 7  ;;  %v3224_v18 = vpop.f32.mrb[133].mxu1  ;;  %v3327_v62 = vpop.f32.mrb[161].mxu0 }
 0x4d2   : > { %v3468_v50 = vrot.slane %v3224_v18, 7  ;;  %v3226_v61 = vpop.f32.mrb[134].mxu1  ;;  %v3329_v22 = vpop.f32.mrb[162].mxu0 }
 0x4d3   : > { %v3481_v23 = vsel %vm1243_vm2, %v3465_v29, %v3467_v27  ;;  %v3469_v19 = vrot.slane %v3226_v61, 7  ;;  %v3228_v15 = vpop.f32.mrb[135].mxu1  ;;  %v3331_v4 = vpop.f32.mrb[163].mxu0 }
 0x4d4   : > { %v3607_v3 = vmul.f32 %v3570_v40, %v3481_v23  ;;  %v3482_v44 = vsel %vm1243_vm2, %v3466_v26, %v3468_v50  ;;  %v3470_v53 = vrot.slane %v3228_v15, 7  ;;  %v3580_v29 = vpop.permute.xlu0 %3579  ;;  %v5955_v26 = vld [vmem:[%s8593_s12] ss:$8 sps:$4 sm:$0xff]  }
 0x4d5   : > { %v3608_v56 = vmul.f32 %v3570_v40, %v3482_v44  ;;  %v3479_v52 = vsel %vm1243_vm2, %v3467_v27, %v3469_v19  ;;  %v5957_v40 = vld [vmem:[%s8593_s12 + $0x4] ss:$8 sps:$4 sm:$0xff]  }
 0x4d6   : > { %v7981_v20 = vadd.f32 %v3607_v3, %v3325_v30  ;;  %v3609_v32 = vmul.f32 %v3575_v45, %v3479_v52  ;;  %v3480_v54 = vsel %vm1243_vm2, %v3468_v50, %v3470_v53  ;;  %v5960_v50 = vld [vmem:[%s8593_s12 + $0x14] ss:$8 sps:$4 sm:$0xff]   ;;  %4297 = vmatprep.subr.bf16.mxu1 %v5957_v40 }
 0x4d7   : > { %v7987_v21 = vadd.f32 %v3608_v56, %v3327_v62  ;;  %v3610_v43 = vmul.f32 %v3575_v45, %v3480_v54  ;;  %4298 = vmatpush1.bf16.msra.mxu1 %v5955_v26 }
 0x4d8   : > { %v7995_v30 = vadd.f32 %v3609_v32, %v3329_v22  ;;  %v3232_v27 = vpop.f32.mrb[136].mxu1  ;;  %v3335_v18 = vpop.f32.mrb[164].mxu0  ;;  %v5958_v22 = vld [vmem:[%s8593_s12 + $0x10] ss:$8 sps:$4 sm:$0xff]   ;;  %4299 = vmatprep.subr.bf16.mxu1 %v5960_v50 }
 0x4d9   : > { %v8000_v61 = vadd.f32 %v3610_v43, %v3331_v4  ;;  %v3471_v62 = vrot.slane %v3232_v27, 7  ;;  %v3234_v45 = vpop.f32.mrb[137].mxu1  ;;  %v3337_v23 = vpop.f32.mrb[165].mxu0  ;;  %v5963_v4 = vld [vmem:[%s8593_s12 + $0x24] ss:$8 sps:$4 sm:$0xff]  }
 0x4da   : > { %v3472_v15 = vrot.slane %v3234_v45, 7  ;;  %v3236_v3 = vpop.f32.mrb[138].mxu1  ;;  %v3339_v44 = vpop.f32.mrb[166].mxu0 }
 0x4db   : > { %v3477_v56 = vsel %vm1243_vm2, %v3469_v19, %v3471_v62  ;;  %v3473_v52 = vrot.slane %v3236_v3, 7  ;;  %v3238_v32 = vpop.f32.mrb[139].mxu1  ;;  %v3341_v54 = vpop.f32.mrb[167].mxu0  ;;  %4300 = vmatpush1.bf16.msra.mxu1 %v5958_v22 }
 0x4dc   : > { %v3611_v43 = vmul.f32 %v3580_v29, %v3477_v56  ;;  %v3478_v40 = vsel %vm1243_vm2, %v3470_v53, %v3472_v15  ;;  %v3474_v26 = vrot.slane %v3238_v32, 7  ;;  %v3585_v27 = vpop.permute.xlu1 %3584  ;;  %v8721_v56 = vrot.slane %v7869_v13, 7  ;;  %4301 = vmatprep.subr.bf16.mxu1 %v5963_v4  ;;  %v5966_v13 = vld [vmem:[%s8593_s12 + $0x34] ss:$8 sps:$4 sm:$0xff]  }
 0x4dd   : > { %v3612_v45 = vmul.f32 %v3580_v29, %v3478_v40  ;;  %v3501_v19 = vsel %vm1243_vm2, %v3473_v52, %v3447_v63  ;;  %v3475_v3 = vsel %vm1243_vm2, %v3471_v62, %v3473_v52 }
 0x4de   : > { %v8018_v50 = vadd.f32 %v3611_v43, %v3335_v18  ;;  %v3587_v47 = vmul.f32 %v7845_v2, %v3501_v19  ;;  %v3613_v1 = vmul.f32 %v3585_v27, %v3475_v3  ;;  %v3502_v53 = vsel %vm1243_vm2, %v3474_v26, %v8721_v56  ;;  %v3839_v3 = vld [vmem:[%s8591_s10] sm:$0x3]  ;;  %v5972_v56 = vld [vmem:[%s8593_s12 + $0x54] ss:$8 sps:$4 sm:$0xff]  }
 0x4df   : > { %v8028_v29 = vadd.f32 %v3612_v45, %v3337_v23  ;;  %v3588_v63 = vmul.f32 %v7845_v2, %v3502_v53  ;;  %v3476_v18 = vsel %vm1243_vm2, %v3472_v15, %v3474_v26  ;;  %4302 = vmatpush1.bf16.msra.mxu1 %v5961_v12  ;;  %v5964_v15 = vld [vmem:[%s8593_s12 + $0x30] ss:$8 sps:$4 sm:$0xff]   ;;  %v5967_v45 = vld [vmem:[%s8593_s12 + $0x40] ss:$8 sps:$4 sm:$0xff]  }
 0x4e0   : > { %v3783_v62 = vadd.f32 %v3587_v47, %v7867_v7  ;;  %v8037_v52 = vadd.f32 %v3613_v1, %v3339_v44  ;;  %v3614_v22 = vmul.f32 %v3585_v27, %v3476_v18  ;;  %v8039_v32 = vpop.f32.mrb[140].mxu1  ;;  %4303 = vmatprep.subr.bf16.mxu1 %v5966_v13  ;;  %v5969_v47 = vld [vmem:[%s8593_s12 + $0x44] ss:$8 sps:$4 sm:$0xff]  }
 0x4e1   : > { %v3784_v23 = vadd.f32 %v3588_v63, %v7871_v17  ;;  %v8042_v43 = vpop.f32.mrb[141].mxu1  ;;  %v3615_v4 = vrot.slane %v8039_v32, 1 }
 0x4e2   : > { %v8044_v2 = vadd.f32 %v3614_v22, %v3341_v54  ;;  %v3382_v40 = vpop.f32.mrb[142].mxu1  ;;  %v3616_v17 = vrot.slane %v8042_v43, 1 }
 0x4e3   : > { %v3617_v7 = vrot.slane %v3382_v40, 1  ;;  %v3384_v1 = vpop.f32.mrb[143].mxu1  ;;  %4304 = vmatpush1.bf16.msra.mxu1 %v5964_v15  ;;  %v8722_v15 = vsub.s32 0, %v6774_v48 }
 0x4e4   : > { %v3618_v44 = vrot.slane %v3384_v1, 1  ;;  %4305 = vmatprep.subr.bf16.mxu1 %v5969_v47 }
 0x4e5   : > { %v3667_v54 = vsel %vm1580_vm4, %v3615_v4, %v3617_v7  ;;  %v8075_v1 = vrot.slane %v3839_v3, %v8722_v15 }
 0x4e6   : > { %v3755_v26 = vmul.f32 %v7847_v41, %v3667_v54  ;;  %v3668_v27 = vsel %vm1580_vm4, %v3616_v17, %v3618_v44 }
 0x4e7   : > { %v3756_v19 = vmul.f32 %v7847_v41, %v3668_v27  ;;  %4306 = vmatpush1.bf16.msra.mxu1 %v5967_v45  ;;  %v5970_v41 = vld [vmem:[%s8593_s12 + $0x50] ss:$8 sps:$4 sm:$0xff]  }
 0x4e8   : > { %v3811_v53 = vadd.f32 %v3783_v62, %v3755_v26  ;;  %v3388_v12 = vpop.f32.mrb[144].mxu1  ;;  %4307 = vmatprep.subr.bf16.mxu1 %v5972_v56 }
 0x4e9   : > { %v3812_v63 = vadd.f32 %v3784_v23, %v3756_v19  ;;  %v3619_v18 = vrot.slane %v3388_v12, 1  ;;  %v3390_v13 = vpop.f32.mrb[145].mxu1  ;;  %v8723_v23 = vsub.s32 1, %v6774_v48 }
 0x4ea   : > { %v3620_v22 = vrot.slane %v3390_v13, 1  ;;  %v3392_v40 = vpop.f32.mrb[146].mxu1  ;;  %v3851_v56 = vadd.f32 %v8075_v1, %v3811_v53 }
 0x4eb   : > { %v3665_v47 = vsel %vm1580_vm4, %v3617_v7, %v3619_v18  ;;  %v3621_v54 = vrot.slane %v3392_v40, 1  ;;  %v3394_v62 = vpop.f32.mrb[147].mxu1  ;;  %v8084_v26 = vrot.slane %v3839_v3, %v8723_v23  ;;  %4308 = vmatpush1.bf16.msra.mxu1 %v5970_v41 }
 0x4ec   : > { %v3757_v27 = vmul.f32 %v7849_v34, %v3665_v47  ;;  %v3666_v19 = vsel %vm1580_vm4, %v3618_v44, %v3620_v22  ;;  %v3622_v45 = vrot.slane %v3394_v62, 1  ;;  %v3879_v41 = vmax.f32 %v3851_v56, 0.0 }
 0x4ed   : > { %v3758_v12 = vmul.f32 %v7849_v34, %v3666_v19  ;;  %v3663_v13 = vsel %vm1580_vm4, %v3619_v18, %v3621_v54  ;;  %v3852_v47 = vadd.f32 %v8084_v26, %v3812_v63 }
 0x4ee   : > { %v3813_v7 = vadd.f32 %v7887_v33, %v3757_v27  ;;  %v3759_v40 = vmul.f32 %v7851_v60, %v3663_v13  ;;  %v3664_v3 = vsel %vm1580_vm4, %v3620_v22, %v3622_v45 }
 0x4ef   : > { %v3814_v15 = vadd.f32 %v7889_v10, %v3758_v12  ;;  %v3760_v44 = vmul.f32 %v7851_v60, %v3664_v3  ;;  %v3880_v12 = vmax.f32 %v3852_v47, 0.0 }
 0x4f0   : > { %v3815_v34 = vadd.f32 %v7897_v58, %v3759_v40  ;;  %v3398_v62 = vpop.f32.mrb[148].mxu1  ;;  %v3853_v18 = vadd.f32 %v8075_v1, %v3813_v7 }
 0x4f1   : > { %v3816_v33 = vadd.f32 %v7905_v42, %v3760_v44  ;;  %v3623_v23 = vrot.slane %v3398_v62, 1  ;;  %v3400_v27 = vpop.f32.mrb[149].mxu1  ;;  %v3854_v22 = vadd.f32 %v8084_v26, %v3814_v15 }
 0x4f2   : > { %v3624_v19 = vrot.slane %v3400_v27, 1  ;;  %v3402_v53 = vpop.f32.mrb[150].mxu1  ;;  %v3881_v13 = vmax.f32 %v3853_v18, 0.0  ;;  %v3855_v18 = vadd.f32 %v8075_v1, %v3815_v34 }
 0x4f3   : > { %v3661_v60 = vsel %vm1580_vm4, %v3621_v54, %v3623_v23  ;;  %v3625_v10 = vrot.slane %v3402_v53, 1  ;;  %v3404_v63 = vpop.f32.mrb[151].mxu1  ;;  %v3882_v58 = vmax.f32 %v3854_v22, 0.0 }
 0x4f4   : > { %v3761_v40 = vmul.f32 %v7853_v59, %v3661_v60  ;;  %v3662_v42 = vsel %vm1580_vm4, %v3622_v45, %v3624_v19  ;;  %v3626_v7 = vrot.slane %v3404_v63, 1  ;;  %v3921_v3 = vpack.c.bf16 %v3881_v13, %v3879_v41 }
 0x4f5   : > { %v3762_v15 = vmul.f32 %v7853_v59, %v3662_v42  ;;  %v3659_v56 = vsel %vm1580_vm4, %v3623_v23, %v3625_v10  ;;  %v3922_v44 = vpack.c.bf16 %v3882_v58, %v3880_v12  ;;  %v3856_v59 = vadd.f32 %v8084_v26, %v3816_v33 }
 0x4f6   : > { %v3817_v62 = vadd.f32 %v7907_v51, %v3761_v40  ;;  %v3763_v54 = vmul.f32 %v7859_v46, %v3659_v56  ;;  %v3660_v47 = vsel %vm1580_vm4, %v3624_v19, %v3626_v7 }
 0x4f7   : > { %v3818_v27 = vadd.f32 %v7909_v31, %v3762_v15  ;;  %v3764_v45 = vmul.f32 %v7859_v46, %v3660_v47  ;;  %3992 = vmatprep.subr.bf16.mxu0 %v3922_v44  ;;  %v3883_v31 = vmax.f32 %v3855_v18, 0.0 }
 0x4f8   : > { %v3819_v22 = vadd.f32 %v7919_v8, %v3763_v54  ;;  %v3408_v23 = vpop.f32.mrb[152].mxu1  ;;  %3993 = vmatpush1.bf16.msra.mxu0 %v3921_v3  ;;  %v3857_v51 = vadd.f32 %v8075_v1, %v3817_v62  ;;  %v3884_v8 = vmax.f32 %v3856_v59, 0.0 }
 0x4f9   : > { %v3820_v53 = vadd.f32 %v7926_v37, %v3764_v45  ;;  %v3627_v41 = vrot.slane %v3408_v23, 1  ;;  %v3410_v13 = vpop.f32.mrb[153].mxu1  ;;  %v3858_v19 = vadd.f32 %v8084_v26, %v3818_v27 }
 0x4fa   : > { %v3628_v34 = vrot.slane %v3410_v13, 1  ;;  %v3412_v60 = vpop.f32.mrb[154].mxu1  ;;  %v3885_v63 = vmax.f32 %v3857_v51, 0.0  ;;  %v3859_v47 = vadd.f32 %v8075_v1, %v3819_v22 }
 0x4fb   : > { %v3657_v46 = vsel %vm1580_vm4, %v3625_v10, %v3627_v41  ;;  %v3629_v33 = vrot.slane %v3412_v60, 1  ;;  %v3414_v12 = vpop.f32.mrb[155].mxu1  ;;  %v3886_v58 = vmax.f32 %v3858_v19, 0.0 }
 0x4fc   : > { %v3765_v40 = vmul.f32 %v7861_v5, %v3657_v46  ;;  %v3658_v37 = vsel %vm1580_vm4, %v3626_v7, %v3628_v34  ;;  %v3630_v42 = vrot.slane %v3414_v12, 1  ;;  %v3923_v3 = vpack.c.bf16 %v3885_v63, %v3883_v31 }
 0x4fd   : > { %v3766_v15 = vmul.f32 %v7861_v5, %v3658_v37  ;;  %v3655_v56 = vsel %vm1580_vm4, %v3627_v41, %v3629_v33  ;;  %v3924_v44 = vpack.c.bf16 %v3886_v58, %v3884_v8  ;;  %v3860_v5 = vadd.f32 %v8084_v26, %v3820_v53 }
 0x4fe   : > { %v3821_v62 = vadd.f32 %v7929_v38, %v3765_v40  ;;  %v3767_v10 = vmul.f32 %v7885_v11, %v3655_v56  ;;  %v3656_v54 = vsel %vm1580_vm4, %v3628_v34, %v3630_v42 }
 0x4ff   : > { %v3822_v18 = vadd.f32 %v7931_v49, %v3766_v15  ;;  %v3768_v7 = vmul.f32 %v7885_v11, %v3656_v54  ;;  %3994 = vmatprep.subr.bf16.mxu0 %v3924_v44  ;;  %v3887_v49 = vmax.f32 %v3859_v47, 0.0 }
 0x500   : > { %v3823_v27 = vadd.f32 %v7941_v0, %v3767_v10  ;;  %v3418_v45 = vpop.f32.mrb[156].mxu1  ;;  %3995 = vmatpush1.bf16.msra.mxu0 %v3923_v3  ;;  %v3861_v38 = vadd.f32 %v8075_v1, %v3821_v62  ;;  %v3888_v0 = vmax.f32 %v3860_v5, 0.0 }
 0x501   : > { %v3824_v59 = vadd.f32 %v7948_v39, %v3768_v7  ;;  %v3631_v23 = vrot.slane %v3418_v45, 1  ;;  %v3420_v51 = vpop.f32.mrb[157].mxu1  ;;  %v3862_v41 = vadd.f32 %v8084_v26, %v3822_v18 }
 0x502   : > { %v3632_v22 = vrot.slane %v3420_v51, 1  ;;  %v3422_v13 = vpop.f32.mrb[158].mxu1  ;;  %v3889_v19 = vmax.f32 %v3861_v38, 0.0  ;;  %v3863_v3 = vadd.f32 %v8075_v1, %v3823_v27 }
 0x503   : > { %v3653_v11 = vsel %vm1580_vm4, %v3629_v33, %v3631_v23  ;;  %v3633_v53 = vrot.slane %v3422_v13, 1  ;;  %v3424_v34 = vpop.f32.mrb[159].mxu1  ;;  %v3890_v60 = vmax.f32 %v3862_v41, 0.0 }
 0x504   : > { %v3769_v31 = vmul.f32 %v7901_v25, %v3653_v11  ;;  %v3654_v39 = vsel %vm1580_vm4, %v3630_v42, %v3632_v22  ;;  %v3634_v63 = vrot.slane %v3424_v34, 1  ;;  %v3925_v46 = vpack.c.bf16 %v3889_v19, %v3887_v49 }
 0x505   : > { %v3770_v12 = vmul.f32 %v7901_v25, %v3654_v39  ;;  %v3651_v8 = vsel %vm1580_vm4, %v3631_v23, %v3633_v53  ;;  %v3926_v58 = vpack.c.bf16 %v3890_v60, %v3888_v0  ;;  %v3864_v25 = vadd.f32 %v8084_v26, %v3824_v59 }
 0x506   : > { %v3825_v40 = vadd.f32 %v7951_v14, %v3769_v31  ;;  %v3771_v33 = vmul.f32 %v7924_v9, %v3651_v8  ;;  %v3652_v37 = vsel %vm1580_vm4, %v3632_v22, %v3634_v63 }
 0x507   : > { %v3826_v15 = vadd.f32 %v7953_v55, %v3770_v12  ;;  %v3772_v42 = vmul.f32 %v7924_v9, %v3652_v37  ;;  %3996 = vmatprep.subr.bf16.mxu0 %v3926_v58  ;;  %v3891_v55 = vmax.f32 %v3863_v3, 0.0 }
 0x508   : > { %v3827_v56 = vadd.f32 %v7963_v36, %v3771_v33  ;;  %v3428_v44 = vpop.f32.mrb[160].mxu1  ;;  %3997 = vmatpush1.bf16.msra.mxu0 %v3925_v46  ;;  %v3865_v14 = vadd.f32 %v8075_v1, %v3825_v40  ;;  %v3892_v36 = vmax.f32 %v3864_v25, 0.0 }
 0x509   : > { %v3828_v62 = vadd.f32 %v7969_v6, %v3772_v42  ;;  %v3635_v10 = vrot.slane %v3428_v44, 1  ;;  %v3430_v54 = vpop.f32.mrb[161].mxu1  ;;  %v3866_v47 = vadd.f32 %v8084_v26, %v3826_v15  ;;  %v3753_v44 = vpop.permute.xlu1 %3752 }
 0x50a   : > { %v3636_v18 = vrot.slane %v3430_v54, 1  ;;  %v3432_v7 = vpop.f32.mrb[162].mxu1  ;;  %v3893_v5 = vmax.f32 %v3865_v14, 0.0  ;;  %v3867_v49 = vadd.f32 %v8075_v1, %v3827_v56  ;;  %v3748_v14 = vpop.permute.xlu0 %3747 }
 0x50b   : > { %v3649_v9 = vsel %vm1580_vm4, %v3633_v53, %v3635_v10  ;;  %v3637_v27 = vrot.slane %v3432_v7, 1  ;;  %v3434_v45 = vpop.f32.mrb[163].mxu1  ;;  %v3894_v38 = vmax.f32 %v3866_v47, 0.0  ;;  %v3868_v34 = vadd.f32 %v8084_v26, %v3828_v62 }
 0x50c   : > { %v3773_v59 = vmul.f32 %v7946_v16, %v3649_v9  ;;  %v3650_v6 = vsel %vm1580_vm4, %v3634_v63, %v3636_v18  ;;  %v3638_v23 = vrot.slane %v3434_v45, 1  ;;  %v3927_v51 = vpack.c.bf16 %v3893_v5, %v3891_v55 }
 0x50d   : > { %v3774_v41 = vmul.f32 %v7946_v16, %v3650_v6  ;;  %v3647_v22 = vsel %vm1580_vm4, %v3635_v10, %v3637_v27  ;;  %v3928_v13 = vpack.c.bf16 %v3894_v38, %v3892_v36  ;;  %v3896_v40 = vmax.f32 %v3868_v34, 0.0  ;;  %v5950_v34 = vld [vmem:[%s8592_s11 + $0x10] sm:$0xff]  }
 0x50e   : > { %v3829_v19 = vadd.f32 %v7971_v57, %v3773_v59  ;;  %v3775_v11 = vmul.f32 %v7967_v28, %v3647_v22  ;;  %v3648_v53 = vsel %vm1580_vm4, %v3636_v18, %v3638_v23  ;;  %v3895_v33 = vmax.f32 %v3867_v49, 0.0 }
 0x50f   : > { %v3830_v0 = vadd.f32 %v7973_v35, %v3774_v41  ;;  %v3776_v60 = vmul.f32 %v7967_v28, %v3648_v53  ;;  %3998 = vmatprep.subr.bf16.mxu0 %v3928_v13  ;;  %v8724_v53 = vmov 0  }
 0x510   : > { %v3831_v16 = vadd.f32 %v7981_v20, %v3775_v11  ;;  %v3438_v31 = vpop.f32.mrb[164].mxu1  ;;  %3999 = vmatpush1.bf16.msra.mxu0 %v3927_v51  ;;  %v3869_v39 = vadd.f32 %v8075_v1, %v3829_v19 }
 0x511   : > { %v3832_v57 = vadd.f32 %v7987_v21, %v3776_v60  ;;  %v3639_v63 = vrot.slane %v3438_v31, 1  ;;  %v3440_v46 = vpop.f32.mrb[165].mxu1  ;;  %v3870_v12 = vadd.f32 %v8084_v26, %v3830_v0  ;;  %v5951_v0 = vld [vmem:[%s8592_s11 + $0x18] sm:$0xff]   ;;  %v5952_v60 = vld [vmem:[%s8592_s11 + $0x20] sm:$0xff]   ;;  %v5954_v31 = vld [vmem:[%s8592_s11 + $0x30] sm:$0xff]  }
 0x512   : > { %v3640_v8 = vrot.slane %v3440_v46, 1  ;;  %v3442_v58 = vpop.f32.mrb[166].mxu1  ;;  %v3897_v35 = vmax.f32 %v3869_v39, 0.0  ;;  %v3871_v15 = vadd.f32 %v8075_v1, %v3831_v16  ;;  %v5953_v16 = vld [vmem:[%s8592_s11 + $0x28] sm:$0xff]   ;;  %v5976_v46 = vld [vmem:[%s8593_s12 + $0x70] ss:$8 sps:$4 sm:$0xff]  }
 0x513   : > { %v3645_v28 = vsel %vm1580_vm4, %v3637_v27, %v3639_v63  ;;  %v3641_v37 = vrot.slane %v3442_v58, 1  ;;  %v3444_v20 = vpop.f32.mrb[167].mxu1  ;;  %v3898_v3 = vmax.f32 %v3870_v12, 0.0  ;;  %v3872_v32 = vadd.f32 %v8084_v26, %v3832_v57  ;;  %v5973_v39 = vld [vmem:[%s8593_s12 + $0x60] ss:$8 sps:$4 sm:$0xff]  }
 0x514   : > { %v3777_v42 = vmul.f32 %v7985_v24, %v3645_v28  ;;  %v3646_v21 = vsel %vm1580_vm4, %v3638_v23, %v3640_v8  ;;  %v3642_v25 = vrot.slane %v3444_v20, 1  ;;  %v3929_v56 = vpack.c.bf16 %v3897_v35, %v3895_v33  ;;  %v5975_v57 = vld [vmem:[%s8593_s12 + $0x64] ss:$8 sps:$4 sm:$0xff]   ;;  %v5979_v12 = vld [vmem:[%s8593_s12 + $0x80] ss:$8 sps:$4 sm:$0xff]  }
 0x515   : > { %v3778_v62 = vmul.f32 %v7985_v24, %v3646_v21  ;;  %v3643_v10 = vsel %vm1580_vm4, %v3639_v63, %v3641_v37  ;;  %v3669_v54 = vsel %vm1580_vm4, %v3641_v37, %v3615_v4  ;;  %v3930_v47 = vpack.c.bf16 %v3898_v3, %v3896_v40  ;;  %4309 = vmatprep.subr.bf16.mxu1 %v5975_v57  ;;  %v5978_v63 = vld [vmem:[%s8593_s12 + $0x74] ss:$8 sps:$4 sm:$0xff]   ;;  %v5982_v40 = vld [vmem:[%s8593_s12 + $0x90] ss:$8 sps:$4 sm:$0xff]   ;;  %v5985_v33 = vld [vmem:[%s8593_s12 + $0xa0] ss:$8 sps:$4 sm:$0xff]  }
 0x516   : > { %v3833_v18 = vadd.f32 %v7995_v30, %v3777_v42  ;;  %v3779_v7 = vmul.f32 %v3748_v14, %v3643_v10  ;;  %v3781_v55 = vmul.f32 %v3753_v44, %v3669_v54  ;;  %v3644_v5 = vsel %vm1580_vm4, %v3640_v8, %v3642_v25  ;;  %4310 = vmatpush1.bf16.msra.mxu1 %v5973_v39  ;;  %v5981_v8 = vld [vmem:[%s8593_s12 + $0x84] ss:$8 sps:$4 sm:$0xff]   ;;  %v5984_v58 = vld [vmem:[%s8593_s12 + $0x94] ss:$8 sps:$4 sm:$0xff]   ;;  %v5988_v28 = vld [vmem:[%s8593_s12 + $0xb0] ss:$8 sps:$4 sm:$0xff]  }
 0x517   : > { %v3834_v9 = vadd.f32 %v8000_v61, %v3778_v62  ;;  %v3670_v24 = vsel %vm1580_vm4, %v3642_v25, %v3616_v17  ;;  %v3780_v27 = vmul.f32 %v3748_v14, %v3644_v5  ;;  %4000 = vmatprep.subr.bf16.mxu0 %v3930_v47  ;;  %v3899_v43 = vmax.f32 %v3871_v15, 0.0  ;;  %4311 = vmatprep.subr.bf16.mxu1 %v5978_v63  ;;  %v5987_v35 = vld [vmem:[%s8593_s12 + $0xa4] ss:$8 sps:$4 sm:$0xff]   ;;  %v5990_v37 = vld [vmem:[%s8593_s12 + $0xb4] ss:$8 sps:$4 sm:$0xff]  }
 0x518   : > { %v3835_v4 = vadd.f32 %v8018_v50, %v3779_v7  ;;  %v3837_v30 = vadd.f32 %v8037_v52, %v3781_v55  ;;  %v3782_v45 = vmul.f32 %v3753_v44, %v3670_v24  ;;  %4001 = vmatpush1.bf16.msra.mxu0 %v3929_v56  ;;  %v3873_v36 = vadd.f32 %v8075_v1, %v3833_v18  ;;  %v5993_v20 = vld [vmem:[%s8593_s12 + $0xc4] ss:$8 sps:$4 sm:$0xff]   ;;  %v5991_v3 = vld [vmem:[%s8593_s12 + $0xc0] ss:$8 sps:$4 sm:$0xff]   ;;  %v5994_v15 = vld [vmem:[%s8593_s12 + $0xd0] ss:$8 sps:$4 sm:$0xff]  }
 0x519   : > { %v3836_v38 = vadd.f32 %v8028_v29, %v3780_v27  ;;  %v3874_v61 = vadd.f32 %v8084_v26, %v3834_v9  ;;  %v3900_v23 = vmax.f32 %v3872_v32, 0.0  ;;  %v5996_v42 = vld [vmem:[%s8593_s12 + $0xd4] ss:$8 sps:$4 sm:$0xff]   ;;  %v5997_v21 = vld [vmem:[%s8594_s13] sm:$0xff]   ;;  %v6111_v25 = vmov 0.0   ;;  %v5999_v56 = vld [vmem:[%s8594_s13 + $0x8] sm:$0xff]  }
 0x51a   : > { %v3838_v48 = vadd.f32 %v8044_v2, %v3782_v45  ;;  %v3901_v17 = vmax.f32 %v3873_v36, 0.0  ;;  %v3875_v59 = vadd.f32 %v8075_v1, %v3835_v4  ;;  %v3877_v6 = vadd.f32 %v8075_v1, %v3837_v30  ;;  %v5948_v1 = vld [vmem:[%s8592_s11] sm:$0xff]   ;;  %4312 = vmatpush1.bf16.msra.mxu1 %v5976_v46  ;;  %v6001_v44 = vld [vmem:[%s8594_s13 + $0x10] sm:$0xff]   ;;  %v6003_v14 = vld [vmem:[%s8594_s13 + $0x18] sm:$0xff]  }
 0x51b   : > { %v3902_v50 = vmax.f32 %v3874_v61, 0.0  ;;  %v3876_v52 = vadd.f32 %v8084_v26, %v3836_v38  ;;  %4313 = vmatprep.subr.bf16.mxu1 %v5981_v8  ;;  %v6005_v62 = vld [vmem:[%s8594_s13 + $0x20] sm:$0xff]   ;;  %v6007_v10 = vld [vmem:[%s8594_s13 + $0x28] sm:$0xff]   ;;  %v6004_v57 = vld [vmem:[%s8594_s13 + $0x50] sm:$0xff]  }
 0x51c   : > { %v3931_v51 = vpack.c.bf16 %v3901_v17, %v3899_v43  ;;  %v3878_v41 = vadd.f32 %v8084_v26, %v3838_v48  ;;  %v3903_v22 = vmax.f32 %v3875_v59, 0.0  ;;  %v3905_v13 = vmax.f32 %v3877_v6, 0.0  ;;  %v5949_v26 = vld [vmem:[%s8592_s11 + $0x8] sm:$0xff]  }
 0x51d   : > { %v3932_v29 = vpack.c.bf16 %v3902_v50, %v3900_v23  ;;  %v3904_v49 = vmax.f32 %v3876_v52, 0.0 }
 0x51e   : > { %v3906_v19 = vmax.f32 %v3878_v41, 0.0  ;;  %v3933_v11 = vpack.c.bf16 %v3905_v13, %v3903_v22  ;;  %4314 = vmatpush1.bf16.msra.mxu1 %v5979_v12 }
 0x51f   : > { %4002 = vmatprep.subr.bf16.mxu0 %v3932_v29  ;;  %4315 = vmatprep.subr.bf16.mxu1 %v5984_v58  ;;  %v5998_v29 = vld [vmem:[%s8594_s13 + $0x38] sm:$0xff]  }
 0x520   : > { %4003 = vmatpush1.bf16.msra.mxu0 %v3931_v51  ;;  %v3934_v2 = vpack.c.bf16 %v3906_v19, %v3904_v49  ;;  %v6000_v19 = vld [vmem:[%s8594_s13 + $0x40] sm:$0xff]  }
 0x522   : > { %4004 = vmatprep.subr.bf16.mxu0 %v3934_v2  ;;  %4316 = vmatpush1.bf16.msra.mxu1 %v5982_v40 }
 0x523   : > { %4317 = vmatprep.subr.bf16.mxu1 %v5987_v35 }
 0x524   : > { %4005 = vmatpush1.bf16.msra.mxu0 %v3933_v11 }
 0x525   : > { %5622 = vmatprep.subr.bf16.mxu0 %v6111_v25 }
 0x526   : > { %4318 = vmatpush1.bf16.msra.mxu1 %v5985_v33 }
 0x527   : > { %5364 = vmatmul.mubr.msk.bf16.vlgmr.msra.gmra.mrb[168].mxu0 %vm3970_vm5, %v5948_v1  ;;  %4319 = vmatprep.subr.bf16.mxu1 %v5990_v37  ;;  %v6006_v37 = vld [vmem:[%s8594_s13 + $0x58] sm:$0xff]  }
 0x528   : > { %4034 = vmatprep.mubr.bf16.mxu0 %v8724_v53  ;;  %5623 = vmatpush3.bf16.msra.mxu0 %v5997_v21  ;;  %v6010_v21 = vld [vmem:[%s8594_s13 + $0x68] sm:$0xff]  }
 0x529   : > { %5624 = vmatprep.subr.bf16.mxu0 %v6111_v25 }
 0x52a   : > { %4320 = vmatpush1.bf16.msra.mxu1 %v5988_v28 }
 0x52b   : > { %4321 = vmatprep.subr.bf16.mxu1 %v5993_v20 }
 0x52c   : > { %5625 = vmatpush3.bf16.msra.mxu0 %v5999_v56 }
 0x52d   : > { %5626 = vmatprep.subr.bf16.mxu0 %v6111_v25 }
 0x52e   : > { %4322 = vmatpush1.bf16.msra.mxu1 %v5991_v3 }
 0x52f   : > { %5365 = vmatmul.mubr.msk.bf16.gmra.mrb[172].mxu0 %vm3970_vm5, %v5949_v26  ;;  %4323 = vmatprep.subr.bf16.mxu1 %v5996_v42  ;;  %v6009_v42 = vld [vmem:[%s8594_s13 + $0x30] sm:$0xff]  }
 0x530   : > { %4044 = vmatprep.mubr.bf16.mxu0 %v8724_v53  ;;  %5627 = vmatpush3.bf16.msra.mxu0 %v6001_v44 }
 0x531   : > { %5628 = vmatprep.subr.bf16.mxu0 %v6111_v25 }
 0x532   : > { %4324 = vmatpush1.bf16.msra.mxu1 %v5994_v15  ;;  %v6008_v15 = vld [vmem:[%s8594_s13 + $0x60] sm:$0xff]  }
 0x533   : > { %5604 = vmatprep.subr.bf16.mxu1 %v6111_v25 }
 0x534   : > { %5629 = vmatpush3.bf16.msra.mxu0 %v6003_v14 }
 0x535   : > { %5630 = vmatprep.subr.bf16.mxu0 %v6111_v25 }
 0x537   : > { %5366 = vmatmul.mubr.msk.bf16.gmra.mrb[176].mxu0 %vm3970_vm5, %v5950_v34 }
 0x538   : > { %4054 = vmatprep.mubr.bf16.mxu0 %v8724_v53  ;;  %5631 = vmatpush3.bf16.msra.mxu0 %v6005_v62 }
 0x539   : > { %5632 = vmatprep.subr.bf16.mxu0 %v6111_v25 }
 0x53c   : > { %5633 = vmatpush3.bf16.msra.mxu0 %v6007_v10 }
 0x53d   : > { %5634 = vmatprep.subr.bf16.mxu0 %v6111_v25 }
 0x53f   : > { %5367 = vmatmul.mubr.msk.bf16.gmra.mrb[180].mxu0 %vm3970_vm5, %v5951_v0 }
 0x540   : > { %4064 = vmatprep.mubr.bf16.mxu0 %v8724_v53  ;;  %5635 = vmatpush3.bf16.msra.mxu0 %v6009_v42  ;;  %v6043_v42 = vld [vmem:[%s8594_s13 + $0x170] sm:$0xff]  }
 0x541   : > { %5658 = vmatprep.subr.bf16.mxu0 %v6111_v25 }
 0x547   : > { %5368 = vmatmul.mubr.msk.bf16.gmra.mrb[184].mxu0 %vm3970_vm5, %v5952_v60 }
 0x548   : > { %4074 = vmatprep.mubr.bf16.mxu0 %v8724_v53 }
 0x54f   : > { %5369 = vmatmul.mubr.msk.bf16.gmra.mrb[188].mxu0 %vm3970_vm5, %v5953_v16 }
 0x550   : > { %4084 = vmatprep.mubr.bf16.mxu0 %v8724_v53 }
 0x557   : > { %5370 = vmatmul.mubr.msk.bf16.gmra.mrb[192].mxu0 %vm3970_vm5, %v5954_v31  ;;  %v6002_v31 = vld [vmem:[%s8594_s13 + $0x48] sm:$0xff]  }
 0x558   : > { %5636 = vmatprep.mubr.msk.bf16.mxu0 %vm6112_vm6, %v6111_v25 }
 0x5fa   : > { %v4026_v54 = vpop.f32.mrb[168].mxu0 }
 0x5fb   : > { %v4028_v47 = vpop.f32.mrb[169].mxu0 }
 0x5fc   : > { %v4030_v18 = vpop.f32.mrb[170].mxu0 }
 0x5fd   : > { %v4032_v7 = vpop.f32.mrb[171].mxu0 }
 0x602   : > { %v4036_v55 = vpop.f32.mrb[172].mxu0 }
 0x603   : > { %v4038_v5 = vpop.f32.mrb[173].mxu0 }
 0x604   : > { %v4040_v9 = vpop.f32.mrb[174].mxu0 }
 0x605   : > { %v4042_v24 = vpop.f32.mrb[175].mxu0 }
 0x60a   : > { %v4046_v27 = vpop.f32.mrb[176].mxu0 }
 0x60b   : > { %v4048_v32 = vpop.f32.mrb[177].mxu0 }
 0x60c   : > { %v4050_v4 = vpop.f32.mrb[178].mxu0 }
 0x60d   : > { %v4052_v30 = vpop.f32.mrb[179].mxu0 }
 0x612   : > { %v4056_v45 = vpop.f32.mrb[180].mxu0 }
 0x613   : > { %v4058_v36 = vpop.f32.mrb[181].mxu0 }
 0x614   : > { %v4060_v38 = vpop.f32.mrb[182].mxu0 }
 0x615   : > { %v4095_v61 = vmax.f32 %v4026_v54, %v4060_v38  ;;  %v4062_v43 = vpop.f32.mrb[183].mxu0  ;;  %v6011_v54 = vld [vmem:[%s8594_s13 + $0xa8] sm:$0xff]   ;;  %v6016_v38 = vld [vmem:[%s8594_s13 + $0x80] sm:$0xff]  }
 0x616   : > { %v4096_v48 = vmax.f32 %v4028_v47, %v4062_v43 }
 0x61a   : > { %v4066_v17 = vpop.f32.mrb[184].mxu0 }
 0x61b   : > { %v4097_v59 = vmax.f32 %v4030_v18, %v4066_v17  ;;  %v4068_v6 = vpop.f32.mrb[185].mxu0  ;;  %v6018_v17 = vld [vmem:[%s8594_s13 + $0x88] sm:$0xff]  }
 0x61c   : > { %v4098_v23 = vmax.f32 %v4032_v7, %v4068_v6  ;;  %v4070_v50 = vpop.f32.mrb[186].mxu0  ;;  %v6012_v7 = vld [vmem:[%s8594_s13 + $0x70] sm:$0xff]  }
 0x61d   : > { %v4109_v52 = vpack.c.bf16 %v4097_v59, %v4095_v61  ;;  %v4099_v51 = vmax.f32 %v4036_v55, %v4070_v50  ;;  %v4072_v41 = vpop.f32.mrb[187].mxu0  ;;  %v6017_v61 = vld [vmem:[%s8594_s13 + $0xc0] sm:$0xff]   ;;  %v6019_v50 = vld [vmem:[%s8594_s13 + $0xc8] sm:$0xff]  }
 0x61e   : > { %v4110_v22 = vpack.c.bf16 %v4098_v23, %v4096_v48  ;;  %v4100_v13 = vmax.f32 %v4038_v5, %v4072_v41  ;;  %v6013_v5 = vld [vmem:[%s8594_s13 + $0xb0] sm:$0xff]  }
 0x61f   : > { %v6021_v41 = vld [vmem:[%s8594_s13 + $0xd0] sm:$0xff]  }
 0x620   : > { %5399 = vmatprep.mubr.msk.bf16.mxu1 %vm2279_vm3, %v4110_v22 }
 0x621   : > { %4330 = vmatmul.mubr.bf16.vlgmr.msra.gmra.mrb[168].mxu1 %v4109_v52 }
 0x622   : > { %v4076_v49 = vpop.f32.mrb[188].mxu0  ;;  %5605 = vmatpush3.bf16.msra.mxu1 %v5998_v29  ;;  %v6022_v29 = vld [vmem:[%s8594_s13 + $0x98] sm:$0xff]  }
 0x623   : > { %v4101_v11 = vmax.f32 %v4040_v9, %v4076_v49  ;;  %v4078_v2 = vpop.f32.mrb[189].mxu0  ;;  %5606 = vmatprep.subr.bf16.mxu1 %v6111_v25 }
 0x624   : > { %v4102_v1 = vmax.f32 %v4042_v24, %v4078_v2  ;;  %v4080_v53 = vpop.f32.mrb[190].mxu0  ;;  %v6023_v2 = vld [vmem:[%s8594_s13 + $0xd8] sm:$0xff]  }
 0x625   : > { %v4111_v26 = vpack.c.bf16 %v4101_v11, %v4099_v51  ;;  %v4103_v34 = vmax.f32 %v4046_v27, %v4080_v53  ;;  %v4082_v0 = vpop.f32.mrb[191].mxu0  ;;  %v6014_v27 = vld [vmem:[%s8594_s13 + $0x78] sm:$0xff]   ;;  %v6020_v51 = vld [vmem:[%s8594_s13 + $0x90] sm:$0xff]  }
 0x626   : > { %v4112_v60 = vpack.c.bf16 %v4102_v1, %v4100_v13  ;;  %v4104_v16 = vmax.f32 %v4048_v32, %v4082_v0  ;;  %5607 = vmatpush3.bf16.msra.mxu1 %v6000_v19  ;;  %v6024_v1 = vld [vmem:[%s8594_s13 + $0xa0] sm:$0xff]   ;;  %v6025_v53 = vld [vmem:[%s8594_s13 + $0x118] sm:$0xff]  }
 0x627   : > { %5608 = vmatprep.subr.bf16.mxu1 %v6111_v25 }
 0x628   : > { %5400 = vmatprep.mubr.msk.bf16.mxu1 %vm2279_vm3, %v4112_v60  ;;  %v6027_v60 = vld [vmem:[%s8594_s13 + $0x120] sm:$0xff]  }
 0x629   : > { %4340 = vmatmul.mubr.bf16.gmra.mrb[172].mxu1 %v4111_v26 }
 0x62a   : > { %v4086_v39 = vpop.f32.mrb[192].mxu0  ;;  %5609 = vmatpush3.bf16.msra.mxu1 %v6002_v31  ;;  %v6029_v31 = vld [vmem:[%s8594_s13 + $0x128] sm:$0xff]  }
 0x62b   : > { %v4105_v63 = vmax.f32 %v4050_v4, %v4086_v39  ;;  %v4088_v46 = vpop.f32.mrb[193].mxu0  ;;  %5610 = vmatprep.subr.bf16.mxu1 %v6111_v25  ;;  %v6030_v39 = vld [vmem:[%s8594_s13 + $0xf0] sm:$0xff]  }
 0x62c   : > { %v4106_v12 = vmax.f32 %v4052_v30, %v4088_v46  ;;  %v4090_v8 = vpop.f32.mrb[194].mxu0  ;;  %v6033_v46 = vld [vmem:[%s8594_s13 + $0x138] sm:$0xff]  }
 0x62d   : > { %v4113_v58 = vpack.c.bf16 %v4105_v63, %v4103_v34  ;;  %v4107_v40 = vmax.f32 %v4056_v45, %v4090_v8  ;;  %v4092_v33 = vpop.f32.mrb[195].mxu0  ;;  %v6015_v45 = vld [vmem:[%s8594_s13 + $0xb8] sm:$0xff]   ;;  %v6026_v34 = vld [vmem:[%s8594_s13 + $0xe0] sm:$0xff]  }
 0x62e   : > { %v4114_v35 = vpack.c.bf16 %v4106_v12, %v4104_v16  ;;  %v4108_v28 = vmax.f32 %v4058_v36, %v4092_v33  ;;  %5611 = vmatpush3.bf16.msra.mxu1 %v6004_v57  ;;  %v6028_v16 = vld [vmem:[%s8594_s13 + $0xe8] sm:$0xff]   ;;  %v6031_v57 = vld [vmem:[%s8594_s13 + $0x130] sm:$0xff]   ;;  %v6032_v63 = vld [vmem:[%s8594_s13 + $0xf8] sm:$0xff]  }
 0x62f   : > { %5612 = vmatprep.subr.bf16.mxu1 %v6111_v25  ;;  %v4115_v3 = vpack.c.bf16 %v4107_v40, %v4107_v40  ;;  %v6034_v12 = vld [vmem:[%s8594_s13 + $0x100] sm:$0xff]   ;;  %v6037_v40 = vld [vmem:[%s8594_s13 + $0x148] sm:$0xff]   ;;  %v6038_v33 = vld [vmem:[%s8594_s13 + $0x110] sm:$0xff]  }
 0x630   : > { %v4116_v20 = vpack.c.bf16 %v4108_v28, %v4108_v28  ;;  %5401 = vmatprep.mubr.msk.bf16.mxu1 %vm2279_vm3, %v4114_v35  ;;  %v6035_v8 = vld [vmem:[%s8594_s13 + $0x140] sm:$0xff]   ;;  %v6039_v28 = vld [vmem:[%s8594_s13 + $0x150] sm:$0xff]  }
 0x631   : > { %4350 = vmatmul.mubr.bf16.gmra.mrb[176].mxu1 %v4113_v58  ;;  %v6036_v58 = vld [vmem:[%s8594_s13 + $0x108] sm:$0xff]  }
 0x632   : > { %5402 = vmatprep.mubr.msk.bf16.mxu1 %vm2279_vm3, %v4116_v20  ;;  %5613 = vmatpush3.bf16.msra.mxu1 %v6006_v37  ;;  %v6040_v20 = vld [vmem:[%s8594_s13 + $0x158] sm:$0xff]  }
 0x633   : > { %5614 = vmatprep.subr.bf16.mxu1 %v6111_v25 }
 0x636   : > { %5615 = vmatpush3.bf16.msra.mxu1 %v6008_v15  ;;  %v6042_v15 = vld [vmem:[%s8594_s13 + $0x168] sm:$0xff]  }
 0x637   : > { %5616 = vmatprep.subr.bf16.mxu1 %v6111_v25 }
 0x639   : > { %4360 = vmatmul.mubr.bf16.gmra.mrb[180].mxu1 %v4115_v3  ;;  %v6041_v3 = vld [vmem:[%s8594_s13 + $0x160] sm:$0xff]  }
 0x63a   : > { %5617 = vmatpush3.bf16.msra.mxu1 %v6010_v21  ;;  %5618 = vmatprep.mubr.msk.bf16.mxu1 %vm6112_vm6, %v6111_v25  ;;  %v6044_v21 = vld [vmem:[%s8594_s13 + $0x178] sm:$0xff]  }
 0x63b   : > { %5640 = vmatprep.subr.bf16.mxu1 %v6111_v25 }
 0x6f4   : > { %v4331_v56 = vpop.f32.mrb[168].mxu1 }
 0x6f5   : > { %v4333_v44 = vpop.f32.mrb[169].mxu1 }
 0x6f6   : > { %v4368_v14 = vmax.f32 %v4331_v56, %v4333_v44  ;;  %v4335_v62 = vpop.f32.mrb[170].mxu1  ;;  %v6045_v56 = vld [vmem:[%s8594_s13 + $0x180] sm:$0xff]  }
 0x6f7   : > { %v4337_v10 = vpop.f32.mrb[171].mxu1 }
 0x6f8   : > { %v4375_v47 = vpack.c.bf16 %v4368_v14, %v4368_v14  ;;  %v4369_v18 = vmax.f32 %v4335_v62, %v4337_v10 }
 0x6fa   : > { %v4390_v55 = vpack.c.bf16 %v4369_v18, %v4369_v18  ;;  %5637 = vmatmul.mubr.msk.bf16.vlgmr.msra.gmra.mrb[196].mxu0 %vm3970_vm5, %v4375_v47 }
 0x6fb   : > { %5659 = vmatpush3.bf16.msra.mxu0 %v6011_v54  ;;  %5672 = vmatprep.mubr.msk.bf16.mxu0 %vm6112_vm6, %v6111_v25 }
 0x6fc   : > { %v4341_v9 = vpop.f32.mrb[172].mxu1  ;;  %5619 = vmatmul.mubr.msk.bf16.vlgmr.msra.gmra.mrb[184].mxu1 %vm3970_vm5, %v4390_v55  ;;  %5660 = vmatprep.subr.bf16.mxu0 %v6111_v25 }
 0x6fd   : > { %5641 = vmatpush3.bf16.msra.mxu1 %v6012_v7  ;;  %v4343_v24 = vpop.f32.mrb[173].mxu1  ;;  %5654 = vmatprep.mubr.msk.bf16.mxu1 %vm6112_vm6, %v6111_v25 }
 0x6fe   : > { %v4370_v32 = vmax.f32 %v4341_v9, %v4343_v24  ;;  %v4345_v4 = vpop.f32.mrb[174].mxu1  ;;  %5642 = vmatprep.subr.bf16.mxu1 %v6111_v25 }
 0x6ff   : > { %5661 = vmatpush3.bf16.msra.mxu0 %v6013_v5  ;;  %v4347_v30 = vpop.f32.mrb[175].mxu1 }
 0x700   : > { %v4371_v36 = vmax.f32 %v4345_v4, %v4347_v30  ;;  %5662 = vmatprep.subr.bf16.mxu0 %v6111_v25  ;;  %v4576_v0 = vpack.c.bf16 %v4370_v32, %v4370_v32 }
 0x701   : > { %5643 = vmatpush3.bf16.msra.mxu1 %v6014_v27 }
 0x702   : > { %5644 = vmatprep.subr.bf16.mxu1 %v6111_v25  ;;  %v4678_v26 = vpack.c.bf16 %v4371_v36, %v4371_v36 }
 0x703   : > { %5663 = vmatpush3.bf16.msra.mxu0 %v6015_v45 }
 0x704   : > { %v4351_v43 = vpop.f32.mrb[176].mxu1  ;;  %5664 = vmatprep.subr.bf16.mxu0 %v6111_v25 }
 0x705   : > { %5645 = vmatpush3.bf16.msra.mxu1 %v6016_v38  ;;  %v4353_v48 = vpop.f32.mrb[177].mxu1 }
 0x706   : > { %v8399_v59 = vmax.f32 %v4351_v43, %v4353_v48  ;;  %v4355_v6 = vpop.f32.mrb[178].mxu1  ;;  %5646 = vmatprep.subr.bf16.mxu1 %v6111_v25 }
 0x707   : > { %5665 = vmatpush3.bf16.msra.mxu0 %v6017_v61  ;;  %v4357_v23 = vpop.f32.mrb[179].mxu1 }
 0x708   : > { %v8405_v52 = vmax.f32 %v4355_v6, %v4357_v23  ;;  %5666 = vmatprep.subr.bf16.mxu0 %v6111_v25  ;;  %v4780_v37 = vpack.c.bf16 %v8399_v59, %v8399_v59 }
 0x709   : > { %5647 = vmatpush3.bf16.msra.mxu1 %v6018_v17 }
 0x70a   : > { %5648 = vmatprep.subr.bf16.mxu1 %v6111_v25  ;;  %v4882_v35 = vpack.c.bf16 %v8405_v52, %v8405_v52 }
 0x70b   : > { %5667 = vmatpush3.bf16.msra.mxu0 %v6019_v50 }
 0x70c   : > { %v4361_v22 = vpop.f32.mrb[180].mxu1  ;;  %5668 = vmatprep.subr.bf16.mxu0 %v6111_v25 }
 0x70d   : > { %5649 = vmatpush3.bf16.msra.mxu1 %v6020_v51  ;;  %v4363_v13 = vpop.f32.mrb[181].mxu1 }
 0x70e   : > { %v8419_v49 = vmax.f32 %v4361_v22, %v4363_v13  ;;  %v4365_v19 = vpop.f32.mrb[182].mxu1  ;;  %5650 = vmatprep.subr.bf16.mxu1 %v6111_v25  ;;  %v5543_v22 = vld [vmem:[%s8595_s14] ss:$0 sm:$0xff] }
 0x70f   : > { %5669 = vmatpush3.bf16.msra.mxu0 %v6021_v41  ;;  %v4366_v11 = vpop.f32.mrb[183].mxu1 }
 0x710   : > { %5670 = vmatprep.subr.bf16.mxu0 %v6111_v25  ;;  %v4984_v44 = vpack.c.bf16 %v8419_v49, %v8419_v49 }
 0x711   : > { %5651 = vmatpush3.bf16.msra.mxu1 %v6022_v29 }
 0x712   : > { %5652 = vmatprep.subr.bf16.mxu1 %v6111_v25 }
 0x713   : > { %5671 = vmatpush3.bf16.msra.mxu0 %v6023_v2 }
 0x714   : > { %5694 = vmatprep.subr.bf16.mxu0 %v6111_v25 }
 0x715   : > { %5653 = vmatpush3.bf16.msra.mxu1 %v6024_v1 }
 0x716   : > { %5673 = vmatmul.mubr.msk.bf16.vlgmr.msra.gmra.mrb[200].mxu0 %vm3970_vm5, %v4678_v26  ;;  %5676 = vmatprep.subr.bf16.mxu1 %v6111_v25 }
 0x717   : > { %5695 = vmatpush3.bf16.msra.mxu0 %v6025_v53  ;;  %5708 = vmatprep.mubr.msk.bf16.mxu0 %vm6112_vm6, %v6111_v25 }
 0x718   : > { %5655 = vmatmul.mubr.msk.bf16.vlgmr.msra.gmra.mrb[188].mxu1 %vm3970_vm5, %v4576_v0  ;;  %5696 = vmatprep.subr.bf16.mxu0 %v6111_v25 }
 0x719   : > { %5677 = vmatpush3.bf16.msra.mxu1 %v6026_v34  ;;  %5690 = vmatprep.mubr.msk.bf16.mxu1 %vm6112_vm6, %v6111_v25 }
 0x71a   : > { %5678 = vmatprep.subr.bf16.mxu1 %v6111_v25 }
 0x71b   : > { %5697 = vmatpush3.bf16.msra.mxu0 %v6027_v60 }
 0x71c   : > { %5698 = vmatprep.subr.bf16.mxu0 %v6111_v25 }
 0x71d   : > { %5679 = vmatpush3.bf16.msra.mxu1 %v6028_v16 }
 0x71e   : > { %5680 = vmatprep.subr.bf16.mxu1 %v6111_v25 }
 0x71f   : > { %5699 = vmatpush3.bf16.msra.mxu0 %v6029_v31 }
 0x720   : > { %5700 = vmatprep.subr.bf16.mxu0 %v6111_v25 }
 0x721   : > { %5681 = vmatpush3.bf16.msra.mxu1 %v6030_v39 }
 0x722   : > { %5682 = vmatprep.subr.bf16.mxu1 %v6111_v25 }
 0x723   : > { %5701 = vmatpush3.bf16.msra.mxu0 %v6031_v57 }
 0x724   : > { %5702 = vmatprep.subr.bf16.mxu0 %v6111_v25 }
 0x725   : > { %5683 = vmatpush3.bf16.msra.mxu1 %v6032_v63 }
 0x726   : > { %5684 = vmatprep.subr.bf16.mxu1 %v6111_v25 }
 0x727   : > { %5703 = vmatpush3.bf16.msra.mxu0 %v6033_v46 }
 0x728   : > { %5704 = vmatprep.subr.bf16.mxu0 %v6111_v25 }
 0x729   : > { %5685 = vmatpush3.bf16.msra.mxu1 %v6034_v12 }
 0x72a   : > { %5686 = vmatprep.subr.bf16.mxu1 %v6111_v25 }
 0x72b   : > { %5705 = vmatpush3.bf16.msra.mxu0 %v6035_v8 }
 0x72c   : > { %5706 = vmatprep.subr.bf16.mxu0 %v6111_v25 }
 0x72d   : > { %5687 = vmatpush3.bf16.msra.mxu1 %v6036_v58 }
 0x72e   : > { %5688 = vmatprep.subr.bf16.mxu1 %v6111_v25 }
 0x72f   : > { %5707 = vmatpush3.bf16.msra.mxu0 %v6037_v40 }
 0x731   : > { %5689 = vmatpush3.bf16.msra.mxu1 %v6038_v33 }
 0x732   : > { %5709 = vmatmul.mubr.msk.bf16.vlgmr.msra.gmra.mrb[204].mxu0 %vm3970_vm5, %v4882_v35  ;;  %5712 = vmatprep.subr.bf16.mxu1 %v6111_v25 }
 0x734   : > { %5691 = vmatmul.mubr.msk.bf16.vlgmr.msra.gmra.mrb[192].mxu1 %vm3970_vm5, %v4780_v37 }
 0x735   : > { %5713 = vmatpush3.bf16.msra.mxu1 %v6039_v28  ;;  %5726 = vmatprep.mubr.msk.bf16.mxu1 %vm6112_vm6, %v6111_v25 }
 0x736   : > { %5714 = vmatprep.subr.bf16.mxu1 %v6111_v25 }
 0x739   : > { %5715 = vmatpush3.bf16.msra.mxu1 %v6040_v20 }
 0x73a   : > { %5716 = vmatprep.subr.bf16.mxu1 %v6111_v25 }
 0x73d   : > { %5717 = vmatpush3.bf16.msra.mxu1 %v6041_v3 }
 0x73e   : > { %5718 = vmatprep.subr.bf16.mxu1 %v6111_v25 }
 0x741   : > { %5719 = vmatpush3.bf16.msra.mxu1 %v6042_v15 }
 0x742   : > { %5720 = vmatprep.subr.bf16.mxu1 %v6111_v25 }
 0x745   : > { %5721 = vmatpush3.bf16.msra.mxu1 %v6043_v42 }
 0x746   : > { %5722 = vmatprep.subr.bf16.mxu1 %v6111_v25 }
 0x749   : > { %5723 = vmatpush3.bf16.msra.mxu1 %v6044_v21 }
 0x74a   : > { %5724 = vmatprep.subr.bf16.mxu1 %v6111_v25 }
 0x74d   : > { %5725 = vmatpush3.bf16.msra.mxu1 %v6045_v56 }
 0x750   : > { %5727 = vmatmul.mubr.msk.bf16.vlgmr.msra.gmra.mrb[196].mxu1 %vm3970_vm5, %v4984_v44 }
 0x7cd   : > { %v4570_v14 = vpop.f32.mrb[196].mxu0 }
 0x7ce   : > { %v5638_v62 = vpop.f32.mrb[197].mxu0 }
 0x7cf   : > { %v4485_v10 = vpop.f32.mrb[184].mxu1  ;;  %v4573_v54 = vpop.f32.mrb[198].mxu0 }
 0x7d0   : > { %v4571_v47 = vadd.f32 %v4570_v14, %v4485_v10  ;;  %v5620_v18 = vpop.f32.mrb[185].mxu1  ;;  %v5639_v7 = vpop.f32.mrb[199].mxu0 }
 0x7d1   : > { %v4488_v55 = vpop.f32.mrb[186].mxu1 }
 0x7d2   : > { %v5621_v5 = vpop.f32.mrb[187].mxu1 }
 0x7e9   : > { %v4773_v9 = vpop.f32.mrb[200].mxu0 }
 0x7ea   : > { %v5674_v24 = vpop.f32.mrb[201].mxu0 }
 0x7eb   : > { %v4671_v27 = vpop.f32.mrb[188].mxu1  ;;  %v4776_v32 = vpop.f32.mrb[202].mxu0 }
 0x7ec   : > { %v4677_v25 = vadd.f32 %v4671_v27, %v4571_v47  ;;  %v5656_v4 = vpop.f32.mrb[189].mxu1  ;;  %v5675_v30 = vpop.f32.mrb[203].mxu0 }
 0x7ed   : > { %v4674_v45 = vpop.f32.mrb[190].mxu1 }
 0x7ee   : > { %v5657_v36 = vpop.f32.mrb[191].mxu1  ;;  %v4779_v38 = vadd.f32 %v4773_v9, %v4677_v25 }
 0x805   : > { %v4977_v61 = vpop.f32.mrb[204].mxu0 }
 0x806   : > { %v5710_v43 = vpop.f32.mrb[205].mxu0 }
 0x807   : > { %v4875_v48 = vpop.f32.mrb[192].mxu1  ;;  %v4980_v17 = vpop.f32.mrb[206].mxu0 }
 0x808   : > { %v4881_v59 = vadd.f32 %v4875_v48, %v4779_v38  ;;  %v5692_v6 = vpop.f32.mrb[193].mxu1  ;;  %v5711_v23 = vpop.f32.mrb[207].mxu0 }
 0x809   : > { %v4878_v50 = vpop.f32.mrb[194].mxu1 }
 0x80a   : > { %v5693_v52 = vpop.f32.mrb[195].mxu1  ;;  %v4983_v51 = vadd.f32 %v4977_v61, %v4881_v59 }
 0x823   : > { %v5079_v41 = vpop.f32.mrb[196].mxu1 }
 0x824   : > { %v5085_v13 = vadd.f32 %v5079_v41, %v4983_v51  ;;  %v5728_v29 = vpop.f32.mrb[197].mxu1 }
 0x825   : > { %v5082_v49 = vpop.f32.mrb[198].mxu1 }
 0x826   : > { %v5093_v19 = vadd.f32 %v5543_v22, %v5085_v13  ;;  %v5729_v11 = vpop.f32.mrb[199].mxu1 }
 0x828   : > { %5095 = vst.msk [vmem:[%s488_s24] sm:$0xff] %vm5094_vm7, %v5093_v19 }
 0x829   : > { %6059 = shalt.err (!%p6056_p3)
}
 0x82a   : > { %s6060_s27 = scalar_lea.hbm %s8539_s25, 128  ;;  %s6064_s24 = scalar_lea.hbm %s8596_s15, 256 }
 0x82b   : > { %p6061_p4 = scmp.ne.s32.totalorder %s8539_s25, %s6060_s27  ;;  %p6065_p9 = scmp.lt.u32.totalorder %s8539_s25, %s8596_s15 }
 0x82c   : > { %p6066_p10 = scmp.lt.u32.totalorder %s6064_s24, %s6060_s27  ;;  %p6068_p12 = scmp.lt.u32.totalorder %s6060_s27, %s8539_s25 }
 0x82d   : > { %p6062_p7 = pnand %p6061_p4, %p6232_p5 }
 0x82e   : > { %p6067_p11 = por %p6066_p10, %p6065_p9 }
 0x82f   : > { %p6063_p8 = pneg %p6062_p7 }
 0x830   : > { %p6069_p13 = por %p6068_p12, %p6067_p11 }
 0x832   : > { %p6070_p0 = pnand %p6069_p13, %p6063_p8 }
 0x834   : > { %6073 = shalt.err (!%p6070_p0)
}
 0x835   : > { %5730 = dma.vmem_to_hbm [thread:$0]  (%p6232_p5), %s8541_s18, 128, %s8539_s25, %s5097_s22  }
 0x836 PF: > { %s8725_s16 = sld [smem:[#allocation7_spill]]  ;;  %s8726_s17 = sld [smem:[#allocation5_spill]] }
 0x83c   : > { %p5736_p1 = scmp.ge.s32.totalorder %s8725_s16, 2  ;;  %s5122_s20 = sand.u32 1, %s8726_s17  }
 0x83d   : > { %s5123_s26 = scalar_lea.sflag [#allocation3], %s5122_s20 }
 0x83e   : > { %p5733_p2 = pnand %p5736_p1, %p6236_p6 }
 0x840   : > { %6091 = dma.done.wait (!%p5733_p2), %s5123_s26, 128  }
 0x841   : > { %6093 = vsyncadd (!%p5733_p2), %s5123_s26, 4294967168  ;;  %s8728_s21 = sld [smem:[#allocation8_spill]]  ;;  %s8729_s27 = sld [smem:[#allocation6_spill]] }
 0x842   : > { %s8730_s20 = sld [smem:[#allocation9_spill]]  ;;  %s8731_s18 = smov %s6100_s19 }
 0x847   : > { %p25_p3 = scmp.ge.s32.totalorder %s8728_s21, 4   ;;  %s8732_s19 = smov %s8729_s27 }
 0x849   :  { %27 = sbr.rel (!%p25_p3) target bundleno = 3 (0x3), region = 121 }
 0x850   :  { %5128 = vsyncpa [#allocation3], 1 }
 0x851   :  { %5130 = vsyncpa [#allocation3 + $0x1], 1 }

</bundles_post_ra>
